<compile_context>
chip_gen: v7x
topology: tpu7x:2x2x1
jax: 0.10.0
libtpu: 0.0.40
codegen_flags: <defaults>
</compile_context>

<pallas_src>
import functools

import jax
import jax.numpy as jnp
from jax.experimental import pallas as pl
from jax.experimental.pallas import tpu as pltpu

BN_EPS = 1e-5
LANE = 128
SUBLANE = 8


def _round_up(x, m):
    return (x + m - 1) // m * m


def _vmem_limit_bytes():
    # Per-generation scoped-VMEM limit: ~85% of physical capacity
    # (v5e/v6e: ~108 MiB of 128 MiB, v7x: ~54 MiB of 64 MiB), capped for safety.
    try:
        cap = int(pltpu.get_tpu_info().vmem_capacity_bytes)
    except Exception:
        cap = 64 * 1024 * 1024
    cap = max(cap, 32 * 1024 * 1024)
    return min(int(cap * 0.85), 112 * 1024 * 1024)


_VMEM_LIMIT = _vmem_limit_bytes()


# ----------------------------------------------------------------------------
# Kernel 1: RWSE power chain, one row block of TM nodes per grid step.
# ----------------------------------------------------------------------------
def rwse_kernel(p_ref, pt_ref, d1_ref, pe_ref):
    """diag(P^k), k = 1..K, for one row block.

    p_ref  : [N, N]  bf16  resident P = D^-1 A (same block every grid step)
    pt_ref : [TM, N] bf16  streamed row block of P^T
    d1_ref : [TM, 1] f32   diag(P) for this row block (= diag(A)/deg)
    pe_ref : [TM, K] f32   output diagonals
    """
    tm = pt_ref.shape[0]
    k_max = pe_ref.shape[1]

    r0 = pl.multiple_of(pl.program_id(0) * tm, tm)
    pt_f32 = pt_ref[...].astype(jnp.float32)            # hoisted, reused each hop

    pe_ref[:, 0:1] = d1_ref[...]                         # diag(P^1)

    # M holds this block's rows of P^(k-1); kept bf16 across the chain (MXU native).
    m = p_ref[pl.ds(r0, tm), :]                          # [TM, N] bf16
    for hop in range(2, k_max + 1):                      # static, small trip count (dim_pe)
        # diag(P^hop)[i] = sum_j P^(hop-1)[i,j] * P[j,i] = rowsum(M ⊙ P^T); f32 accumulate.
        d = jnp.sum(m.astype(jnp.float32) * pt_f32, axis=1, keepdims=True)
        pe_ref[:, hop - 1:hop] = d
        if hop < k_max:
            m = jnp.dot(m, p_ref[...],
                        preferred_element_type=jnp.float32).astype(jnp.bfloat16)


# ----------------------------------------------------------------------------
# Kernel 2: ConcatNodeEncoder on one row block (lane-dense padded hidden dim).
# ----------------------------------------------------------------------------
def node_encoder_kernel(feat_ref, pe_ref, s_ref, t_ref,
                        wf_ref, wp_ref, b_ref, h_ref):
    """h = concat(feat @ Wf + bf, Linear(BN(pe))).

    The concat is realized by zero-padding Wf / Wp to the full padded hidden
    width in the wrapper and summing two MXU results.  BN batch statistics are
    pre-reduced in the wrapper; here BN is the vectorized affine pe*s + t over
    all K columns at once, followed by one [TM,K]@[K,H_pad] MXU matmul.
    """
    pe_n = pe_ref[...] * s_ref[...] + t_ref[...]                       # [TM, K] f32
    h = jnp.dot(feat_ref[...], wf_ref[...], preferred_element_type=jnp.float32)
    h = h + jnp.dot(pe_n.astype(jnp.bfloat16), wp_ref[...],
                    preferred_element_type=jnp.float32)
    h_ref[...] = h + b_ref[...]                                        # [TM, H_pad]


# ----------------------------------------------------------------------------
# Kernel 3: edge encoder (Linear), its own parallel row-blocked call.
# ----------------------------------------------------------------------------
def edge_encoder_kernel(efeat_ref, we_ref, be_ref, o_ref):
    o_ref[...] = jnp.dot(efeat_ref[...], we_ref[...],
                         preferred_element_type=jnp.float32) + be_ref[...]


# ----------------------------------------------------------------------------
# Wrapper.
# ----------------------------------------------------------------------------
@functools.partial(jax.jit, static_argnames=("dim_hidden", "dim_pe"))
def feature_encoder_forward(adj, node_feat, edge_feat, params, *,
                            dim_hidden, dim_pe):
    """Equivalent of FeatureEncoder.forward(g) with the RWSE branch."""
    n = node_feat.shape[0]
    e = edge_feat.shape[0]
    f_node = node_feat.shape[1]
    f_edge = edge_feat.shape[1]
    kdim = dim_pe
    fdim = dim_hidden - kdim

    h_pad_dim = _round_up(dim_hidden, LANE)
    tm = min(LANE, _round_up(n, SUBLANE))
    n_pad = _round_up(n, tm)
    te = min(LANE, _round_up(e, SUBLANE))
    e_pad = _round_up(e, te)
    dn = n_pad - n

    # ---- graph preprocessing (layout plumbing): P = D^-1 A in bf16, P^T, diag(P) ----
    adj_f = adj.astype(jnp.float32)
    deg = jnp.sum(adj_f, axis=1, keepdims=True)               # f32-accumulated degrees
    inv_deg = jnp.where(deg > 0.0, 1.0 / deg, 0.0)
    p_bf = (adj_f * inv_deg).astype(jnp.bfloat16)              # MXU-native operand
    d1 = jnp.diagonal(adj_f)[:, None] * inv_deg                # diag(P), no N^2 eye needed

    p_bf = jnp.pad(p_bf, ((0, dn), (0, dn)))                   # padded rows = isolated nodes
    pt_bf = p_bf.T
    d1 = jnp.pad(d1, ((0, dn), (0, 0)))

    grid_n = n_pad // tm

    # ---- Stage 1: RWSE power chain, row-blocked "parallel" grid ----
    pe_pad = pl.pallas_call(
        rwse_kernel,
        out_shape=jax.ShapeDtypeStruct((n_pad, kdim), jnp.float32),
        grid=(grid_n,),
        in_specs=[
            pl.BlockSpec((n_pad, n_pad), lambda i: (0, 0)),    # P resident across the grid
            pl.BlockSpec((tm, n_pad), lambda i: (i, 0)),       # P^T row strip (streamed)
            pl.BlockSpec((tm, 1), lambda i: (i, 0)),           # diag(P) row strip
        ],
        out_specs=pl.BlockSpec((tm, kdim), lambda i: (i, 0)),
        compiler_params=pltpu.CompilerParams(
            dimension_semantics=("parallel",),
            vmem_limit_bytes=_VMEM_LIMIT),
    )(p_bf, pt_bf, d1)

    # ---- BatchNorm1d batch statistics (train mode): tiny [1, K] global reduction.
    # Kept as an XLA reduction between the two pallas_calls (two-pass stats over the
    # row-blocked PE); the normalization + PE projection themselves run in-kernel.
    pe = pe_pad[:n]
    mean = jnp.mean(pe, axis=0, keepdims=True)
    var = jnp.mean(jnp.square(pe - mean), axis=0, keepdims=True)
    s = params["gamma"] * jax.lax.rsqrt(var + BN_EPS)          # [1, K]
    t = params["beta"] - mean * s                              # [1, K]

    # ---- Stage 2: node encoder (feat + PE branches summed into a lane-dense slab) ----
    wf_pad = jnp.pad(params["wf"], ((0, 0), (0, h_pad_dim - fdim))).astype(jnp.bfloat16)
    wp_pad = jnp.pad(params["wp"], ((0, 0), (fdim, h_pad_dim - dim_hidden))).astype(jnp.bfloat16)
    b_node = jnp.pad(jnp.concatenate([params["bf"], params["bp"]], axis=1),
                     ((0, 0), (0, h_pad_dim - dim_hidden)))
    feat_p = jnp.pad(node_feat, ((0, dn), (0, 0))).astype(jnp.bfloat16)

    h_slab = pl.pallas_call(
        node_encoder_kernel,
        out_shape=jax.ShapeDtypeStruct((n_pad, h_pad_dim), jnp.float32),
        grid=(grid_n,),
        in_specs=[
            pl.BlockSpec((tm, f_node), lambda i: (i, 0)),
            pl.BlockSpec((tm, kdim), lambda i: (i, 0)),
            pl.BlockSpec((1, kdim), lambda i: (0, 0)),
            pl.BlockSpec((1, kdim), lambda i: (0, 0)),
            pl.BlockSpec((f_node, h_pad_dim), lambda i: (0, 0)),
            pl.BlockSpec((kdim, h_pad_dim), lambda i: (0, 0)),
            pl.BlockSpec((1, h_pad_dim), lambda i: (0, 0)),
        ],
        out_specs=pl.BlockSpec((tm, h_pad_dim), lambda i: (i, 0)),
        compiler_params=pltpu.CompilerParams(
            dimension_semantics=("parallel",),
            vmem_limit_bytes=_VMEM_LIMIT),
    )(feat_p, pe_pad, s, t, wf_pad, wp_pad, b_node)
    h = h_slab[:n, :dim_hidden]

    # ---- Stage 3: edge encoder, separate parallel row-blocked call ----
    we_pad = jnp.pad(params["we"], ((0, 0), (0, h_pad_dim - dim_hidden))).astype(jnp.bfloat16)
    be_pad = jnp.pad(params["be"], ((0, 0), (0, h_pad_dim - dim_hidden)))
    efeat_p = jnp.pad(edge_feat, ((0, e_pad - e), (0, 0))).astype(jnp.bfloat16)

    eattr_slab = pl.pallas_call(
        edge_encoder_kernel,
        out_shape=jax.ShapeDtypeStruct((e_pad, h_pad_dim), jnp.float32),
        grid=(e_pad // te,),
        in_specs=[
            pl.BlockSpec((te, f_edge), lambda i: (i, 0)),
            pl.BlockSpec((f_edge, h_pad_dim), lambda i: (0, 0)),
            pl.BlockSpec((1, h_pad_dim), lambda i: (0, 0)),
        ],
        out_specs=pl.BlockSpec((te, h_pad_dim), lambda i: (i, 0)),
        compiler_params=pltpu.CompilerParams(
            dimension_semantics=("parallel",),
            vmem_limit_bytes=_VMEM_LIMIT),
    )(efeat_p, we_pad, be_pad)
    edge_attr = eattr_slab[:e, :dim_hidden]

    return h, edge_attr


# ----------------------------------------------------------------------------
# Pure-JAX reference (mirrors the bf16 MXU power chain so tolerances stay tight;
# otherwise the plain RWSE / BN / Linear / concat formulation of the module).
# ----------------------------------------------------------------------------
def reference_forward(adj, node_feat, edge_feat, params, *, dim_hidden, dim_pe):
    adj = adj.astype(jnp.float32)
    deg = jnp.sum(adj, axis=1, keepdims=True)
    inv_deg = jnp.where(deg > 0.0, 1.0 / deg, 0.0)
    p_bf = (adj * inv_deg).astype(jnp.bfloat16)
    pt_f32 = p_bf.astype(jnp.float32).T

    diags = [jnp.diagonal(adj) * inv_deg[:, 0]]                # diag(P)
    m = p_bf
    for hop in range(2, dim_pe + 1):
        diags.append(jnp.sum(m.astype(jnp.float32) * pt_f32, axis=1))   # diag(P^hop)
        if hop < dim_pe:
            m = jnp.dot(m, p_bf,
                        preferred_element_type=jnp.float32).astype(jnp.bfloat16)
    pe = jnp.stack(diags, axis=1)                              # [N, dim_pe]

    mean = jnp.mean(pe, axis=0, keepdims=True)
    var = jnp.mean((pe - mean) ** 2, axis=0, keepdims=True)
    pe_n = (pe - mean) * jax.lax.rsqrt(var + BN_EPS)
    pe_n = pe_n * params["gamma"] + params["beta"]

    h_feat = node_feat @ params["wf"] + params["bf"]
    h_pe = pe_n @ params["wp"] + params["bp"]
    h = jnp.concatenate([h_feat, h_pe], axis=1)
    edge_attr = edge_feat @ params["we"] + params["be"]
    return h, edge_attr


if __name__ == "__main__":
    # Small, deterministic problem sizes (exercise multiple row blocks + padding).
    N, E = 200, 300          # nodes, edges
    F_NODE, F_EDGE = 12, 6   # raw feature dims
    DIM_HIDDEN, DIM_PE = 32, 8

    key = jax.random.PRNGKey(0)
    k_adj, k_nf, k_ef, k_wf, k_wp, k_we = jax.random.split(key, 6)

    # Undirected random graph with a ring so every node has degree >= 1 (no self-loops).
    rand = jax.random.uniform(k_adj, (N, N))
    adj = (rand + rand.T > 1.55).astype(jnp.float32)
    ring = jnp.eye(N, k=1) + jnp.eye(N, k=-1)
    ring = ring.at[0, N - 1].set(1.0).at[N - 1, 0].set(1.0)
    adj = jnp.clip(adj + ring, 0.0, 1.0)
    adj = adj * (1.0 - jnp.eye(N))

    node_feat = jax.random.normal(k_nf, (N, F_NODE), jnp.float32)
    edge_feat = jax.random.normal(k_ef, (E, F_EDGE), jnp.float32)

    # Deterministic synthetic parameters (shapes from the module __init__).
    params = {
        # node feature linear: F_NODE -> dim_hidden - dim_pe
        "wf": 0.1 * jax.random.normal(k_wf, (F_NODE, DIM_HIDDEN - DIM_PE), jnp.float32),
        "bf": jnp.zeros((1, DIM_HIDDEN - DIM_PE), jnp.float32),
        # BatchNorm1d(dim_pe) affine params
        "gamma": jnp.ones((1, DIM_PE), jnp.float32),
        "beta": jnp.zeros((1, DIM_PE), jnp.float32),
        # PE linear: dim_pe -> dim_pe
        "wp": 0.1 * jax.random.normal(k_wp, (DIM_PE, DIM_PE), jnp.float32),
        "bp": jnp.zeros((1, DIM_PE), jnp.float32),
        # edge linear: F_EDGE -> dim_hidden
        "we": 0.1 * jax.random.normal(k_we, (F_EDGE, DIM_HIDDEN), jnp.float32),
        "be": jnp.zeros((1, DIM_HIDDEN), jnp.float32),
    }

    h, edge_attr = feature_encoder_forward(
        adj, node_feat, edge_feat, params,
        dim_hidden=DIM_HIDDEN, dim_pe=DIM_PE)
    jax.block_until_ready((h, edge_attr))

    h_ref, e_ref = reference_forward(
        adj, node_feat, edge_feat, params,
        dim_hidden=DIM_HIDDEN, dim_pe=DIM_PE)

    assert h.shape == (N, DIM_HIDDEN) and edge_attr.shape == (E, DIM_HIDDEN)
    assert bool(jnp.all(jnp.isfinite(h))) and bool(jnp.all(jnp.isfinite(edge_attr)))
    assert bool(jnp.allclose(h, h_ref, atol=1e-2, rtol=1e-2))
    assert bool(jnp.allclose(edge_attr, e_ref, atol=1e-2, rtol=1e-2))
    print("KERNEL_OK")
</pallas_src>

<mosaic_0001>
module attributes {stable_mosaic.version = 11 : i64} {
  func.func @rwse_kernel(%arg0: i32, %arg1: memref<256x256xbf16, #tpu.memory_space<vmem>>, %arg2: memref<128x256xbf16, #tpu.memory_space<vmem>>, %arg3: memref<128x1xf32, #tpu.memory_space<vmem>>, %arg4: memref<128x8xf32, #tpu.memory_space<vmem>>) attributes {dimension_semantics = [#tpu.dimension_semantics<parallel>], iteration_bounds = array<i64: 2>, scalar_prefetch = 0 : i64, scratch_operands = 0 : i64, tpu.core_type = #tpu.core_type<tc>, window_params = [{pipeline_mode = #tpu.pipeline_mode<synchronous>, transform_indices = @transform_0, window_bounds = array<i64: 256, 256>}, {transform_indices = @transform_1, window_bounds = array<i64: 128, 256>}, {transform_indices = @transform_2, window_bounds = array<i64: 128, 1>}, {transform_indices = @transform_3, window_bounds = array<i64: 128, 8>}]} {
    %c128_i32 = arith.constant 128 : i32
    %0 = arith.muli %arg0, %c128_i32 : i32
    %1 = tpu.assume_multiple %0, 128 : i32
    %c0 = arith.constant 0 : index
    %c0_0 = arith.constant 0 : index
    %2 = vector.load %arg2[%c0, %c0_0] : memref<128x256xbf16, #tpu.memory_space<vmem>>, vector<128x256xbf16>
    %3 = arith.extf %2 : vector<128x256xbf16> to vector<128x256xf32>
    %c0_1 = arith.constant 0 : index
    %c0_2 = arith.constant 0 : index
    %4 = vector.load %arg3[%c0_1, %c0_2] : memref<128x1xf32, #tpu.memory_space<vmem>>, vector<128x1xf32>
    %c0_3 = arith.constant 0 : index
    %c0_4 = arith.constant 0 : index
    %5 = vector.load %arg4[%c0_3, %c0_4] : memref<128x8xf32, #tpu.memory_space<vmem>>, vector<128x1xf32>
    tpu.vector_store %arg4[%c0_3, %c0_4], %4 {strides = array<i32>} : memref<128x8xf32, #tpu.memory_space<vmem>>, vector<128x1xf32>,
    %6 = arith.index_cast %1 : i32 to index
    %c0_5 = arith.constant 0 : index
    %7 = vector.load %arg1[%6, %c0_5] : memref<256x256xbf16, #tpu.memory_space<vmem>>, vector<128x256xbf16>
    %8 = arith.extf %7 : vector<128x256xbf16> to vector<128x256xf32>
    %9 = arith.mulf %8, %3 : vector<128x256xf32>
    %cst = arith.constant dense<0.000000e+00> : vector<128xf32>
    %10 = vector.multi_reduction <add>, %9, %cst [1] : vector<128x256xf32> to vector<128xf32>
    %11 = vector.shape_cast %10 : vector<128xf32> to vector<128x1xf32>
    %c0_6 = arith.constant 0 : index
    %c1 = arith.constant 1 : index
    %12 = vector.load %arg4[%c0_6, %c1] : memref<128x8xf32, #tpu.memory_space<vmem>>, vector<128x1xf32>
    tpu.vector_store %arg4[%c0_6, %c1], %11 {strides = array<i32>} : memref<128x8xf32, #tpu.memory_space<vmem>>, vector<128x1xf32>,
    %c0_7 = arith.constant 0 : index
    %c0_8 = arith.constant 0 : index
    %13 = vector.load %arg1[%c0_7, %c0_8] : memref<256x256xbf16, #tpu.memory_space<vmem>>, vector<256x256xbf16>
    %cst_9 = arith.constant dense<0.000000e+00> : vector<128x256xf32>
    %14 = tpu.matmul %7, %13, %cst_9 {dimension_numbers = #tpu.dot_dimension_numbers<[1], [0], [0], [1], [0, 0, 1, 1], [], []>} : vector<128x256xbf16>, vector<256x256xbf16>, vector<128x256xf32> -> vector<128x256xf32>
    %15 = arith.truncf %14 : vector<128x256xf32> to vector<128x256xbf16>
    %16 = arith.extf %15 : vector<128x256xbf16> to vector<128x256xf32>
    %17 = arith.mulf %16, %3 : vector<128x256xf32>
    %cst_10 = arith.constant dense<0.000000e+00> : vector<128xf32>
    %18 = vector.multi_reduction <add>, %17, %cst_10 [1] : vector<128x256xf32> to vector<128xf32>
    %19 = vector.shape_cast %18 : vector<128xf32> to vector<128x1xf32>
    %c0_11 = arith.constant 0 : index
    %c2 = arith.constant 2 : index
    %20 = vector.load %arg4[%c0_11, %c2] : memref<128x8xf32, #tpu.memory_space<vmem>>, vector<128x1xf32>
    tpu.vector_store %arg4[%c0_11, %c2], %19 {strides = array<i32>} : memref<128x8xf32, #tpu.memory_space<vmem>>, vector<128x1xf32>,
    %c0_12 = arith.constant 0 : index
    %c0_13 = arith.constant 0 : index
    %21 = vector.load %arg1[%c0_12, %c0_13] : memref<256x256xbf16, #tpu.memory_space<vmem>>, vector<256x256xbf16>
    %cst_14 = arith.constant dense<0.000000e+00> : vector<128x256xf32>
    %22 = tpu.matmul %15, %21, %cst_14 {dimension_numbers = #tpu.dot_dimension_numbers<[1], [0], [0], [1], [0, 0, 1, 1], [], []>} : vector<128x256xbf16>, vector<256x256xbf16>, vector<128x256xf32> -> vector<128x256xf32>
    %23 = arith.truncf %22 : vector<128x256xf32> to vector<128x256xbf16>
    %24 = arith.extf %23 : vector<128x256xbf16> to vector<128x256xf32>
    %25 = arith.mulf %24, %3 : vector<128x256xf32>
    %cst_15 = arith.constant dense<0.000000e+00> : vector<128xf32>
    %26 = vector.multi_reduction <add>, %25, %cst_15 [1] : vector<128x256xf32> to vector<128xf32>
    %27 = vector.shape_cast %26 : vector<128xf32> to vector<128x1xf32>
    %c0_16 = arith.constant 0 : index
    %c3 = arith.constant 3 : index
    %28 = vector.load %arg4[%c0_16, %c3] : memref<128x8xf32, #tpu.memory_space<vmem>>, vector<128x1xf32>
    tpu.vector_store %arg4[%c0_16, %c3], %27 {strides = array<i32>} : memref<128x8xf32, #tpu.memory_space<vmem>>, vector<128x1xf32>,
    %c0_17 = arith.constant 0 : index
    %c0_18 = arith.constant 0 : index
    %29 = vector.load %arg1[%c0_17, %c0_18] : memref<256x256xbf16, #tpu.memory_space<vmem>>, vector<256x256xbf16>
    %cst_19 = arith.constant dense<0.000000e+00> : vector<128x256xf32>
    %30 = tpu.matmul %23, %29, %cst_19 {dimension_numbers = #tpu.dot_dimension_numbers<[1], [0], [0], [1], [0, 0, 1, 1], [], []>} : vector<128x256xbf16>, vector<256x256xbf16>, vector<128x256xf32> -> vector<128x256xf32>
    %31 = arith.truncf %30 : vector<128x256xf32> to vector<128x256xbf16>
    %32 = arith.extf %31 : vector<128x256xbf16> to vector<128x256xf32>
    %33 = arith.mulf %32, %3 : vector<128x256xf32>
    %cst_20 = arith.constant dense<0.000000e+00> : vector<128xf32>
    %34 = vector.multi_reduction <add>, %33, %cst_20 [1] : vector<128x256xf32> to vector<128xf32>
    %35 = vector.shape_cast %34 : vector<128xf32> to vector<128x1xf32>
    %c0_21 = arith.constant 0 : index
    %c4 = arith.constant 4 : index
    %36 = vector.load %arg4[%c0_21, %c4] : memref<128x8xf32, #tpu.memory_space<vmem>>, vector<128x1xf32>
    tpu.vector_store %arg4[%c0_21, %c4], %35 {strides = array<i32>} : memref<128x8xf32, #tpu.memory_space<vmem>>, vector<128x1xf32>,
    %c0_22 = arith.constant 0 : index
    %c0_23 = arith.constant 0 : index
    %37 = vector.load %arg1[%c0_22, %c0_23] : memref<256x256xbf16, #tpu.memory_space<vmem>>, vector<256x256xbf16>
    %cst_24 = arith.constant dense<0.000000e+00> : vector<128x256xf32>
    %38 = tpu.matmul %31, %37, %cst_24 {dimension_numbers = #tpu.dot_dimension_numbers<[1], [0], [0], [1], [0, 0, 1, 1], [], []>} : vector<128x256xbf16>, vector<256x256xbf16>, vector<128x256xf32> -> vector<128x256xf32>
    %39 = arith.truncf %38 : vector<128x256xf32> to vector<128x256xbf16>
    %40 = arith.extf %39 : vector<128x256xbf16> to vector<128x256xf32>
    %41 = arith.mulf %40, %3 : vector<128x256xf32>
    %cst_25 = arith.constant dense<0.000000e+00> : vector<128xf32>
    %42 = vector.multi_reduction <add>, %41, %cst_25 [1] : vector<128x256xf32> to vector<128xf32>
    %43 = vector.shape_cast %42 : vector<128xf32> to vector<128x1xf32>
    %c0_26 = arith.constant 0 : index
    %c5 = arith.constant 5 : index
    %44 = vector.load %arg4[%c0_26, %c5] : memref<128x8xf32, #tpu.memory_space<vmem>>, vector<128x1xf32>
    tpu.vector_store %arg4[%c0_26, %c5], %43 {strides = array<i32>} : memref<128x8xf32, #tpu.memory_space<vmem>>, vector<128x1xf32>,
    %c0_27 = arith.constant 0 : index
    %c0_28 = arith.constant 0 : index
    %45 = vector.load %arg1[%c0_27, %c0_28] : memref<256x256xbf16, #tpu.memory_space<vmem>>, vector<256x256xbf16>
    %cst_29 = arith.constant dense<0.000000e+00> : vector<128x256xf32>
    %46 = tpu.matmul %39, %45, %cst_29 {dimension_numbers = #tpu.dot_dimension_numbers<[1], [0], [0], [1], [0, 0, 1, 1], [], []>} : vector<128x256xbf16>, vector<256x256xbf16>, vector<128x256xf32> -> vector<128x256xf32>
    %47 = arith.truncf %46 : vector<128x256xf32> to vector<128x256xbf16>
    %48 = arith.extf %47 : vector<128x256xbf16> to vector<128x256xf32>
    %49 = arith.mulf %48, %3 : vector<128x256xf32>
    %cst_30 = arith.constant dense<0.000000e+00> : vector<128xf32>
    %50 = vector.multi_reduction <add>, %49, %cst_30 [1] : vector<128x256xf32> to vector<128xf32>
    %51 = vector.shape_cast %50 : vector<128xf32> to vector<128x1xf32>
    %c0_31 = arith.constant 0 : index
    %c6 = arith.constant 6 : index
    %52 = vector.load %arg4[%c0_31, %c6] : memref<128x8xf32, #tpu.memory_space<vmem>>, vector<128x1xf32>
    tpu.vector_store %arg4[%c0_31, %c6], %51 {strides = array<i32>} : memref<128x8xf32, #tpu.memory_space<vmem>>, vector<128x1xf32>,
    %c0_32 = arith.constant 0 : index
    %c0_33 = arith.constant 0 : index
    %53 = vector.load %arg1[%c0_32, %c0_33] : memref<256x256xbf16, #tpu.memory_space<vmem>>, vector<256x256xbf16>
    %cst_34 = arith.constant dense<0.000000e+00> : vector<128x256xf32>
    %54 = tpu.matmul %47, %53, %cst_34 {dimension_numbers = #tpu.dot_dimension_numbers<[1], [0], [0], [1], [0, 0, 1, 1], [], []>} : vector<128x256xbf16>, vector<256x256xbf16>, vector<128x256xf32> -> vector<128x256xf32>
    %55 = arith.truncf %54 : vector<128x256xf32> to vector<128x256xbf16>
    %56 = arith.extf %55 : vector<128x256xbf16> to vector<128x256xf32>
    %57 = arith.mulf %56, %3 : vector<128x256xf32>
    %cst_35 = arith.constant dense<0.000000e+00> : vector<128xf32>
    %58 = vector.multi_reduction <add>, %57, %cst_35 [1] : vector<128x256xf32> to vector<128xf32>
    %59 = vector.shape_cast %58 : vector<128xf32> to vector<128x1xf32>
    %c0_36 = arith.constant 0 : index
    %c7 = arith.constant 7 : index
    %60 = vector.load %arg4[%c0_36, %c7] : memref<128x8xf32, #tpu.memory_space<vmem>>, vector<128x1xf32>
    tpu.vector_store %arg4[%c0_36, %c7], %59 {strides = array<i32>} : memref<128x8xf32, #tpu.memory_space<vmem>>, vector<128x1xf32>,
    return
  }
  func.func @transform_0(%arg0: i32) -> (i32, i32) {
    %c0_i32 = arith.constant 0 : i32
    %c0_i32_0 = arith.constant 0 : i32
    %c0_i32_1 = arith.constant 0 : i32
    return %c0_i32, %c0_i32_0 : i32, i32
  }
  func.func @transform_1(%arg0: i32) -> (i32, i32) {
    %c0_i32 = arith.constant 0 : i32
    %c0_i32_0 = arith.constant 0 : i32
    return %arg0, %c0_i32 : i32, i32
  }
  func.func @transform_2(%arg0: i32) -> (i32, i32) {
    %c0_i32 = arith.constant 0 : i32
    %c0_i32_0 = arith.constant 0 : i32
    return %arg0, %c0_i32 : i32, i32
  }
  func.func @transform_3(%arg0: i32) -> (i32, i32) {
    %c0_i32 = arith.constant 0 : i32
    %c0_i32_0 = arith.constant 0 : i32
    return %arg0, %c0_i32 : i32, i32
  }
}

module attributes {stable_mosaic.version = 11 : i64} {
  func.func @node_encoder_kernel(%arg0: i32, %arg1: memref<128x12xbf16, #tpu.memory_space<vmem>>, %arg2: memref<128x8xf32, #tpu.memory_space<vmem>>, %arg3: memref<1x8xf32, #tpu.memory_space<vmem>>, %arg4: memref<1x8xf32, #tpu.memory_space<vmem>>, %arg5: memref<12x128xbf16, #tpu.memory_space<vmem>>, %arg6: memref<8x128xbf16, #tpu.memory_space<vmem>>, %arg7: memref<1x128xf32, #tpu.memory_space<vmem>>, %arg8: memref<128x128xf32, #tpu.memory_space<vmem>>) attributes {dimension_semantics = [#tpu.dimension_semantics<parallel>], iteration_bounds = array<i64: 2>, scalar_prefetch = 0 : i64, scratch_operands = 0 : i64, tpu.core_type = #tpu.core_type<tc>, window_params = [{transform_indices = @transform_0, window_bounds = array<i64: 128, 12>}, {transform_indices = @transform_1, window_bounds = array<i64: 128, 8>}, {pipeline_mode = #tpu.pipeline_mode<synchronous>, transform_indices = @transform_2, window_bounds = array<i64: 1, 8>}, {pipeline_mode = #tpu.pipeline_mode<synchronous>, transform_indices = @transform_3, window_bounds = array<i64: 1, 8>}, {pipeline_mode = #tpu.pipeline_mode<synchronous>, transform_indices = @transform_4, window_bounds = array<i64: 12, 128>}, {pipeline_mode = #tpu.pipeline_mode<synchronous>, transform_indices = @transform_5, window_bounds = array<i64: 8, 128>}, {pipeline_mode = #tpu.pipeline_mode<synchronous>, transform_indices = @transform_6, window_bounds = array<i64: 1, 128>}, {transform_indices = @transform_7, window_bounds = array<i64: 128, 128>}]} {
    %c0 = arith.constant 0 : index
    %c0_0 = arith.constant 0 : index
    %0 = vector.load %arg2[%c0, %c0_0] : memref<128x8xf32, #tpu.memory_space<vmem>>, vector<128x8xf32>
    %c0_1 = arith.constant 0 : index
    %c0_2 = arith.constant 0 : index
    %1 = vector.load %arg3[%c0_1, %c0_2] : memref<1x8xf32, #tpu.memory_space<vmem>>, vector<1x8xf32>
    %2 = vector.broadcast %1 : vector<1x8xf32> to vector<128x8xf32>
    %3 = arith.mulf %0, %2 : vector<128x8xf32>
    %c0_3 = arith.constant 0 : index
    %c0_4 = arith.constant 0 : index
    %4 = vector.load %arg4[%c0_3, %c0_4] : memref<1x8xf32, #tpu.memory_space<vmem>>, vector<1x8xf32>
    %5 = vector.broadcast %4 : vector<1x8xf32> to vector<128x8xf32>
    %6 = arith.addf %3, %5 : vector<128x8xf32>
    %c0_5 = arith.constant 0 : index
    %c0_6 = arith.constant 0 : index
    %7 = vector.load %arg1[%c0_5, %c0_6] : memref<128x12xbf16, #tpu.memory_space<vmem>>, vector<128x12xbf16>
    %c0_7 = arith.constant 0 : index
    %c0_8 = arith.constant 0 : index
    %8 = vector.load %arg5[%c0_7, %c0_8] : memref<12x128xbf16, #tpu.memory_space<vmem>>, vector<12x128xbf16>
    %cst = arith.constant dense<0.000000e+00> : vector<128x128xf32>
    %9 = tpu.matmul %7, %8, %cst {dimension_numbers = #tpu.dot_dimension_numbers<[1], [0], [0], [1], [0, 0, 1, 1], [], []>} : vector<128x12xbf16>, vector<12x128xbf16>, vector<128x128xf32> -> vector<128x128xf32>
    %10 = arith.truncf %6 : vector<128x8xf32> to vector<128x8xbf16>
    %c0_9 = arith.constant 0 : index
    %c0_10 = arith.constant 0 : index
    %11 = vector.load %arg6[%c0_9, %c0_10] : memref<8x128xbf16, #tpu.memory_space<vmem>>, vector<8x128xbf16>
    %cst_11 = arith.constant dense<0.000000e+00> : vector<128x128xf32>
    %12 = tpu.matmul %10, %11, %cst_11 {dimension_numbers = #tpu.dot_dimension_numbers<[1], [0], [0], [1], [0, 0, 1, 1], [], []>} : vector<128x8xbf16>, vector<8x128xbf16>, vector<128x128xf32> -> vector<128x128xf32>
    %13 = arith.addf %9, %12 : vector<128x128xf32>
    %c0_12 = arith.constant 0 : index
    %c0_13 = arith.constant 0 : index
    %14 = vector.load %arg7[%c0_12, %c0_13] : memref<1x128xf32, #tpu.memory_space<vmem>>, vector<1x128xf32>
    %15 = vector.broadcast %14 : vector<1x128xf32> to vector<128x128xf32>
    %16 = arith.addf %13, %15 : vector<128x128xf32>
    %c0_14 = arith.constant 0 : index
    %c0_15 = arith.constant 0 : index
    %17 = vector.load %arg8[%c0_14, %c0_15] : memref<128x128xf32, #tpu.memory_space<vmem>>, vector<128x128xf32>
    tpu.vector_store %arg8[%c0_14, %c0_15], %16 {strides = array<i32>} : memref<128x128xf32, #tpu.memory_space<vmem>>, vector<128x128xf32>,
    return
  }
  func.func @transform_0(%arg0: i32) -> (i32, i32) {
    %c0_i32 = arith.constant 0 : i32
    %c0_i32_0 = arith.constant 0 : i32
    return %arg0, %c0_i32 : i32, i32
  }
  func.func @transform_1(%arg0: i32) -> (i32, i32) {
    %c0_i32 = arith.constant 0 : i32
    %c0_i32_0 = arith.constant 0 : i32
    return %arg0, %c0_i32 : i32, i32
  }
  func.func @transform_2(%arg0: i32) -> (i32, i32) {
    %c0_i32 = arith.constant 0 : i32
    %c0_i32_0 = arith.constant 0 : i32
    %c0_i32_1 = arith.constant 0 : i32
    return %c0_i32, %c0_i32_0 : i32, i32
  }
  func.func @transform_3(%arg0: i32) -> (i32, i32) {
    %c0_i32 = arith.constant 0 : i32
    %c0_i32_0 = arith.constant 0 : i32
    %c0_i32_1 = arith.constant 0 : i32
    return %c0_i32, %c0_i32_0 : i32, i32
  }
  func.func @transform_4(%arg0: i32) -> (i32, i32) {
    %c0_i32 = arith.constant 0 : i32
    %c0_i32_0 = arith.constant 0 : i32
    %c0_i32_1 = arith.constant 0 : i32
    return %c0_i32, %c0_i32_0 : i32, i32
  }
  func.func @transform_5(%arg0: i32) -> (i32, i32) {
    %c0_i32 = arith.constant 0 : i32
    %c0_i32_0 = arith.constant 0 : i32
    %c0_i32_1 = arith.constant 0 : i32
    return %c0_i32, %c0_i32_0 : i32, i32
  }
  func.func @transform_6(%arg0: i32) -> (i32, i32) {
    %c0_i32 = arith.constant 0 : i32
    %c0_i32_0 = arith.constant 0 : i32
    %c0_i32_1 = arith.constant 0 : i32
    return %c0_i32, %c0_i32_0 : i32, i32
  }
  func.func @transform_7(%arg0: i32) -> (i32, i32) {
    %c0_i32 = arith.constant 0 : i32
    %c0_i32_0 = arith.constant 0 : i32
    return %arg0, %c0_i32 : i32, i32
  }
}

module attributes {stable_mosaic.version = 11 : i64} {
  func.func @edge_encoder_kernel(%arg0: i32, %arg1: memref<128x6xbf16, #tpu.memory_space<vmem>>, %arg2: memref<6x128xbf16, #tpu.memory_space<vmem>>, %arg3: memref<1x128xf32, #tpu.memory_space<vmem>>, %arg4: memref<128x128xf32, #tpu.memory_space<vmem>>) attributes {dimension_semantics = [#tpu.dimension_semantics<parallel>], iteration_bounds = array<i64: 3>, scalar_prefetch = 0 : i64, scratch_operands = 0 : i64, tpu.core_type = #tpu.core_type<tc>, window_params = [{transform_indices = @transform_0, window_bounds = array<i64: 128, 6>}, {pipeline_mode = #tpu.pipeline_mode<synchronous>, transform_indices = @transform_1, window_bounds = array<i64: 6, 128>}, {pipeline_mode = #tpu.pipeline_mode<synchronous>, transform_indices = @transform_2, window_bounds = array<i64: 1, 128>}, {transform_indices = @transform_3, window_bounds = array<i64: 128, 128>}]} {
    %c0 = arith.constant 0 : index
    %c0_0 = arith.constant 0 : index
    %0 = vector.load %arg1[%c0, %c0_0] : memref<128x6xbf16, #tpu.memory_space<vmem>>, vector<128x6xbf16>
    %c0_1 = arith.constant 0 : index
    %c0_2 = arith.constant 0 : index
    %1 = vector.load %arg2[%c0_1, %c0_2] : memref<6x128xbf16, #tpu.memory_space<vmem>>, vector<6x128xbf16>
    %cst = arith.constant dense<0.000000e+00> : vector<128x128xf32>
    %2 = tpu.matmul %0, %1, %cst {dimension_numbers = #tpu.dot_dimension_numbers<[1], [0], [0], [1], [0, 0, 1, 1], [], []>} : vector<128x6xbf16>, vector<6x128xbf16>, vector<128x128xf32> -> vector<128x128xf32>
    %c0_3 = arith.constant 0 : index
    %c0_4 = arith.constant 0 : index
    %3 = vector.load %arg3[%c0_3, %c0_4] : memref<1x128xf32, #tpu.memory_space<vmem>>, vector<1x128xf32>
    %4 = vector.broadcast %3 : vector<1x128xf32> to vector<128x128xf32>
    %5 = arith.addf %2, %4 : vector<128x128xf32>
    %c0_5 = arith.constant 0 : index
    %c0_6 = arith.constant 0 : index
    %6 = vector.load %arg4[%c0_5, %c0_6] : memref<128x128xf32, #tpu.memory_space<vmem>>, vector<128x128xf32>
    tpu.vector_store %arg4[%c0_5, %c0_6], %5 {strides = array<i32>} : memref<128x128xf32, #tpu.memory_space<vmem>>, vector<128x128xf32>,
    return
  }
  func.func @transform_0(%arg0: i32) -> (i32, i32) {
    %c0_i32 = arith.constant 0 : i32
    %c0_i32_0 = arith.constant 0 : i32
    return %arg0, %c0_i32 : i32, i32
  }
  func.func @transform_1(%arg0: i32) -> (i32, i32) {
    %c0_i32 = arith.constant 0 : i32
    %c0_i32_0 = arith.constant 0 : i32
    %c0_i32_1 = arith.constant 0 : i32
    return %c0_i32, %c0_i32_0 : i32, i32
  }
  func.func @transform_2(%arg0: i32) -> (i32, i32) {
    %c0_i32 = arith.constant 0 : i32
    %c0_i32_0 = arith.constant 0 : i32
    %c0_i32_1 = arith.constant 0 : i32
    return %c0_i32, %c0_i32_0 : i32, i32
  }
  func.func @transform_3(%arg0: i32) -> (i32, i32) {
    %c0_i32 = arith.constant 0 : i32
    %c0_i32_0 = arith.constant 0 : i32
    return %arg0, %c0_i32 : i32, i32
  }
}

</mosaic_0001>

<bundles_post_ra>
// kernel: feature_encoder_forward.4
= control target key start
LH: loop header
LB: loop body
LE: loop exit
PB: predicated region body
PF: predicated region fallthrough
CT: control target
= control target key end

     0   :  { %s976_s24 = smov 0   ;;  %s1135_s0 = inlined_call_operand.vmem [shape: bf16[256,12], index: 0, kind: input, shape index: {}]   ;;  %s1136_s1 = inlined_call_operand.vmem [shape: f32[256,8], index: 1, kind: input, shape index: {}]   ;;  %s1137_s2 = inlined_call_operand.vmem [shape: f32[1,8], index: 2, kind: input, shape index: {}]   ;;  %s1138_s3 = inlined_call_operand.vmem [shape: f32[1,8], index: 3, kind: input, shape index: {}]   ;;  %s1139_s4 = inlined_call_operand.vmem [shape: bf16[12,128], index: 4, kind: input, shape index: {}]   ;;  %s1140_s5 = inlined_call_operand.vmem [shape: bf16[8,128], index: 5, kind: input, shape index: {}]   ;;  %s1141_s6 = inlined_call_operand.vmem [shape: f32[1,128], index: 6, kind: input, shape index: {}]   ;;  %s1142_s7 = inlined_call_operand.vmem [shape: f32[256,128], index: 7, kind: output, shape index: {}]  }
   0x1 LB: > { %s798_s25 = sadd.s32 4294967295, %s934_s24   ;;  %p802_p0 = scmp.ge.s32.totalorder %s934_s24, 1  ;;  %s934_s24 = sphi %s976_s24, %s17_s24  }
   0x2   : > { %p249_p1 = scmp.lt.s32.totalorder %s934_s24, 3 }
   0x4   : > { %p250_p2 = pnand %p802_p0, %p249_p1 }
   0x5   : > { %v919_v0 = vld [vmem:[%s1139_s4] sm:$0x3f] (!%p250_p2)   ;;  %vm590_vm0 = vcmask (!%p250_p2), 1045504   ;;  %vm419_vm1 = vcmask (!%p250_p2), 1043456   ;;  %s803_s30 = sshll.u32 (!%p250_p2), %s798_s25, 4  ;;  %vm565_vm2 = vcmask (!%p250_p2), 97280  }
   0x6   : > { %253 = sbr.rel (%p250_p2) target bundleno = 269 (0x10d), region = 48  ;;  %v393_v1 = vld [vmem:[%s1140_s5] sm:$0xf] (!%p250_p2)  ;;  %910 = vmatprep.subr.msk.bf16.mxu0 (!%p250_p2), %vm590_vm0, %v919_v0  ;;  %v592_v2 = vsel (!%p250_p2), %vm590_vm0, %v919_v0, 0  ;;  %p287_p3 = scmp.lt.s32.totalorder (!%p250_p2), %s803_s30, 31  ;;  %vm394_vm3 = vcmask (!%p250_p2), 64512  }
   0x7   : > { %909 = vmatprep.subr.msk.bf16.mxu1 (!%p250_p2), %vm419_vm1, %v393_v1  ;;  %v421_v3 = vsel (!%p250_p2), %vm419_vm1, %v393_v1, 0  ;;  %876 = vmatpush3.bf16.msra.mxu0 (!%p250_p2), %v592_v2  ;;  %v1009_v4 = vld [vmem:[%s1137_s2] ss:$0 sm:$0xff] (!%p250_p2) }
   0x8   : > { %858 = vmatpush3.bf16.msra.mxu1 (!%p250_p2), %v421_v3  ;;  %v1015_v6 = vld [vmem:[%s1138_s3] ss:$0 sm:$0xff] (!%p250_p2) }
   0xd   : > { %s1144_s30 = smov (!%p287_p3, %s803_s30), 31 }
   0xe   : > { %s804_s8 = sshll.u32 %s1144_s30, 2  ;;  %s806_s9 = sshll.u32 %s1144_s30, 3 }
   0xf   : > { %s997_s12 = scalar_lea.vmem %s1135_s0, %s804_s8  ;;  %s1004_s15 = scalar_lea.vmem %s1136_s1, %s806_s9 }
  0x10   : > { %v920_v5 = vld [vmem:[%s997_s12] sm:$0xff]   ;;  %v921_v7 = vld [vmem:[%s997_s12 + $0x8] sm:$0xff]   ;;  %v307_v10 = vld [vmem:[%s1004_s15 + $0x10] sm:$0xff]  ;;  %s1098_s25 = scalar_lea.vmem %s1142_s7, %s806_s9 }
  0x11   : > { %877 = vmatprep.mubr.msk.bf16.mxu0 %vm565_vm2, %v920_v5  ;;  %v305_v8 = vld [vmem:[%s1004_s15] sm:$0xff]  ;;  %v306_v9 = vld [vmem:[%s1004_s15 + $0x8] sm:$0xff]  ;;  %v308_v13 = vld [vmem:[%s1004_s15 + $0x18] sm:$0xff]  ;;  %v330_v14 = vmul.f32 %v1009_v4, %v307_v10 }
  0x12   : > { %878 = vmatmul.mubr.msk.bf16.vlgmr.msra.gmra.mrb[0].mxu0 %vm565_vm2, %v921_v7  ;;  %v328_v11 = vmul.f32 %v1009_v4, %v305_v8  ;;  %v329_v12 = vmul.f32 %v1009_v4, %v306_v9  ;;  %v331_v15 = vmul.f32 %v1009_v4, %v308_v13  ;;  %v922_v16 = vld [vmem:[%s997_s12 + $0x10] sm:$0xff]   ;;  %v309_v20 = vld [vmem:[%s1004_s15 + $0x20] sm:$0xff]  ;;  %v310_v21 = vld [vmem:[%s1004_s15 + $0x28] sm:$0xff] }
  0x13   : > { %v353_v19 = vadd.f32 %v1015_v6, %v330_v14  ;;  %881 = vmatprep.mubr.msk.bf16.mxu0 %vm565_vm2, %v922_v16  ;;  %v332_v23 = vmul.f32 %v1009_v4, %v309_v20  ;;  %v333_v24 = vmul.f32 %v1009_v4, %v310_v21  ;;  %v311_v25 = vld [vmem:[%s1004_s15 + $0x30] sm:$0xff]  ;;  %v312_v26 = vld [vmem:[%s1004_s15 + $0x38] sm:$0xff]  ;;  %v924_v34 = vld [vmem:[%s997_s12 + $0x20] sm:$0xff]  }
  0x14   : > { %v351_v17 = vadd.f32 %v1015_v6, %v328_v11  ;;  %v352_v18 = vadd.f32 %v1015_v6, %v329_v12  ;;  %v354_v22 = vadd.f32 %v1015_v6, %v331_v15  ;;  %v923_v28 = vld [vmem:[%s997_s12 + $0x18] sm:$0xff]   ;;  %v334_v29 = vmul.f32 %v1009_v4, %v311_v25  ;;  %v313_v35 = vld [vmem:[%s1004_s15 + $0x40] sm:$0xff]  ;;  %v314_v36 = vld [vmem:[%s1004_s15 + $0x48] sm:$0xff] }
  0x15   : > { %v335_v30 = vmul.f32 %v1009_v4, %v312_v26  ;;  %v355_v32 = vadd.f32 %v1015_v6, %v332_v23  ;;  %v356_v33 = vadd.f32 %v1015_v6, %v333_v24  ;;  %v336_v37 = vmul.f32 %v1009_v4, %v313_v35  ;;  %v315_v42 = vld [vmem:[%s1004_s15 + $0x50] sm:$0xff]  ;;  %v316_v44 = vld [vmem:[%s1004_s15 + $0x58] sm:$0xff]  ;;  %v317_v46 = vld [vmem:[%s1004_s15 + $0x60] sm:$0xff] }
  0x16   : > { %v385_v27 = vpack.c.bf16 %v352_v18, %v351_v17  ;;  %v386_v31 = vpack.c.bf16 %v354_v22, %v353_v19  ;;  %v357_v39 = vadd.f32 %v1015_v6, %v334_v29  ;;  %v337_v41 = vmul.f32 %v1009_v4, %v314_v36  ;;  %v318_v47 = vld [vmem:[%s1004_s15 + $0x68] sm:$0xff]  ;;  %v926_v55 = vld [vmem:[%s997_s12 + $0x30] sm:$0xff]   ;;  %v320_v61 = vld [vmem:[%s1004_s15 + $0x78] sm:$0xff] }
  0x17   : > { %v387_v38 = vpack.c.bf16 %v356_v33, %v355_v32  ;;  %v358_v40 = vadd.f32 %v1015_v6, %v335_v30  ;;  %v359_v43 = vadd.f32 %v1015_v6, %v336_v37  ;;  %v338_v49 = vmul.f32 %v1009_v4, %v315_v42  ;;  %v925_v51 = vld [vmem:[%s997_s12 + $0x28] sm:$0xff]   ;;  %v319_v60 = vld [vmem:[%s1004_s15 + $0x70] sm:$0xff]  ;;  %v927_v1 = vld [vmem:[%s997_s12 + $0x38] sm:$0xff]  }
  0x18   : > { %859 = vmatprep.mubr.msk.bf16.mxu1 %vm394_vm3, %v385_v27  ;;  %v360_v45 = vadd.f32 %v1015_v6, %v337_v41  ;;  %v339_v50 = vmul.f32 %v1009_v4, %v316_v44  ;;  %v340_v53 = vmul.f32 %v1009_v4, %v317_v46  ;;  %v341_v54 = vmul.f32 %v1009_v4, %v318_v47  ;;  %v1091_v12 = vld [vmem:[%s1141_s6] ss:$0 sm:$0xff] }
  0x19   : > { %860 = vmatmul.mubr.msk.bf16.vlgmr.msra.gmra.mrb[0].mxu1 %vm394_vm3, %v386_v31  ;;  %v388_v48 = vpack.c.bf16 %v358_v40, %v357_v39  ;;  %v361_v56 = vadd.f32 %v1015_v6, %v338_v49  ;;  %v342_v63 = vmul.f32 %v1009_v4, %v319_v60  ;;  %v343_v0 = vmul.f32 %v1009_v4, %v320_v61 }
  0x1a   : > { %882 = vmatmul.mubr.msk.bf16.gmra.mrb[4].mxu0 %vm565_vm2, %v923_v28  ;;  %863 = vmatprep.mubr.msk.bf16.mxu1 %vm394_vm3, %v387_v38  ;;  %v389_v52 = vpack.c.bf16 %v360_v45, %v359_v43  ;;  %v362_v57 = vadd.f32 %v1015_v6, %v339_v50  ;;  %v363_v58 = vadd.f32 %v1015_v6, %v340_v53 }
  0x1b   : > { %885 = vmatprep.mubr.msk.bf16.mxu0 %vm565_vm2, %v924_v34  ;;  %v364_v59 = vadd.f32 %v1015_v6, %v341_v54  ;;  %v365_v3 = vadd.f32 %v1015_v6, %v342_v63  ;;  %v366_v5 = vadd.f32 %v1015_v6, %v343_v0 }
  0x1c   : > { %v390_v62 = vpack.c.bf16 %v362_v57, %v361_v56 }
  0x1d   : > { %v391_v2 = vpack.c.bf16 %v364_v59, %v363_v58  ;;  %v392_v7 = vpack.c.bf16 %v366_v5, %v365_v3 }
  0x21   : > { %864 = vmatmul.mubr.msk.bf16.gmra.mrb[4].mxu1 %vm394_vm3, %v388_v48 }
  0x22   : > { %886 = vmatmul.mubr.msk.bf16.gmra.mrb[8].mxu0 %vm565_vm2, %v925_v51  ;;  %867 = vmatprep.mubr.msk.bf16.mxu1 %vm394_vm3, %v389_v52 }
  0x23   : > { %889 = vmatprep.mubr.msk.bf16.mxu0 %vm565_vm2, %v926_v55 }
  0x29   : > { %868 = vmatmul.mubr.msk.bf16.gmra.mrb[8].mxu1 %vm394_vm3, %v390_v62 }
  0x2a   : > { %890 = vmatmul.mubr.msk.bf16.gmra.mrb[12].mxu0 %vm565_vm2, %v927_v1  ;;  %871 = vmatprep.mubr.msk.bf16.mxu1 %vm394_vm3, %v391_v2 }
  0x31   : > { %872 = vmatmul.mubr.msk.bf16.gmra.mrb[12].mxu1 %vm394_vm3, %v392_v7 }
  0xe5   : > { %v879_v8 = vpop.f32.mrb[0].mxu0 }
  0xe6   : > { %v628_v9 = vpop.f32.mrb[1].mxu0 }
  0xe7   : > { %v880_v10 = vpop.f32.mrb[2].mxu0 }
  0xe8   : > { %v631_v4 = vpop.f32.mrb[3].mxu0 }
  0xec   : > { %v861_v11 = vpop.f32.mrb[0].mxu1 }
  0xed   : > { %v637_v13 = vadd.f32 %v879_v8, %v861_v11  ;;  %v457_v14 = vpop.f32.mrb[1].mxu1  ;;  %v883_v6 = vpop.f32.mrb[4].mxu0 }
  0xee   : > { %v629_v15 = vadd.f32 %v628_v9, %v457_v14  ;;  %v862_v16 = vpop.f32.mrb[2].mxu1  ;;  %v644_v17 = vpop.f32.mrb[5].mxu0 }
  0xef   : > { %v700_v18 = vadd.f32 %v1091_v12, %v637_v13  ;;  %v640_v19 = vadd.f32 %v880_v10, %v862_v16  ;;  %v460_v20 = vpop.f32.mrb[3].mxu1  ;;  %v884_v21 = vpop.f32.mrb[6].mxu0 }
  0xf0   : > { %v698_v22 = vadd.f32 %v1091_v12, %v629_v15  ;;  %v632_v23 = vadd.f32 %v631_v4, %v460_v20  ;;  %v647_v24 = vpop.f32.mrb[7].mxu0 }
  0xf1   : > { %716 = vst [vmem:[%s1098_s25 + $0x10] sm:$0xff] %v700_v18  ;;  %v701_v25 = vadd.f32 %v1091_v12, %v640_v19 }
  0xf2   : > { %714 = vst [vmem:[%s1098_s25] sm:$0xff] %v698_v22  ;;  %v699_v26 = vadd.f32 %v1091_v12, %v632_v23 }
  0xf3   : > { %717 = vst [vmem:[%s1098_s25 + $0x18] sm:$0xff] %v701_v25 }
  0xf4   : > { %715 = vst [vmem:[%s1098_s25 + $0x8] sm:$0xff] %v699_v26  ;;  %v865_v27 = vpop.f32.mrb[4].mxu1 }
  0xf5   : > { %v653_v28 = vadd.f32 %v883_v6, %v865_v27  ;;  %v473_v29 = vpop.f32.mrb[5].mxu1  ;;  %v887_v30 = vpop.f32.mrb[8].mxu0 }
  0xf6   : > { %v645_v31 = vadd.f32 %v644_v17, %v473_v29  ;;  %v866_v32 = vpop.f32.mrb[6].mxu1  ;;  %v660_v33 = vpop.f32.mrb[9].mxu0 }
  0xf7   : > { %v704_v34 = vadd.f32 %v1091_v12, %v653_v28  ;;  %v656_v35 = vadd.f32 %v884_v21, %v866_v32  ;;  %v476_v36 = vpop.f32.mrb[7].mxu1  ;;  %v888_v37 = vpop.f32.mrb[10].mxu0 }
  0xf8   : > { %v702_v38 = vadd.f32 %v1091_v12, %v645_v31  ;;  %v648_v39 = vadd.f32 %v647_v24, %v476_v36  ;;  %v663_v40 = vpop.f32.mrb[11].mxu0 }
  0xf9   : > { %720 = vst [vmem:[%s1098_s25 + $0x30] sm:$0xff] %v704_v34  ;;  %v705_v41 = vadd.f32 %v1091_v12, %v656_v35 }
  0xfa   : > { %718 = vst [vmem:[%s1098_s25 + $0x20] sm:$0xff] %v702_v38  ;;  %v703_v42 = vadd.f32 %v1091_v12, %v648_v39 }
  0xfb   : > { %721 = vst [vmem:[%s1098_s25 + $0x38] sm:$0xff] %v705_v41 }
  0xfc   : > { %719 = vst [vmem:[%s1098_s25 + $0x28] sm:$0xff] %v703_v42  ;;  %v869_v43 = vpop.f32.mrb[8].mxu1 }
  0xfd   : > { %v669_v44 = vadd.f32 %v887_v30, %v869_v43  ;;  %v489_v45 = vpop.f32.mrb[9].mxu1  ;;  %v891_v46 = vpop.f32.mrb[12].mxu0 }
  0xfe   : > { %v661_v47 = vadd.f32 %v660_v33, %v489_v45  ;;  %v870_v48 = vpop.f32.mrb[10].mxu1  ;;  %v676_v49 = vpop.f32.mrb[13].mxu0 }
  0xff   : > { %v708_v50 = vadd.f32 %v1091_v12, %v669_v44  ;;  %v672_v51 = vadd.f32 %v888_v37, %v870_v48  ;;  %v492_v52 = vpop.f32.mrb[11].mxu1  ;;  %v892_v53 = vpop.f32.mrb[14].mxu0 }
 0x100   : > { %v706_v54 = vadd.f32 %v1091_v12, %v661_v47  ;;  %v664_v55 = vadd.f32 %v663_v40, %v492_v52  ;;  %v679_v56 = vpop.f32.mrb[15].mxu0 }
 0x101   : > { %724 = vst [vmem:[%s1098_s25 + $0x50] sm:$0xff] %v708_v50  ;;  %v709_v57 = vadd.f32 %v1091_v12, %v672_v51 }
 0x102   : > { %722 = vst [vmem:[%s1098_s25 + $0x40] sm:$0xff] %v706_v54  ;;  %v707_v58 = vadd.f32 %v1091_v12, %v664_v55 }
 0x103   : > { %725 = vst [vmem:[%s1098_s25 + $0x58] sm:$0xff] %v709_v57 }
 0x104   : > { %723 = vst [vmem:[%s1098_s25 + $0x48] sm:$0xff] %v707_v58  ;;  %v873_v59 = vpop.f32.mrb[12].mxu1 }
 0x105   : > { %v685_v60 = vadd.f32 %v891_v46, %v873_v59  ;;  %v505_v61 = vpop.f32.mrb[13].mxu1 }
 0x106   : > { %v677_v62 = vadd.f32 %v676_v49, %v505_v61  ;;  %v874_v63 = vpop.f32.mrb[14].mxu1 }
 0x107   : > { %v712_v0 = vadd.f32 %v1091_v12, %v685_v60  ;;  %v688_v1 = vadd.f32 %v892_v53, %v874_v63  ;;  %v508_v2 = vpop.f32.mrb[15].mxu1 }
 0x108   : > { %v710_v3 = vadd.f32 %v1091_v12, %v677_v62  ;;  %v680_v5 = vadd.f32 %v679_v56, %v508_v2 }
 0x109   : > { %728 = vst [vmem:[%s1098_s25 + $0x70] sm:$0xff] %v712_v0  ;;  %v713_v7 = vadd.f32 %v1091_v12, %v688_v1 }
 0x10a   : > { %726 = vst [vmem:[%s1098_s25 + $0x60] sm:$0xff] %v710_v3  ;;  %v711_v8 = vadd.f32 %v1091_v12, %v680_v5 }
 0x10b   : > { %729 = vst [vmem:[%s1098_s25 + $0x78] sm:$0xff] %v713_v7 }
 0x10c   : > { %727 = vst [vmem:[%s1098_s25 + $0x68] sm:$0xff] %v711_v8 }
 0x10d PF: > { %s17_s24 = sadd.s32 1, %s934_s24  }
 0x10e   : > { %p14_p4 = scmp.ge.s32.totalorder %s17_s24, 4  }
 0x110   :  { %16 = sbr.rel (!%p14_p4) target bundleno = 1 (0x1), region = 81 }

// kernel: feature_encoder_forward.5
= control target key start
LH: loop header
LB: loop body
LE: loop exit
PB: predicated region body
PF: predicated region fallthrough
CT: control target
= control target key end

     0   :  { %s540_s12 = smov 0   ;;  %s589_s0 = inlined_call_operand.vmem [shape: bf16[384,6], index: 0, kind: input, shape index: {}]   ;;  %s590_s1 = inlined_call_operand.vmem [shape: bf16[6,128], index: 1, kind: input, shape index: {}]   ;;  %s591_s2 = inlined_call_operand.vmem [shape: f32[1,128], index: 2, kind: input, shape index: {}]   ;;  %s592_s3 = inlined_call_operand.vmem [shape: f32[384,128], index: 3, kind: output, shape index: {}]  }
   0x1 LB: > { %s437_s13 = sadd.s32 4294967295, %s518_s12   ;;  %p441_p0 = scmp.ge.s32.totalorder %s518_s12, 1  ;;  %s518_s12 = sphi %s540_s12, %s13_s12  }
   0x2   : > { %p138_p1 = scmp.lt.s32.totalorder %s518_s12, 4 }
   0x4   : > { %p139_p2 = pnand %p441_p0, %p138_p1 }
   0x5   : > { %v191_v0 = vld [vmem:[%s590_s1] sm:$0x7] (!%p139_p2)  ;;  %vm264_vm0 = vcmask (!%p139_p2), 1042432   ;;  %s442_s16 = sshll.u32 (!%p139_p2), %s437_s13, 4  ;;  %vm239_vm1 = vcmask (!%p139_p2), 48128  }
   0x6   : > { %142 = sbr.rel (%p139_p2) target bundleno = 245 (0xf5), region = 32  ;;  %494 = vmatprep.subr.msk.bf16.mxu0 (!%p139_p2), %vm264_vm0, %v191_v0  ;;  %495 = vmatprep.subr.msk.bf16.mxu1 (!%p139_p2), %vm264_vm0, %v191_v0  ;;  %v266_v1 = vsel (!%p139_p2), %vm264_vm0, %v191_v0, 0  ;;  %p163_p3 = scmp.lt.s32.totalorder (!%p139_p2), %s442_s16, 47  ;;  %v446_v10 = vld [vmem:[%s591_s2] ss:$0 sm:$0xff] (!%p139_p2) }
   0x7   : > { %475 = vmatpush3.bf16.msra.mxu0 (!%p139_p2), %v266_v1  ;;  %493 = vmatpush3.bf16.msra.mxu1 (!%p139_p2), %v266_v1 }
   0xd   : > { %s594_s16 = smov (!%p163_p3, %s442_s16), 47 }
   0xe   : > { %s443_s17 = sshll.u32 %s594_s16, 2  ;;  %s445_s21 = sshll.u32 %s594_s16, 3 }
   0xf   : > { %s166_s20 = scalar_lea.vmem %s589_s0, %s443_s17  ;;  %s568_s26 = scalar_lea.vmem %s592_s3, %s445_s21 }
  0x10   : > { %v504_v2 = vld [vmem:[%s166_s20] sm:$0xff]   ;;  %v506_v4 = vld [vmem:[%s166_s20 + $0x8] sm:$0xff]   ;;  %v508_v6 = vld [vmem:[%s166_s20 + $0x10] sm:$0xff]  }
  0x11   : > { %v505_v3 = vld [vmem:[%s166_s20 + $0x20] sm:$0xff]   ;;  %476 = vmatprep.mubr.msk.bf16.mxu0 %vm239_vm1, %v504_v2  ;;  %v507_v5 = vld [vmem:[%s166_s20 + $0x28] sm:$0xff]   ;;  %v509_v7 = vld [vmem:[%s166_s20 + $0x30] sm:$0xff]  }
  0x12   : > { %484 = vmatprep.mubr.msk.bf16.mxu1 %vm239_vm1, %v505_v3  ;;  %477 = vmatmul.mubr.msk.bf16.vlgmr.msra.gmra.mrb[0].mxu0 %vm239_vm1, %v506_v4  ;;  %v510_v8 = vld [vmem:[%s166_s20 + $0x18] sm:$0xff]  }
  0x13   : > { %485 = vmatmul.mubr.msk.bf16.vlgmr.msra.gmra.mrb[0].mxu1 %vm239_vm1, %v507_v5  ;;  %480 = vmatprep.mubr.msk.bf16.mxu0 %vm239_vm1, %v508_v6  ;;  %v511_v9 = vld [vmem:[%s166_s20 + $0x38] sm:$0xff]  }
  0x14   : > { %488 = vmatprep.mubr.msk.bf16.mxu1 %vm239_vm1, %v509_v7 }
  0x1a   : > { %481 = vmatmul.mubr.msk.bf16.gmra.mrb[4].mxu0 %vm239_vm1, %v510_v8 }
  0x1b   : > { %489 = vmatmul.mubr.msk.bf16.gmra.mrb[4].mxu1 %vm239_vm1, %v511_v9 }
  0xe5   : > { %v478_v11 = vpop.f32.mrb[0].mxu0 }
  0xe6   : > { %v311_v12 = vadd.f32 %v478_v11, %v446_v10  ;;  %v486_v13 = vpop.f32.mrb[0].mxu1  ;;  %v302_v14 = vpop.f32.mrb[1].mxu0 }
  0xe7   : > { %v343_v15 = vadd.f32 %v486_v13, %v446_v10  ;;  %v303_v16 = vadd.f32 %v446_v10, %v302_v14  ;;  %v334_v17 = vpop.f32.mrb[1].mxu1  ;;  %v479_v18 = vpop.f32.mrb[2].mxu0 }
  0xe8   : > { %367 = vst [vmem:[%s568_s26 + $0x10] sm:$0xff] %v311_v12  ;;  %v335_v19 = vadd.f32 %v446_v10, %v334_v17  ;;  %v314_v20 = vadd.f32 %v479_v18, %v446_v10  ;;  %v487_v21 = vpop.f32.mrb[2].mxu1  ;;  %v305_v22 = vpop.f32.mrb[3].mxu0 }
  0xe9   : > { %375 = vst [vmem:[%s568_s26 + $0x50] sm:$0xff] %v343_v15  ;;  %365 = vst [vmem:[%s568_s26] sm:$0xff] %v303_v16  ;;  %v346_v23 = vadd.f32 %v487_v21, %v446_v10  ;;  %v306_v24 = vadd.f32 %v446_v10, %v305_v22  ;;  %v337_v25 = vpop.f32.mrb[3].mxu1 }
  0xea   : > { %373 = vst [vmem:[%s568_s26 + $0x40] sm:$0xff] %v335_v19  ;;  %368 = vst [vmem:[%s568_s26 + $0x18] sm:$0xff] %v314_v20  ;;  %v338_v26 = vadd.f32 %v446_v10, %v337_v25 }
  0xeb   : > { %376 = vst [vmem:[%s568_s26 + $0x58] sm:$0xff] %v346_v23  ;;  %366 = vst [vmem:[%s568_s26 + $0x8] sm:$0xff] %v306_v24 }
  0xec   : > { %374 = vst [vmem:[%s568_s26 + $0x48] sm:$0xff] %v338_v26 }
  0xed   : > { %v482_v27 = vpop.f32.mrb[4].mxu0 }
  0xee   : > { %v327_v28 = vadd.f32 %v482_v27, %v446_v10  ;;  %v490_v29 = vpop.f32.mrb[4].mxu1  ;;  %v318_v30 = vpop.f32.mrb[5].mxu0 }
  0xef   : > { %v359_v31 = vadd.f32 %v490_v29, %v446_v10  ;;  %v319_v32 = vadd.f32 %v446_v10, %v318_v30  ;;  %v350_v33 = vpop.f32.mrb[5].mxu1  ;;  %v483_v34 = vpop.f32.mrb[6].mxu0 }
  0xf0   : > { %371 = vst [vmem:[%s568_s26 + $0x30] sm:$0xff] %v327_v28  ;;  %v351_v35 = vadd.f32 %v446_v10, %v350_v33  ;;  %v330_v36 = vadd.f32 %v483_v34, %v446_v10  ;;  %v491_v37 = vpop.f32.mrb[6].mxu1  ;;  %v321_v38 = vpop.f32.mrb[7].mxu0 }
  0xf1   : > { %379 = vst [vmem:[%s568_s26 + $0x70] sm:$0xff] %v359_v31  ;;  %369 = vst [vmem:[%s568_s26 + $0x20] sm:$0xff] %v319_v32  ;;  %v362_v39 = vadd.f32 %v491_v37, %v446_v10  ;;  %v322_v40 = vadd.f32 %v446_v10, %v321_v38  ;;  %v353_v41 = vpop.f32.mrb[7].mxu1 }
  0xf2   : > { %377 = vst [vmem:[%s568_s26 + $0x60] sm:$0xff] %v351_v35  ;;  %372 = vst [vmem:[%s568_s26 + $0x38] sm:$0xff] %v330_v36  ;;  %v354_v42 = vadd.f32 %v446_v10, %v353_v41 }
  0xf3   : > { %380 = vst [vmem:[%s568_s26 + $0x78] sm:$0xff] %v362_v39  ;;  %370 = vst [vmem:[%s568_s26 + $0x28] sm:$0xff] %v322_v40 }
  0xf4   : > { %378 = vst [vmem:[%s568_s26 + $0x68] sm:$0xff] %v354_v42 }
  0xf5 PF: > { %s13_s12 = sadd.s32 1, %s518_s12  }
  0xf6   : > { %p10_p4 = scmp.ge.s32.totalorder %s13_s12, 5  }
  0xf8   :  { %12 = sbr.rel (!%p10_p4) target bundleno = 1 (0x1), region = 62 }

// kernel: feature_encoder_forward.3
= control target key start
LH: loop header
LB: loop body
LE: loop exit
PB: predicated region body
PF: predicated region fallthrough
CT: control target
= control target key end

     0   :  { %s3704_s12 = smov 0   ;;  %s4684_s0 = inlined_call_operand.vmem [shape: bf16[256,256], index: 0, kind: input, shape index: {}]   ;;  %s4685_s1 = inlined_call_operand.vmem [shape: bf16[256,256], index: 1, kind: input, shape index: {}]   ;;  %s4686_s2 = inlined_call_operand.vmem [shape: f32[256,1], index: 2, kind: input, shape index: {}]   ;;  %s4687_s3 = inlined_call_operand.vmem [shape: f32[256,8], index: 3, kind: output, shape index: {}]  }
   0x1 LB: > { %s3281_s13 = sadd.s32 4294967295, %s3682_s12   ;;  %p3285_p0 = scmp.ge.s32.totalorder %s3682_s12, 1  ;;  %s3682_s12 = sphi %s3704_s12, %s13_s12  }
   0x2   : > { %p150_p1 = scmp.lt.s32.totalorder %s3682_s12, 3 }
   0x4   : > { %p151_p2 = pnand %p3285_p0, %p150_p1 }
   0x5   : > { %v3516_v0 = vld [vmem:[%s4684_s0 + $0x4] ss:$8 sps:$4 sm:$0xff] (!%p151_p2)   ;;  %v3518_v1 = vld [vmem:[%s4684_s0] ss:$8 sps:$4 sm:$0xff] (!%p151_p2)   ;;  %v3519_v2 = vld [vmem:[%s4684_s0 + $0x14] ss:$8 sps:$4 sm:$0xff] (!%p151_p2)  }
   0x6   : > { %154 = sbr.rel (%p151_p2) target bundleno = 1582 (0x62e), region = 32  ;;  %703 = vmatprep.subr.bf16.mxu0 (!%p151_p2), %v3516_v0  ;;  %1153 = vmatprep.subr.bf16.mxu1 (!%p151_p2), %v3516_v0  ;;  %v3521_v3 = vld [vmem:[%s4684_s0 + $0x10] ss:$8 sps:$4 sm:$0xff] (!%p151_p2)   ;;  %v3522_v4 = vld [vmem:[%s4684_s0 + $0x24] ss:$8 sps:$4 sm:$0xff] (!%p151_p2)   ;;  %s3286_s28 = sshll.u32 (!%p151_p2), %s3281_s13, 4 }
   0x7   : > { %704 = vmatpush1.bf16.msra.mxu0 (!%p151_p2), %v3518_v1  ;;  %1154 = vmatpush1.bf16.msra.mxu1 (!%p151_p2), %v3518_v1  ;;  %v3524_v5 = vld [vmem:[%s4684_s0 + $0x20] ss:$8 sps:$4 sm:$0xff] (!%p151_p2)   ;;  %v3525_v6 = vld [vmem:[%s4684_s0 + $0x34] ss:$8 sps:$4 sm:$0xff] (!%p151_p2)   ;;  %v3527_v7 = vld [vmem:[%s4684_s0 + $0x30] ss:$8 sps:$4 sm:$0xff] (!%p151_p2)  }
   0x8   : > { %705 = vmatprep.subr.bf16.mxu0 (!%p151_p2), %v3519_v2  ;;  %1155 = vmatprep.subr.bf16.mxu1 (!%p151_p2), %v3519_v2  ;;  %v3528_v8 = vld [vmem:[%s4684_s0 + $0x44] ss:$8 sps:$4 sm:$0xff] (!%p151_p2)   ;;  %p181_p3 = scmp.lt.s32.totalorder (!%p151_p2), %s3286_s28, 31  ;;  %v3530_v9 = vld [vmem:[%s4684_s0 + $0x40] ss:$8 sps:$4 sm:$0xff] (!%p151_p2)   ;;  %s3293_s8 = sshll.u32 (!%p151_p2), %s3281_s13, 7 }
   0x9   : > { %v3531_v10 = vld [vmem:[%s4684_s0 + $0x54] ss:$8 sps:$4 sm:$0xff] (!%p151_p2)   ;;  %s3752_s15 = scalar_lea.vmem (!%p151_p2), %s4684_s0, %s3293_s8  ;;  %v3533_v11 = vld [vmem:[%s4684_s0 + $0x50] ss:$8 sps:$4 sm:$0xff] (!%p151_p2)   ;;  %v3534_v12 = vld [vmem:[%s4684_s0 + $0x64] ss:$8 sps:$4 sm:$0xff] (!%p151_p2)  }
   0xa   : > { %v3763_v13 = vld [vmem:[%s3752_s15] sm:$0xff] (!%p151_p2)  ;;  %v3766_v14 = vld [vmem:[%s3752_s15 + $0x8] sm:$0xff] (!%p151_p2)  ;;  %v3537_v17 = vld [vmem:[%s4684_s0 + $0x74] ss:$8 sps:$4 sm:$0xff] (!%p151_p2)   ;;  %vm264_vm0 = vcmask (!%p151_p2), 7168   ;;  %vm414_vm1 = vcmask (!%p151_p2), 15368  }
   0xb   : > { %706 = vmatpush1.bf16.msra.mxu0 (!%p151_p2), %v3521_v3  ;;  %1156 = vmatpush1.bf16.msra.mxu1 (!%p151_p2), %v3521_v3  ;;  %v3297_v15 = vcombine.high (!%p151_p2), %v3763_v13, %v3766_v14  ;;  %v3536_v16 = vld [vmem:[%s4684_s0 + $0x60] ss:$8 sps:$4 sm:$0xff] (!%p151_p2)   ;;  %v3783_v18 = vld [vmem:[%s3752_s15 + $0x10] sm:$0xff] (!%p151_p2)  ;;  %v3786_v19 = vld [vmem:[%s3752_s15 + $0x18] sm:$0xff] (!%p151_p2)  ;;  %v302_v24 = vunpack.c.l.bf16 (!%p151_p2), %v3763_v13  ;;  %v303_v25 = vunpack.c.h.bf16 (!%p151_p2), %v3763_v13  ;;  %v304_v54 = vunpack.c.l.bf16 (!%p151_p2), %v3766_v14 }
   0xc   : > { %707 = vmatprep.subr.bf16.mxu0 (!%p151_p2), %v3522_v4  ;;  %1157 = vmatprep.subr.bf16.mxu1 (!%p151_p2), %v3522_v4  ;;  %v306_v20 = vunpack.c.l.bf16 (!%p151_p2), %v3783_v18  ;;  %v307_v21 = vunpack.c.h.bf16 (!%p151_p2), %v3783_v18  ;;  %v3539_v22 = vld [vmem:[%s4684_s0 + $0x70] ss:$8 sps:$4 sm:$0xff] (!%p151_p2)   ;;  %v308_v26 = vunpack.c.l.bf16 (!%p151_p2), %v3786_v19  ;;  %v309_v27 = vunpack.c.h.bf16 (!%p151_p2), %v3786_v19  ;;  %v3540_v33 = vld [vmem:[%s4684_s0 + $0x84] ss:$8 sps:$4 sm:$0xff] (!%p151_p2)   ;;  %v3542_v39 = vld [vmem:[%s4684_s0 + $0x80] ss:$8 sps:$4 sm:$0xff] (!%p151_p2)  }
   0xd   : > { %s4689_s28 = smov (!%p181_p3, %s3286_s28), 31  ;;  %735 = vmatprep.mubr.bf16.mxu0 %v3297_v15  ;;  %v3821_v40 = vld [vmem:[%s3752_s15 + $0x28] sm:$0xff]  ;;  %v3543_v46 = vld [vmem:[%s4684_s0 + $0x94] ss:$8 sps:$4 sm:$0xff]   ;;  %v3839_v52 = vld [vmem:[%s3752_s15 + $0x20] sm:$0xff]  ;;  %v305_v55 = vunpack.c.h.bf16 %v3766_v14  ;;  %vm944_vm2 = vcmask 23568  }
   0xe   : > { %s3760_s19 = sshll.u32 %s4689_s28, 3  ;;  %v312_v60 = vunpack.c.l.bf16 %v3821_v40  ;;  %v3545_v62 = vld [vmem:[%s4684_s0 + $0x90] ss:$8 sps:$4 sm:$0xff]   ;;  %v313_v2 = vunpack.c.h.bf16 %v3821_v40  ;;  %v3546_v4 = vld [vmem:[%s4684_s0 + $0xa4] ss:$8 sps:$4 sm:$0xff]   ;;  %vm1394_vm3 = vcmask 31768  }
   0xf   : > { %708 = vmatpush1.bf16.msra.mxu0 %v3524_v5  ;;  %1158 = vmatpush1.bf16.msra.mxu1 %v3524_v5  ;;  %s3777_s24 = scalar_lea.vmem %s4685_s1, %s3760_s19  ;;  %v3853_v63 = vld [vmem:[%s3752_s15 + $0x38] sm:$0xff]  ;;  %v3864_v5 = vld [vmem:[%s3752_s15 + $0x30] sm:$0xff]  ;;  %s4017_s11 = scalar_lea.vmem %s4687_s3, %s3760_s19  ;;  %vm1844_vm4 = vcmask 39968   ;;  %vm2294_vm5 = vcmask 48168   ;;  %vm2744_vm6 = vcmask 56368   ;;  %vm3194_vm7 = vcmask 64568  }
  0x10   : > { %709 = vmatprep.subr.bf16.mxu0 %v3525_v6  ;;  %1159 = vmatprep.subr.bf16.mxu1 %v3525_v6  ;;  %v202_v23 = vld [vmem:[%s3777_s24 + $0x10] sm:$0xff]  ;;  %v200_v30 = vld [vmem:[%s3777_s24] sm:$0xff]  ;;  %v203_v31 = vld [vmem:[%s3777_s24 + $0x18] sm:$0xff]  ;;  %s4023_s17 = scalar_lea.vmem %s4686_s2, %s3760_s19 }
  0x11   : > { %v3798_v28 = vunpack.c.l.bf16 %v202_v23  ;;  %v3800_v29 = vunpack.c.h.bf16 %v202_v23  ;;  %v201_v32 = vld [vmem:[%s3777_s24 + $0x8] sm:$0xff]  ;;  %v3808_v34 = vunpack.c.l.bf16 %v200_v30  ;;  %v3810_v35 = vunpack.c.h.bf16 %v200_v30  ;;  %v204_v45 = vld [vmem:[%s3777_s24 + $0x20] sm:$0xff]  ;;  %v207_v51 = vld [vmem:[%s3777_s24 + $0x38] sm:$0xff] }
  0x12   : > { %v3812_v36 = vunpack.c.l.bf16 %v203_v31  ;;  %v3814_v37 = vunpack.c.h.bf16 %v203_v31  ;;  %v205_v38 = vld [vmem:[%s3777_s24 + $0x28] sm:$0xff]  ;;  %v3825_v43 = vunpack.c.l.bf16 %v201_v32  ;;  %v3827_v44 = vunpack.c.h.bf16 %v201_v32  ;;  %v206_v61 = vld [vmem:[%s3777_s24 + $0x30] sm:$0xff] }
  0x13   : > { %710 = vmatpush1.bf16.msra.mxu0 %v3527_v7  ;;  %1160 = vmatpush1.bf16.msra.mxu1 %v3527_v7  ;;  %v338_v41 = vmul.f32 %v306_v20, %v3798_v28  ;;  %v339_v42 = vmul.f32 %v307_v21, %v3800_v29  ;;  %v334_v47 = vmul.f32 %v302_v24, %v3808_v34  ;;  %v3843_v56 = vunpack.c.l.bf16 %v205_v38  ;;  %v3879_v20 = vld [vmem:[%s3752_s15 + $0x48] sm:$0xff]  ;;  %v3549_v32 = vld [vmem:[%s4684_s0 + $0xb4] ss:$8 sps:$4 sm:$0xff]  }
  0x14   : > { %711 = vmatprep.subr.bf16.mxu0 %v3528_v8  ;;  %1161 = vmatprep.subr.bf16.mxu1 %v3528_v8  ;;  %v335_v48 = vmul.f32 %v303_v25, %v3810_v35  ;;  %v340_v49 = vmul.f32 %v308_v26, %v3812_v36  ;;  %v341_v50 = vmul.f32 %v309_v27, %v3814_v37  ;;  %v3845_v59 = vunpack.c.h.bf16 %v205_v38  ;;  %v3548_v25 = vld [vmem:[%s4684_s0 + $0xa0] ss:$8 sps:$4 sm:$0xff]  }
  0x15   : > { %v372_v53 = vadd.f32 %v339_v42, %v338_v41  ;;  %v336_v0 = vmul.f32 %v304_v54, %v3825_v43  ;;  %v337_v1 = vmul.f32 %v305_v55, %v3827_v44  ;;  %v3858_v3 = vunpack.c.l.bf16 %v204_v45  ;;  %v3551_v54 = vld [vmem:[%s4684_s0 + $0xb0] ss:$8 sps:$4 sm:$0xff]  }
  0x16   : > { %v366_v57 = vadd.f32 %v335_v48, %v334_v47  ;;  %v375_v58 = vadd.f32 %v341_v50, %v340_v49  ;;  %v344_v6 = vmul.f32 %v312_v60, %v3843_v56  ;;  %v3867_v7 = vunpack.c.h.bf16 %v204_v45 }
  0x17   : > { %712 = vmatpush1.bf16.msra.mxu0 %v3530_v9  ;;  %1162 = vmatpush1.bf16.msra.mxu1 %v3530_v9  ;;  %v310_v8 = vunpack.c.l.bf16 %v3839_v52  ;;  %v311_v9 = vunpack.c.h.bf16 %v3839_v52  ;;  %v3873_v15 = vunpack.c.l.bf16 %v207_v51  ;;  %v316_v23 = vunpack.c.l.bf16 %v3853_v63 }
  0x18   : > { %713 = vmatprep.subr.bf16.mxu0 %v3531_v10  ;;  %1163 = vmatprep.subr.bf16.mxu1 %v3531_v10  ;;  %v209_v10 = vld [vmem:[%s3777_s24 + $0x48] sm:$0xff]  ;;  %v317_v24 = vunpack.c.h.bf16 %v3853_v63  ;;  %v3888_v27 = vunpack.c.l.bf16 %v206_v61  ;;  %v3890_v30 = vunpack.c.h.bf16 %v206_v61  ;;  %v314_v31 = vunpack.c.l.bf16 %v3864_v5 }
  0x19   : > { %373 = vadd.xlane.f32.xlu1 %v372_v53  ;;  %367 = vadd.xlane.f32.xlu0 %v366_v57  ;;  %v342_v21 = vmul.f32 %v310_v8, %v3858_v3  ;;  %v315_v42 = vunpack.c.h.bf16 %v3864_v5  ;;  %v3905_v47 = vunpack.c.h.bf16 %v209_v10  ;;  %v320_v48 = vunpack.c.l.bf16 %v3879_v20  ;;  %v3552_v61 = vld [vmem:[%s4684_s0 + $0xc4] ss:$8 sps:$4 sm:$0xff]   ;;  %v3555_v8 = vld [vmem:[%s4684_s0 + $0xd4] ss:$8 sps:$4 sm:$0xff]  }
  0x1a   : > { %v346_v45 = vmul.f32 %v314_v31, %v3888_v27  ;;  %v297_v31 = vld [vmem:[%s3752_s15 + $0x58] sm:$0xff] }
  0x1b   : > { %714 = vmatpush1.bf16.msra.mxu0 %v3533_v11  ;;  %1164 = vmatpush1.bf16.msra.mxu1 %v3533_v11  ;;  %v369_v11 = vadd.f32 %v337_v1, %v336_v0  ;;  %v347_v50 = vmul.f32 %v315_v42, %v3890_v30 }
  0x1c   : > { %715 = vmatprep.subr.bf16.mxu0 %v3534_v12  ;;  %1165 = vmatprep.subr.bf16.mxu1 %v3534_v12  ;;  %v345_v12 = vmul.f32 %v313_v2, %v3845_v59 }
  0x1d   : > { %376 = vadd.xlane.f32.xlu1 %v375_v58  ;;  %370 = vadd.xlane.f32.xlu0 %v369_v11  ;;  %v3558_v11 = vld [vmem:[%s4684_s0 + $0xe4] ss:$8 sps:$4 sm:$0xff]  }
  0x1e   : > { %v381_v26 = vadd.f32 %v345_v12, %v344_v6  ;;  %v3560_v12 = vld [vmem:[%s4684_s0 + $0xe0] ss:$8 sps:$4 sm:$0xff]  }
  0x1f   : > { %716 = vmatpush1.bf16.msra.mxu0 %v3536_v16  ;;  %1166 = vmatpush1.bf16.msra.mxu1 %v3536_v16  ;;  %v3875_v16 = vunpack.c.h.bf16 %v207_v51  ;;  %v321_v51 = vunpack.c.h.bf16 %v3879_v20 }
  0x20   : > { %717 = vmatprep.subr.bf16.mxu0 %v3537_v17  ;;  %1167 = vmatprep.subr.bf16.mxu1 %v3537_v17  ;;  %v208_v17 = vld [vmem:[%s3777_s24 + $0x40] sm:$0xff] }
  0x21   : > { %v349_v41 = vmul.f32 %v317_v24, %v3875_v16  ;;  %v3910_v53 = vunpack.c.l.bf16 %v208_v17  ;;  %382 = vadd.xlane.f32.xlu1 %v381_v26  ;;  %v3916_v57 = vunpack.c.h.bf16 %v208_v17  ;;  %v353_v0 = vmul.f32 %v321_v51, %v3905_v47  ;;  %v3561_v17 = vld [vmem:[%s4684_s0 + $0xf4] ss:$8 sps:$4 sm:$0xff]  }
  0x22   : > { %v3298_v24 = vcombine.low %v3783_v18, %v3786_v19  ;;  %v3302_v26 = vcombine.low %v3864_v5, %v3853_v63  ;;  %v324_v51 = vunpack.c.l.bf16 %v297_v31 }
  0x23   : > { %718 = vmatpush1.bf16.msra.mxu0 %v3539_v22  ;;  %1168 = vmatpush1.bf16.msra.mxu1 %v3539_v22  ;;  %v343_v22 = vmul.f32 %v311_v9, %v3867_v7 }
  0x24   : > { %719 = vmatprep.subr.bf16.mxu0 %v3540_v33  ;;  %1169 = vmatprep.subr.bf16.mxu1 %v3540_v33  ;;  %v3897_v33 = vld [vmem:[%s3752_s15 + $0x40] sm:$0xff] }
  0x25   : > { %v378_v38 = vadd.f32 %v343_v22, %v342_v21  ;;  %v318_v58 = vunpack.c.l.bf16 %v3897_v33  ;;  %v319_v60 = vunpack.c.h.bf16 %v3897_v33  ;;  %v3563_v21 = vld [vmem:[%s4684_s0 + $0xf0] ss:$8 sps:$4 sm:$0xff]   ;;  %v3296_v22 = vcombine.low %v3763_v13, %v3766_v14 }
  0x26   : > { %v3300_v13 = vcombine.low %v3839_v52, %v3821_v40  ;;  %v3303_v14 = vcombine.high %v3864_v5, %v3853_v63 }
  0x27   : > { %720 = vmatpush1.bf16.msra.mxu0 %v3542_v39  ;;  %1170 = vmatpush1.bf16.msra.mxu1 %v3542_v39  ;;  %v348_v39 = vmul.f32 %v316_v23, %v3873_v15  ;;  %v350_v1 = vmul.f32 %v318_v58, %v3910_v53  ;;  %v351_v2 = vmul.f32 %v319_v60, %v3916_v57 }
  0x28   : > { %721 = vmatprep.subr.bf16.mxu0 %v3543_v46  ;;  %1171 = vmatprep.subr.bf16.mxu1 %v3543_v46  ;;  %v3903_v46 = vunpack.c.l.bf16 %v209_v10  ;;  %v3557_v10 = vld [vmem:[%s4684_s0 + $0xd0] ss:$8 sps:$4 sm:$0xff]   ;;  %v3299_v23 = vcombine.high %v3783_v18, %v3786_v19  ;;  %v3305_v18 = vcombine.high %v3897_v33, %v3879_v20 }
  0x29   : > { %v387_v49 = vadd.f32 %v349_v41, %v348_v39  ;;  %379 = vadd.xlane.f32.xlu0 %v378_v38  ;;  %v390_v9 = vadd.f32 %v351_v2, %v350_v1  ;;  %v296_v19 = vld [vmem:[%s3752_s15 + $0x50] sm:$0xff]  ;;  %v299_v38 = vld [vmem:[%s3752_s15 + $0x68] sm:$0xff]  ;;  %v301_v41 = vld [vmem:[%s3752_s15 + $0x78] sm:$0xff] }
  0x2a   : > { %v352_v55 = vmul.f32 %v320_v48, %v3903_v46  ;;  %v3306_v63 = vcombine.low %v296_v19, %v297_v31  ;;  %v300_v39 = vld [vmem:[%s3752_s15 + $0x70] sm:$0xff]  ;;  %v322_v60 = vunpack.c.l.bf16 %v296_v19 }
  0x2b   : > { %722 = vmatpush1.bf16.msra.mxu0 %v3545_v62  ;;  %1172 = vmatpush1.bf16.msra.mxu1 %v3545_v62  ;;  %v384_v62 = vadd.f32 %v347_v50, %v346_v45  ;;  %v3311_v45 = vcombine.high %v300_v39, %v301_v41  ;;  %v3310_v48 = vcombine.low %v300_v39, %v301_v41 }
  0x2c   : > { %723 = vmatprep.subr.bf16.mxu0 %v3546_v4  ;;  %1173 = vmatprep.subr.bf16.mxu1 %v3546_v4  ;;  %v3554_v4 = vld [vmem:[%s4684_s0 + $0xc0] ss:$8 sps:$4 sm:$0xff]   ;;  %v393_v6 = vadd.f32 %v353_v0, %v352_v55 }
  0x2d   : > { %388 = vadd.xlane.f32.xlu1 %v387_v49  ;;  %385 = vadd.xlane.f32.xlu0 %v384_v62 }
  0x2f   : > { %724 = vmatpush1.bf16.msra.mxu0 %v3548_v25  ;;  %1174 = vmatpush1.bf16.msra.mxu1 %v3548_v25  ;;  %v3301_v25 = vcombine.high %v3839_v52, %v3821_v40  ;;  %v3304_v40 = vcombine.low %v3897_v33, %v3879_v20  ;;  %v3307_v52 = vcombine.high %v296_v19, %v297_v31  ;;  %v211_v20 = vld [vmem:[%s3777_s24 + $0x58] sm:$0xff]  ;;  %v210_v33 = vld [vmem:[%s3777_s24 + $0x50] sm:$0xff] }
  0x30   : > { %725 = vmatprep.subr.bf16.mxu0 %v3549_v32  ;;  %1175 = vmatprep.subr.bf16.mxu1 %v3549_v32  ;;  %v298_v32 = vld [vmem:[%s3752_s15 + $0x60] sm:$0xff]  ;;  %v3973_v49 = vunpack.c.l.bf16 %v211_v20  ;;  %v3975_v50 = vunpack.c.h.bf16 %v211_v20  ;;  %v3977_v55 = vunpack.c.l.bf16 %v210_v33  ;;  %v3979_v58 = vunpack.c.h.bf16 %v210_v33 }
  0x31   : > { %394 = vadd.xlane.f32.xlu1 %v393_v6  ;;  %391 = vadd.xlane.f32.xlu0 %v390_v9  ;;  %v3309_v5 = vcombine.high %v298_v32, %v299_v38  ;;  %v3308_v42 = vcombine.low %v298_v32, %v299_v38  ;;  %v212_v6 = vld [vmem:[%s3777_s24 + $0x60] sm:$0xff] }
  0x32   : > { %v356_v62 = vmul.f32 %v324_v51, %v3973_v49  ;;  %v354_v1 = vmul.f32 %v322_v60, %v3977_v55 }
  0x33   : > { %726 = vmatpush1.bf16.msra.mxu0 %v3551_v54  ;;  %1176 = vmatpush1.bf16.msra.mxu1 %v3551_v54  ;;  %v325_v54 = vunpack.c.h.bf16 %v297_v31 }
  0x34   : > { %727 = vmatprep.subr.bf16.mxu0 %v3552_v61  ;;  %1177 = vmatprep.subr.bf16.mxu1 %v3552_v61  ;;  %v323_v61 = vunpack.c.h.bf16 %v296_v19 }
  0x35   : > { %v357_v0 = vmul.f32 %v325_v54, %v3975_v50 }
  0x36   : > { %v355_v2 = vmul.f32 %v323_v61, %v3979_v58 }
  0x37   : > { %728 = vmatpush1.bf16.msra.mxu0 %v3554_v4  ;;  %1178 = vmatpush1.bf16.msra.mxu1 %v3554_v4  ;;  %v213_v4 = vld [vmem:[%s3777_s24 + $0x68] sm:$0xff] }
  0x38   : > { %729 = vmatprep.subr.bf16.mxu0 %v3555_v8  ;;  %1179 = vmatprep.subr.bf16.mxu1 %v3555_v8  ;;  %v399_v8 = vadd.f32 %v357_v0, %v356_v62  ;;  %v3987_v9 = vunpack.c.l.bf16 %v213_v4  ;;  %v250_v62 = vld [vmem:[%s4023_s17 + $0x10] sm:$0xff]  ;;  %v248_v0 = vld [vmem:[%s4023_s17] sm:$0xff] }
  0x39   : > { %267 = vst.msk [vmem:[%s4017_s11 + $0x10] sm:$0xff] %vm264_vm0, %v250_v62  ;;  %265 = vst.msk [vmem:[%s4017_s11] sm:$0xff] %vm264_vm0, %v248_v0 }
  0x3a   : > { %400 = vadd.xlane.f32.xlu1 %v399_v8  ;;  %v255_v8 = vld [vmem:[%s4023_s17 + $0x38] sm:$0xff] }
  0x3b   : > { %730 = vmatpush1.bf16.msra.mxu0 %v3557_v10  ;;  %1180 = vmatpush1.bf16.msra.mxu1 %v3557_v10  ;;  %v3989_v10 = vunpack.c.h.bf16 %v213_v4  ;;  %v253_v4 = vld [vmem:[%s4023_s17 + $0x28] sm:$0xff]  ;;  %272 = vst.msk [vmem:[%s4017_s11 + $0x38] sm:$0xff] %vm264_vm0, %v255_v8 }
  0x3c   : > { %731 = vmatprep.subr.bf16.mxu0 %v3558_v11  ;;  %1181 = vmatprep.subr.bf16.mxu1 %v3558_v11  ;;  %v328_v11 = vunpack.c.l.bf16 %v299_v38  ;;  %270 = vst.msk [vmem:[%s4017_s11 + $0x28] sm:$0xff] %vm264_vm0, %v253_v4 }
  0x3f   : > { %732 = vmatpush1.bf16.msra.mxu0 %v3560_v12  ;;  %1182 = vmatpush1.bf16.msra.mxu1 %v3560_v12  ;;  %v396_v12 = vadd.f32 %v355_v2, %v354_v1  ;;  %v251_v1 = vld [vmem:[%s4023_s17 + $0x18] sm:$0xff]  ;;  %v249_v2 = vld [vmem:[%s4023_s17 + $0x8] sm:$0xff] }
  0x40   : > { %733 = vmatprep.subr.bf16.mxu0 %v3561_v17  ;;  %1183 = vmatprep.subr.bf16.mxu1 %v3561_v17  ;;  %v329_v17 = vunpack.c.h.bf16 %v299_v38  ;;  %v332_v38 = vunpack.c.l.bf16 %v301_v41  ;;  %268 = vst.msk [vmem:[%s4017_s11 + $0x18] sm:$0xff] %vm264_vm0, %v251_v1  ;;  %266 = vst.msk [vmem:[%s4017_s11 + $0x8] sm:$0xff] %vm264_vm0, %v249_v2 }
  0x41   : > { %397 = vadd.xlane.f32.xlu0 %v396_v12  ;;  %v257_v12 = vld [vmem:[%s4023_s17 + $0x48] sm:$0xff] }
  0x42   : > { %274 = vst.msk [vmem:[%s4017_s11 + $0x48] sm:$0xff] %vm264_vm0, %v257_v12 }
  0x43   : > { %734 = vmatpush1.bf16.msra.mxu0 %v3563_v21  ;;  %1184 = vmatpush1.bf16.msra.mxu1 %v3563_v21  ;;  %v3991_v21 = vunpack.c.l.bf16 %v212_v6 }
  0x46   : > { %736 = vmatmul.mubr.bf16.vlgmr.msra.gmra.mrb[0].mxu0 %v3296_v22  ;;  %v3993_v22 = vunpack.c.h.bf16 %v212_v6  ;;  %v252_v6 = vld [vmem:[%s4023_s17 + $0x20] sm:$0xff] }
  0x47   : > { %745 = vmatprep.mubr.bf16.mxu0 %v3299_v23  ;;  %v360_v23 = vmul.f32 %v328_v11, %v3987_v9  ;;  %269 = vst.msk [vmem:[%s4017_s11 + $0x20] sm:$0xff] %vm264_vm0, %v252_v6  ;;  %v254_v11 = vld [vmem:[%s4023_s17 + $0x30] sm:$0xff] }
  0x48   : > { %271 = vst.msk [vmem:[%s4017_s11 + $0x30] sm:$0xff] %vm264_vm0, %v254_v11 }
  0x4e   : > { %746 = vmatmul.mubr.bf16.gmra.mrb[4].mxu0 %v3298_v24  ;;  %v326_v24 = vunpack.c.l.bf16 %v298_v32 }
  0x4f   : > { %755 = vmatprep.mubr.bf16.mxu0 %v3301_v25  ;;  %v327_v25 = vunpack.c.h.bf16 %v298_v32 }
  0x51   : > { %v359_v19 = vmul.f32 %v327_v25, %v3993_v22  ;;  %v259_v25 = vld [vmem:[%s4023_s17 + $0x58] sm:$0xff] }
  0x52   : > { %276 = vst.msk [vmem:[%s4017_s11 + $0x58] sm:$0xff] %vm264_vm0, %v259_v25 }
  0x56   : > { %756 = vmatmul.mubr.bf16.gmra.mrb[8].mxu0 %v3300_v13  ;;  %v361_v13 = vmul.f32 %v329_v17, %v3989_v10 }
  0x57   : > { %765 = vmatprep.mubr.bf16.mxu0 %v3303_v14  ;;  %v215_v14 = vld [vmem:[%s3777_s24 + $0x78] sm:$0xff] }
  0x58   : > { %v4001_v31 = vunpack.c.l.bf16 %v215_v14 }
  0x5a   : > { %v364_v20 = vmul.f32 %v332_v38, %v4001_v31 }
  0x5e   : > { %766 = vmatmul.mubr.bf16.gmra.mrb[12].mxu0 %v3302_v26  ;;  %v214_v26 = vld [vmem:[%s3777_s24 + $0x70] sm:$0xff] }
  0x5f   : > { %775 = vmatprep.mubr.bf16.mxu0 %v3305_v18  ;;  %v358_v18 = vmul.f32 %v326_v24, %v3991_v21  ;;  %v256_v24 = vld [vmem:[%s4023_s17 + $0x40] sm:$0xff] }
  0x60   : > { %273 = vst.msk [vmem:[%s4017_s11 + $0x40] sm:$0xff] %vm264_vm0, %v256_v24 }
  0x61   : > { %v402_v32 = vadd.f32 %v359_v19, %v358_v18  ;;  %v263_v18 = vld [vmem:[%s4023_s17 + $0x78] sm:$0xff]  ;;  %v262_v19 = vld [vmem:[%s4023_s17 + $0x70] sm:$0xff] }
  0x62   : > { %280 = vst.msk [vmem:[%s4017_s11 + $0x78] sm:$0xff] %vm264_vm0, %v263_v18  ;;  %279 = vst.msk [vmem:[%s4017_s11 + $0x70] sm:$0xff] %vm264_vm0, %v262_v19 }
  0x63   : > { %403 = vadd.xlane.f32.xlu0 %v402_v32 }
  0x66   : > { %776 = vmatmul.mubr.bf16.gmra.mrb[16].mxu0 %v3304_v40  ;;  %v4003_v40 = vunpack.c.h.bf16 %v215_v14  ;;  %v261_v14 = vld [vmem:[%s4023_s17 + $0x68] sm:$0xff] }
  0x67   : > { %785 = vmatprep.mubr.bf16.mxu0 %v3307_v52  ;;  %v405_v52 = vadd.f32 %v361_v13, %v360_v23  ;;  %v258_v13 = vld [vmem:[%s4023_s17 + $0x50] sm:$0xff]  ;;  %278 = vst.msk [vmem:[%s4017_s11 + $0x68] sm:$0xff] %vm264_vm0, %v261_v14 }
  0x68   : > { %275 = vst.msk [vmem:[%s4017_s11 + $0x50] sm:$0xff] %vm264_vm0, %v258_v13 }
  0x69   : > { %406 = vadd.xlane.f32.xlu1 %v405_v52 }
  0x6e   : > { %786 = vmatmul.mubr.bf16.gmra.mrb[20].mxu0 %v3306_v63  ;;  %v333_v63 = vunpack.c.h.bf16 %v301_v41 }
  0x6f   : > { %795 = vmatprep.mubr.bf16.mxu0 %v3309_v5  ;;  %v4005_v5 = vunpack.c.l.bf16 %v214_v26 }
  0x70   : > { %v365_v33 = vmul.f32 %v333_v63, %v4003_v40 }
  0x72   : > { %v411_v41 = vadd.f32 %v365_v33, %v364_v20 }
  0x74   : > { %412 = vadd.xlane.f32.xlu1 %v411_v41 }
  0x76   : > { %796 = vmatmul.mubr.bf16.gmra.mrb[24].mxu0 %v3308_v42  ;;  %v4007_v42 = vunpack.c.h.bf16 %v214_v26  ;;  %v260_v26 = vld [vmem:[%s4023_s17 + $0x60] sm:$0xff] }
  0x77   : > { %805 = vmatprep.mubr.bf16.mxu0 %v3311_v45  ;;  %v330_v45 = vunpack.c.l.bf16 %v300_v39  ;;  %277 = vst.msk [vmem:[%s4017_s11 + $0x60] sm:$0xff] %vm264_vm0, %v260_v26 }
  0x79   : > { %v362_v51 = vmul.f32 %v330_v45, %v4005_v5 }
  0x7e   : > { %806 = vmatmul.mubr.bf16.gmra.mrb[28].mxu0 %v3310_v48  ;;  %v331_v48 = vunpack.c.h.bf16 %v300_v39 }
  0x80   : > { %v363_v54 = vmul.f32 %v331_v48, %v4007_v42 }
  0x82   : > { %v408_v60 = vadd.f32 %v363_v54, %v362_v51 }
  0x84   : > { %409 = vadd.xlane.f32.xlu0 %v408_v60 }
  0xa6   : > { %v374_v39 = vpop.xlane.xlu1 %373  ;;  %v368_v61 = vpop.xlane.xlu0 %367 }
  0xa7   : > { %417 = vst.msk [vmem:[%s4017_s11 + $0x10] sm:$0xff] %vm414_vm1, %v374_v39  ;;  %415 = vst.msk [vmem:[%s4017_s11] sm:$0xff] %vm414_vm1, %v368_v61 }
  0xaa   : > { %v377_v17 = vpop.xlane.xlu1 %376  ;;  %v371_v23 = vpop.xlane.xlu0 %370 }
  0xab   : > { %418 = vst.msk [vmem:[%s4017_s11 + $0x18] sm:$0xff] %vm414_vm1, %v377_v17  ;;  %416 = vst.msk [vmem:[%s4017_s11 + $0x8] sm:$0xff] %vm414_vm1, %v371_v23 }
  0xae   : > { %v383_v52 = vpop.xlane.xlu1 %382 }
  0xaf   : > { %420 = vst.msk [vmem:[%s4017_s11 + $0x28] sm:$0xff] %vm414_vm1, %v383_v52 }
  0xb6   : > { %v380_v38 = vpop.xlane.xlu0 %379 }
  0xb7   : > { %419 = vst.msk [vmem:[%s4017_s11 + $0x20] sm:$0xff] %vm414_vm1, %v380_v38 }
  0xba   : > { %v389_v63 = vpop.xlane.xlu1 %388  ;;  %v386_v32 = vpop.xlane.xlu0 %385 }
  0xbb   : > { %422 = vst.msk [vmem:[%s4017_s11 + $0x38] sm:$0xff] %vm414_vm1, %v389_v63  ;;  %421 = vst.msk [vmem:[%s4017_s11 + $0x30] sm:$0xff] %vm414_vm1, %v386_v32 }
  0xbe   : > { %v395_v45 = vpop.xlane.xlu1 %394  ;;  %v392_v48 = vpop.xlane.xlu0 %391 }
  0xbf   : > { %424 = vst.msk [vmem:[%s4017_s11 + $0x48] sm:$0xff] %vm414_vm1, %v395_v45  ;;  %423 = vst.msk [vmem:[%s4017_s11 + $0x40] sm:$0xff] %vm414_vm1, %v392_v48 }
  0xc7   : > { %v401_v18 = vpop.xlane.xlu1 %400 }
  0xc8   : > { %426 = vst.msk [vmem:[%s4017_s11 + $0x58] sm:$0xff] %vm414_vm1, %v401_v18 }
  0xce   : > { %v398_v38 = vpop.xlane.xlu0 %397 }
  0xcf   : > { %425 = vst.msk [vmem:[%s4017_s11 + $0x50] sm:$0xff] %vm414_vm1, %v398_v38 }
 0x119   : > { %v737_v20 = vpop.f32.mrb[0].mxu0 }
 0x11a   : > { %v739_v33 = vpop.f32.mrb[1].mxu0 }
 0x11b   : > { %v741_v51 = vpop.f32.mrb[2].mxu0 }
 0x11c   : > { %v816_v54 = vpack.c.bf16 %v741_v51, %v737_v20  ;;  %v743_v41 = vpop.f32.mrb[3].mxu0 }
 0x11d   : > { %v817_v60 = vpack.c.bf16 %v743_v41, %v739_v33 }
 0x11e   : > { %v832_v39 = vunpack.c.l.bf16 %v816_v54  ;;  %v834_v61 = vunpack.c.h.bf16 %v816_v54 }
 0x11f   : > { %v833_v62 = vunpack.c.l.bf16 %v817_v60  ;;  %v835_v0 = vunpack.c.h.bf16 %v817_v60  ;;  %1185 = vmatprep.mubr.bf16.mxu1 %v817_v60  ;;  %v407_v60 = vpop.xlane.xlu1 %406 }
 0x120   : > { %1186 = vmatmul.mubr.bf16.vlgmr.msra.gmra.mrb[0].mxu1 %v816_v54  ;;  %v866_v1 = vmul.f32 %v834_v61, %v3825_v43  ;;  %v864_v2 = vmul.f32 %v832_v39, %v3808_v34  ;;  %428 = vst.msk [vmem:[%s4017_s11 + $0x68] sm:$0xff] %vm414_vm1, %v407_v60 }
 0x121   : > { %v747_v4 = vpop.f32.mrb[4].mxu0  ;;  %v867_v6 = vmul.f32 %v835_v0, %v3827_v44  ;;  %v865_v8 = vmul.f32 %v833_v62, %v3810_v35  ;;  %v404_v62 = vpop.xlane.xlu0 %403 }
 0x122   : > { %v749_v11 = vpop.f32.mrb[5].mxu0  ;;  %427 = vst.msk [vmem:[%s4017_s11 + $0x60] sm:$0xff] %vm414_vm1, %v404_v62 }
 0x123   : > { %v751_v12 = vpop.f32.mrb[6].mxu0  ;;  %v899_v17 = vadd.f32 %v867_v6, %v866_v1  ;;  %v896_v23 = vadd.f32 %v865_v8, %v864_v2  ;;  %v413_v8 = vpop.xlane.xlu1 %412 }
 0x124   : > { %v818_v24 = vpack.c.bf16 %v751_v12, %v747_v4  ;;  %v753_v25 = vpop.f32.mrb[7].mxu0  ;;  %430 = vst.msk [vmem:[%s4017_s11 + $0x78] sm:$0xff] %vm414_vm1, %v413_v8 }
 0x125   : > { %v819_v13 = vpack.c.bf16 %v753_v25, %v749_v11  ;;  %900 = vadd.xlane.f32.xlu1 %v899_v17  ;;  %897 = vadd.xlane.f32.xlu0 %v896_v23  ;;  %v410_v17 = vpop.xlane.xlu0 %409 }
 0x126   : > { %v836_v14 = vunpack.c.l.bf16 %v818_v24  ;;  %v838_v26 = vunpack.c.h.bf16 %v818_v24  ;;  %429 = vst.msk [vmem:[%s4017_s11 + $0x70] sm:$0xff] %vm414_vm1, %v410_v17 }
 0x127   : > { %v837_v19 = vunpack.c.l.bf16 %v819_v13  ;;  %v839_v52 = vunpack.c.h.bf16 %v819_v13  ;;  %1195 = vmatprep.mubr.bf16.mxu1 %v819_v13 }
 0x128   : > { %1196 = vmatmul.mubr.bf16.gmra.mrb[4].mxu1 %v818_v24  ;;  %v870_v63 = vmul.f32 %v838_v26, %v3812_v36  ;;  %v868_v32 = vmul.f32 %v836_v14, %v3798_v28 }
 0x129   : > { %v757_v45 = vpop.f32.mrb[8].mxu0  ;;  %v871_v48 = vmul.f32 %v839_v52, %v3814_v37  ;;  %v869_v20 = vmul.f32 %v837_v19, %v3800_v29  ;;  %v3580_v19 = vld [vmem:[%s4684_s0] ss:$8 sps:$4 sm:$0xff]   ;;  %v3582_v52 = vld [vmem:[%s4684_s0 + $0x4] ss:$8 sps:$4 sm:$0xff]  }
 0x12a   : > { %v759_v33 = vpop.f32.mrb[9].mxu0  ;;  %1603 = vmatprep.subr.bf16.mxu0 %v3582_v52  ;;  %2053 = vmatprep.subr.bf16.mxu1 %v3582_v52 }
 0x12b   : > { %v761_v51 = vpop.f32.mrb[10].mxu0  ;;  %v905_v54 = vadd.f32 %v871_v48, %v870_v63  ;;  %v902_v41 = vadd.f32 %v869_v20, %v868_v32  ;;  %1604 = vmatpush1.bf16.msra.mxu0 %v3580_v19  ;;  %2054 = vmatpush1.bf16.msra.mxu1 %v3580_v19 }
 0x12c   : > { %v820_v39 = vpack.c.bf16 %v761_v51, %v757_v45  ;;  %v763_v61 = vpop.f32.mrb[11].mxu0 }
 0x12d   : > { %v821_v0 = vpack.c.bf16 %v763_v61, %v759_v33  ;;  %906 = vadd.xlane.f32.xlu1 %v905_v54  ;;  %903 = vadd.xlane.f32.xlu0 %v902_v41 }
 0x12e   : > { %v840_v1 = vunpack.c.l.bf16 %v820_v39  ;;  %v842_v2 = vunpack.c.h.bf16 %v820_v39 }
 0x12f   : > { %v841_v4 = vunpack.c.l.bf16 %v821_v0  ;;  %v843_v6 = vunpack.c.h.bf16 %v821_v0  ;;  %1205 = vmatprep.mubr.bf16.mxu1 %v821_v0 }
 0x130   : > { %1206 = vmatmul.mubr.bf16.gmra.mrb[8].mxu1 %v820_v39  ;;  %v874_v11 = vmul.f32 %v842_v2, %v3843_v56  ;;  %v872_v12 = vmul.f32 %v840_v1, %v3858_v3  ;;  %v3583_v2 = vld [vmem:[%s4684_s0 + $0x10] ss:$8 sps:$4 sm:$0xff]  }
 0x131   : > { %v767_v23 = vpop.f32.mrb[12].mxu0  ;;  %v875_v24 = vmul.f32 %v843_v6, %v3845_v59  ;;  %v873_v25 = vmul.f32 %v841_v4, %v3867_v7  ;;  %v3585_v4 = vld [vmem:[%s4684_s0 + $0x14] ss:$8 sps:$4 sm:$0xff]  }
 0x132   : > { %v769_v13 = vpop.f32.mrb[13].mxu0  ;;  %1605 = vmatprep.subr.bf16.mxu0 %v3585_v4  ;;  %2055 = vmatprep.subr.bf16.mxu1 %v3585_v4 }
 0x133   : > { %v771_v14 = vpop.f32.mrb[14].mxu0  ;;  %v911_v26 = vadd.f32 %v875_v24, %v874_v11  ;;  %v908_v18 = vadd.f32 %v873_v25, %v872_v12  ;;  %v3588_v11 = vld [vmem:[%s4684_s0 + $0x24] ss:$8 sps:$4 sm:$0xff]   ;;  %1606 = vmatpush1.bf16.msra.mxu0 %v3583_v2  ;;  %2056 = vmatpush1.bf16.msra.mxu1 %v3583_v2 }
 0x134   : > { %v822_v38 = vpack.c.bf16 %v771_v14, %v767_v23  ;;  %v773_v63 = vpop.f32.mrb[15].mxu0  ;;  %1607 = vmatprep.subr.bf16.mxu0 %v3588_v11  ;;  %2057 = vmatprep.subr.bf16.mxu1 %v3588_v11 }
 0x135   : > { %v823_v32 = vpack.c.bf16 %v773_v63, %v769_v13  ;;  %912 = vadd.xlane.f32.xlu1 %v911_v26  ;;  %909 = vadd.xlane.f32.xlu0 %v908_v18  ;;  %v3586_v13 = vld [vmem:[%s4684_s0 + $0x20] ss:$8 sps:$4 sm:$0xff]  }
 0x136   : > { %v844_v45 = vunpack.c.l.bf16 %v822_v38  ;;  %v846_v48 = vunpack.c.h.bf16 %v822_v38 }
 0x137   : > { %v845_v20 = vunpack.c.l.bf16 %v823_v32  ;;  %v847_v33 = vunpack.c.h.bf16 %v823_v32  ;;  %1215 = vmatprep.mubr.bf16.mxu1 %v823_v32  ;;  %1608 = vmatpush1.bf16.msra.mxu0 %v3586_v13 }
 0x138   : > { %1216 = vmatmul.mubr.bf16.gmra.mrb[12].mxu1 %v822_v38  ;;  %v878_v51 = vmul.f32 %v846_v48, %v3873_v15  ;;  %v876_v54 = vmul.f32 %v844_v45, %v3888_v27  ;;  %v3589_v48 = vld [vmem:[%s4684_s0 + $0x30] ss:$8 sps:$4 sm:$0xff]  }
 0x139   : > { %v777_v41 = vpop.f32.mrb[16].mxu0  ;;  %v879_v60 = vmul.f32 %v847_v33, %v3875_v16  ;;  %v877_v39 = vmul.f32 %v845_v20, %v3890_v30  ;;  %v3591_v20 = vld [vmem:[%s4684_s0 + $0x34] ss:$8 sps:$4 sm:$0xff]   ;;  %2058 = vmatpush1.bf16.msra.mxu1 %v3586_v13 }
 0x13a   : > { %v779_v61 = vpop.f32.mrb[17].mxu0  ;;  %1609 = vmatprep.subr.bf16.mxu0 %v3591_v20  ;;  %2059 = vmatprep.subr.bf16.mxu1 %v3591_v20 }
 0x13b   : > { %v781_v62 = vpop.f32.mrb[18].mxu0  ;;  %v917_v0 = vadd.f32 %v879_v60, %v878_v51  ;;  %v914_v1 = vadd.f32 %v877_v39, %v876_v54  ;;  %v3594_v54 = vld [vmem:[%s4684_s0 + $0x44] ss:$8 sps:$4 sm:$0xff]   ;;  %1610 = vmatpush1.bf16.msra.mxu0 %v3589_v48 }
 0x13c   : > { %v824_v6 = vpack.c.bf16 %v781_v62, %v777_v41  ;;  %v783_v8 = vpop.f32.mrb[19].mxu0  ;;  %1611 = vmatprep.subr.bf16.mxu0 %v3594_v54 }
 0x13d   : > { %v825_v12 = vpack.c.bf16 %v783_v8, %v779_v61  ;;  %918 = vadd.xlane.f32.xlu1 %v917_v0  ;;  %915 = vadd.xlane.f32.xlu0 %v914_v1  ;;  %v3592_v0 = vld [vmem:[%s4684_s0 + $0x40] ss:$8 sps:$4 sm:$0xff]  }
 0x13e   : > { %v848_v17 = vunpack.c.l.bf16 %v824_v6  ;;  %v850_v23 = vunpack.c.h.bf16 %v824_v6  ;;  %2060 = vmatpush1.bf16.msra.mxu1 %v3589_v48 }
 0x13f   : > { %v849_v24 = vunpack.c.l.bf16 %v825_v12  ;;  %v851_v25 = vunpack.c.h.bf16 %v825_v12  ;;  %1225 = vmatprep.mubr.bf16.mxu1 %v825_v12  ;;  %1612 = vmatpush1.bf16.msra.mxu0 %v3592_v0 }
 0x140   : > { %1226 = vmatmul.mubr.bf16.gmra.mrb[16].mxu1 %v824_v6  ;;  %v882_v14 = vmul.f32 %v850_v23, %v3903_v46  ;;  %v880_v26 = vmul.f32 %v848_v17, %v3910_v53  ;;  %2061 = vmatprep.subr.bf16.mxu1 %v3594_v54 }
 0x141   : > { %v787_v18 = vpop.f32.mrb[20].mxu0  ;;  %v883_v19 = vmul.f32 %v851_v25, %v3905_v47  ;;  %v881_v52 = vmul.f32 %v849_v24, %v3916_v57  ;;  %v3595_v24 = vld [vmem:[%s4684_s0 + $0x50] ss:$8 sps:$4 sm:$0xff]   ;;  %v3597_v25 = vld [vmem:[%s4684_s0 + $0x54] ss:$8 sps:$4 sm:$0xff]  }
 0x142   : > { %v789_v38 = vpop.f32.mrb[21].mxu0  ;;  %1613 = vmatprep.subr.bf16.mxu0 %v3597_v25  ;;  %2062 = vmatpush1.bf16.msra.mxu1 %v3592_v0 }
 0x143   : > { %v791_v63 = vpop.f32.mrb[22].mxu0  ;;  %v923_v32 = vadd.f32 %v883_v19, %v882_v14  ;;  %v920_v45 = vadd.f32 %v881_v52, %v880_v26  ;;  %v3600_v26 = vld [vmem:[%s4684_s0 + $0x64] ss:$8 sps:$4 sm:$0xff]   ;;  %1614 = vmatpush1.bf16.msra.mxu0 %v3595_v24  ;;  %2063 = vmatprep.subr.bf16.mxu1 %v3597_v25 }
 0x144   : > { %v826_v33 = vpack.c.bf16 %v791_v63, %v787_v18  ;;  %v793_v51 = vpop.f32.mrb[23].mxu0  ;;  %1615 = vmatprep.subr.bf16.mxu0 %v3600_v26 }
 0x145   : > { %v827_v41 = vpack.c.bf16 %v793_v51, %v789_v38  ;;  %924 = vadd.xlane.f32.xlu1 %v923_v32  ;;  %921 = vadd.xlane.f32.xlu0 %v920_v45  ;;  %v3598_v32 = vld [vmem:[%s4684_s0 + $0x60] ss:$8 sps:$4 sm:$0xff]  }
 0x146   : > { %v852_v60 = vunpack.c.l.bf16 %v826_v33  ;;  %v854_v39 = vunpack.c.h.bf16 %v826_v33  ;;  %2064 = vmatpush1.bf16.msra.mxu1 %v3595_v24 }
 0x147   : > { %v853_v61 = vunpack.c.l.bf16 %v827_v41  ;;  %v855_v62 = vunpack.c.h.bf16 %v827_v41  ;;  %1235 = vmatprep.mubr.bf16.mxu1 %v827_v41  ;;  %1616 = vmatpush1.bf16.msra.mxu0 %v3598_v32 }
 0x148   : > { %1236 = vmatmul.mubr.bf16.gmra.mrb[20].mxu1 %v826_v33  ;;  %v886_v1 = vmul.f32 %v854_v39, %v3973_v49  ;;  %v884_v2 = vmul.f32 %v852_v60, %v3977_v55  ;;  %2065 = vmatprep.subr.bf16.mxu1 %v3600_v26 }
 0x149   : > { %v797_v4 = vpop.f32.mrb[24].mxu0  ;;  %v887_v6 = vmul.f32 %v855_v62, %v3975_v50  ;;  %v885_v8 = vmul.f32 %v853_v61, %v3979_v58  ;;  %v3601_v61 = vld [vmem:[%s4684_s0 + $0x70] ss:$8 sps:$4 sm:$0xff]   ;;  %v3603_v62 = vld [vmem:[%s4684_s0 + $0x74] ss:$8 sps:$4 sm:$0xff]  }
 0x14a   : > { %v799_v11 = vpop.f32.mrb[25].mxu0  ;;  %1617 = vmatprep.subr.bf16.mxu0 %v3603_v62  ;;  %2066 = vmatpush1.bf16.msra.mxu1 %v3598_v32  ;;  %v3615_v32 = vld [vmem:[%s4684_s0 + $0xb4] ss:$8 sps:$4 sm:$0xff]  }
 0x14b   : > { %v801_v12 = vpop.f32.mrb[26].mxu0  ;;  %v929_v17 = vadd.f32 %v887_v6, %v886_v1  ;;  %v926_v23 = vadd.f32 %v885_v8, %v884_v2  ;;  %v3606_v2 = vld [vmem:[%s4684_s0 + $0x84] ss:$8 sps:$4 sm:$0xff]   ;;  %1618 = vmatpush1.bf16.msra.mxu0 %v3601_v61  ;;  %2067 = vmatprep.subr.bf16.mxu1 %v3603_v62 }
 0x14c   : > { %v828_v13 = vpack.c.bf16 %v801_v12, %v797_v4  ;;  %v803_v14 = vpop.f32.mrb[27].mxu0  ;;  %1619 = vmatprep.subr.bf16.mxu0 %v3606_v2 }
 0x14d   : > { %v829_v18 = vpack.c.bf16 %v803_v14, %v799_v11  ;;  %930 = vadd.xlane.f32.xlu1 %v929_v17  ;;  %927 = vadd.xlane.f32.xlu0 %v926_v23  ;;  %v3604_v17 = vld [vmem:[%s4684_s0 + $0x80] ss:$8 sps:$4 sm:$0xff]  }
 0x14e   : > { %v856_v19 = vunpack.c.l.bf16 %v828_v13  ;;  %v858_v52 = vunpack.c.h.bf16 %v828_v13  ;;  %2068 = vmatpush1.bf16.msra.mxu1 %v3601_v61 }
 0x14f   : > { %v857_v38 = vunpack.c.l.bf16 %v829_v18  ;;  %v859_v63 = vunpack.c.h.bf16 %v829_v18  ;;  %1245 = vmatprep.mubr.bf16.mxu1 %v829_v18  ;;  %1620 = vmatpush1.bf16.msra.mxu0 %v3604_v17  ;;  %v3607_v18 = vld [vmem:[%s4684_s0 + $0x90] ss:$8 sps:$4 sm:$0xff]  }
 0x150   : > { %1246 = vmatmul.mubr.bf16.gmra.mrb[24].mxu1 %v828_v13  ;;  %v890_v45 = vmul.f32 %v858_v52, %v3987_v9  ;;  %v888_v48 = vmul.f32 %v856_v19, %v3991_v21  ;;  %v3609_v19 = vld [vmem:[%s4684_s0 + $0x94] ss:$8 sps:$4 sm:$0xff]   ;;  %2069 = vmatprep.subr.bf16.mxu1 %v3606_v2  ;;  %v3612_v52 = vld [vmem:[%s4684_s0 + $0xa4] ss:$8 sps:$4 sm:$0xff]  }
 0x151   : > { %v807_v20 = vpop.f32.mrb[28].mxu0  ;;  %v891_v33 = vmul.f32 %v859_v63, %v3989_v10  ;;  %v889_v51 = vmul.f32 %v857_v38, %v3993_v22  ;;  %1621 = vmatprep.subr.bf16.mxu0 %v3609_v19  ;;  %v3610_v38 = vld [vmem:[%s4684_s0 + $0xa0] ss:$8 sps:$4 sm:$0xff]   ;;  %v3613_v63 = vld [vmem:[%s4684_s0 + $0xb0] ss:$8 sps:$4 sm:$0xff]  }
 0x152   : > { %v809_v54 = vpop.f32.mrb[29].mxu0  ;;  %2070 = vmatpush1.bf16.msra.mxu1 %v3604_v17 }
 0x153   : > { %v811_v41 = vpop.f32.mrb[30].mxu0  ;;  %v935_v60 = vadd.f32 %v891_v33, %v890_v45  ;;  %v932_v39 = vadd.f32 %v889_v51, %v888_v48  ;;  %1622 = vmatpush1.bf16.msra.mxu0 %v3607_v18  ;;  %2071 = vmatprep.subr.bf16.mxu1 %v3609_v19  ;;  %v3618_v45 = vld [vmem:[%s4684_s0 + $0xc4] ss:$8 sps:$4 sm:$0xff]   ;;  %v3616_v48 = vld [vmem:[%s4684_s0 + $0xc0] ss:$8 sps:$4 sm:$0xff]  }
 0x154   : > { %v830_v0 = vpack.c.bf16 %v811_v41, %v807_v20  ;;  %v813_v1 = vpop.f32.mrb[31].mxu0  ;;  %1623 = vmatprep.subr.bf16.mxu0 %v3612_v52  ;;  %v3619_v20 = vld [vmem:[%s4684_s0 + $0xd0] ss:$8 sps:$4 sm:$0xff]   ;;  %v3621_v33 = vld [vmem:[%s4684_s0 + $0xd4] ss:$8 sps:$4 sm:$0xff]  }
 0x155   : > { %v831_v4 = vpack.c.bf16 %v813_v1, %v809_v54  ;;  %936 = vadd.xlane.f32.xlu1 %v935_v60  ;;  %933 = vadd.xlane.f32.xlu0 %v932_v39  ;;  %v3624_v51 = vld [vmem:[%s4684_s0 + $0xe4] ss:$8 sps:$4 sm:$0xff]   ;;  %v3622_v54 = vld [vmem:[%s4684_s0 + $0xe0] ss:$8 sps:$4 sm:$0xff]   ;;  %v3627_v41 = vld [vmem:[%s4684_s0 + $0xf4] ss:$8 sps:$4 sm:$0xff]  }
 0x156   : > { %v860_v6 = vunpack.c.l.bf16 %v830_v0  ;;  %v862_v8 = vunpack.c.h.bf16 %v830_v0  ;;  %2072 = vmatpush1.bf16.msra.mxu1 %v3607_v18  ;;  %v3625_v60 = vld [vmem:[%s4684_s0 + $0xf0] ss:$8 sps:$4 sm:$0xff]  }
 0x157   : > { %v861_v11 = vunpack.c.l.bf16 %v831_v4  ;;  %v863_v12 = vunpack.c.h.bf16 %v831_v4  ;;  %1255 = vmatprep.mubr.bf16.mxu1 %v831_v4  ;;  %1624 = vmatpush1.bf16.msra.mxu0 %v3610_v38 }
 0x158   : > { %1256 = vmatmul.mubr.bf16.gmra.mrb[28].mxu1 %v830_v0  ;;  %v894_v23 = vmul.f32 %v862_v8, %v4001_v31  ;;  %v892_v24 = vmul.f32 %v860_v6, %v4005_v5  ;;  %2073 = vmatprep.subr.bf16.mxu1 %v3612_v52 }
 0x159   : > { %v895_v25 = vmul.f32 %v863_v12, %v4003_v40  ;;  %v893_v13 = vmul.f32 %v861_v11, %v4007_v42  ;;  %1625 = vmatprep.subr.bf16.mxu0 %v3615_v32 }
 0x15a   : > { %2074 = vmatpush1.bf16.msra.mxu1 %v3610_v38 }
 0x15b   : > { %v941_v14 = vadd.f32 %v895_v25, %v894_v23  ;;  %v938_v26 = vadd.f32 %v893_v13, %v892_v24  ;;  %1626 = vmatpush1.bf16.msra.mxu0 %v3613_v63  ;;  %2075 = vmatprep.subr.bf16.mxu1 %v3615_v32 }
 0x15c   : > { %1627 = vmatprep.subr.bf16.mxu0 %v3618_v45 }
 0x15d   : > { %942 = vadd.xlane.f32.xlu1 %v941_v14  ;;  %939 = vadd.xlane.f32.xlu0 %v938_v26 }
 0x15e   : > { %2076 = vmatpush1.bf16.msra.mxu1 %v3613_v63 }
 0x15f   : > { %1628 = vmatpush1.bf16.msra.mxu0 %v3616_v48  ;;  %2077 = vmatprep.subr.bf16.mxu1 %v3618_v45 }
 0x160   : > { %1629 = vmatprep.subr.bf16.mxu0 %v3621_v33 }
 0x162   : > { %2078 = vmatpush1.bf16.msra.mxu1 %v3616_v48 }
 0x163   : > { %1630 = vmatpush1.bf16.msra.mxu0 %v3619_v20  ;;  %2079 = vmatprep.subr.bf16.mxu1 %v3621_v33 }
 0x164   : > { %1631 = vmatprep.subr.bf16.mxu0 %v3624_v51 }
 0x166   : > { %2080 = vmatpush1.bf16.msra.mxu1 %v3619_v20 }
 0x167   : > { %1632 = vmatpush1.bf16.msra.mxu0 %v3622_v54  ;;  %2081 = vmatprep.subr.bf16.mxu1 %v3624_v51 }
 0x168   : > { %1633 = vmatprep.subr.bf16.mxu0 %v3627_v41 }
 0x16a   : > { %2082 = vmatpush1.bf16.msra.mxu1 %v3622_v54 }
 0x16b   : > { %1634 = vmatpush1.bf16.msra.mxu0 %v3625_v60  ;;  %2083 = vmatprep.subr.bf16.mxu1 %v3627_v41 }
 0x16e   : > { %2084 = vmatpush1.bf16.msra.mxu1 %v3625_v60 }
 0x1b2   : > { %v901_v39 = vpop.xlane.xlu1 %900  ;;  %v898_v61 = vpop.xlane.xlu0 %897 }
 0x1b3   : > { %946 = vst.msk [vmem:[%s4017_s11 + $0x8] sm:$0xff] %vm944_vm2, %v901_v39  ;;  %945 = vst.msk [vmem:[%s4017_s11] sm:$0xff] %vm944_vm2, %v898_v61 }
 0x1ba   : > { %v907_v62 = vpop.xlane.xlu1 %906  ;;  %v904_v0 = vpop.xlane.xlu0 %903 }
 0x1bb   : > { %948 = vst.msk [vmem:[%s4017_s11 + $0x18] sm:$0xff] %vm944_vm2, %v907_v62  ;;  %947 = vst.msk [vmem:[%s4017_s11 + $0x10] sm:$0xff] %vm944_vm2, %v904_v0 }
 0x1c2   : > { %v913_v1 = vpop.xlane.xlu1 %912  ;;  %v910_v2 = vpop.xlane.xlu0 %909 }
 0x1c3   : > { %950 = vst.msk [vmem:[%s4017_s11 + $0x28] sm:$0xff] %vm944_vm2, %v913_v1  ;;  %949 = vst.msk [vmem:[%s4017_s11 + $0x20] sm:$0xff] %vm944_vm2, %v910_v2 }
 0x1ca   : > { %v919_v4 = vpop.xlane.xlu1 %918  ;;  %v916_v6 = vpop.xlane.xlu0 %915 }
 0x1cb   : > { %952 = vst.msk [vmem:[%s4017_s11 + $0x38] sm:$0xff] %vm944_vm2, %v919_v4  ;;  %951 = vst.msk [vmem:[%s4017_s11 + $0x30] sm:$0xff] %vm944_vm2, %v916_v6 }
 0x1d2   : > { %v925_v8 = vpop.xlane.xlu1 %924  ;;  %v922_v11 = vpop.xlane.xlu0 %921 }
 0x1d3   : > { %954 = vst.msk [vmem:[%s4017_s11 + $0x48] sm:$0xff] %vm944_vm2, %v925_v8  ;;  %953 = vst.msk [vmem:[%s4017_s11 + $0x40] sm:$0xff] %vm944_vm2, %v922_v11 }
 0x1da   : > { %v931_v12 = vpop.xlane.xlu1 %930  ;;  %v928_v17 = vpop.xlane.xlu0 %927 }
 0x1db   : > { %956 = vst.msk [vmem:[%s4017_s11 + $0x58] sm:$0xff] %vm944_vm2, %v931_v12  ;;  %955 = vst.msk [vmem:[%s4017_s11 + $0x50] sm:$0xff] %vm944_vm2, %v928_v17 }
 0x1e2   : > { %v937_v23 = vpop.xlane.xlu1 %936  ;;  %v934_v24 = vpop.xlane.xlu0 %933 }
 0x1e3   : > { %958 = vst.msk [vmem:[%s4017_s11 + $0x68] sm:$0xff] %vm944_vm2, %v937_v23  ;;  %957 = vst.msk [vmem:[%s4017_s11 + $0x60] sm:$0xff] %vm944_vm2, %v934_v24 }
 0x1ea   : > { %v943_v25 = vpop.xlane.xlu1 %942  ;;  %v940_v13 = vpop.xlane.xlu0 %939 }
 0x1eb   : > { %960 = vst.msk [vmem:[%s4017_s11 + $0x78] sm:$0xff] %vm944_vm2, %v943_v25  ;;  %959 = vst.msk [vmem:[%s4017_s11 + $0x70] sm:$0xff] %vm944_vm2, %v940_v13 }
 0x1f3   : > { %v1187_v14 = vpop.f32.mrb[0].mxu1 }
 0x1f4   : > { %v1189_v26 = vpop.f32.mrb[1].mxu1 }
 0x1f5   : > { %v1191_v18 = vpop.f32.mrb[2].mxu1 }
 0x1f6   : > { %v1266_v19 = vpack.c.bf16 %v1191_v18, %v1187_v14  ;;  %v1193_v52 = vpop.f32.mrb[3].mxu1 }
 0x1f7   : > { %v1267_v38 = vpack.c.bf16 %v1193_v52, %v1189_v26 }
 0x1f8   : > { %v1282_v63 = vunpack.c.l.bf16 %v1266_v19  ;;  %v1284_v32 = vunpack.c.h.bf16 %v1266_v19 }
 0x1f9   : > { %v1283_v45 = vunpack.c.l.bf16 %v1267_v38  ;;  %v1285_v48 = vunpack.c.h.bf16 %v1267_v38  ;;  %1635 = vmatprep.mubr.bf16.mxu0 %v1267_v38 }
 0x1fa   : > { %1636 = vmatmul.mubr.bf16.vlgmr.msra.gmra.mrb[32].mxu0 %v1266_v19  ;;  %v1316_v20 = vmul.f32 %v1284_v32, %v3825_v43  ;;  %v1314_v33 = vmul.f32 %v1282_v63, %v3808_v34 }
 0x1fb   : > { %v1197_v51 = vpop.f32.mrb[4].mxu1  ;;  %v1317_v54 = vmul.f32 %v1285_v48, %v3827_v44  ;;  %v1315_v41 = vmul.f32 %v1283_v45, %v3810_v35 }
 0x1fc   : > { %v1199_v60 = vpop.f32.mrb[5].mxu1 }
 0x1fd   : > { %v1201_v39 = vpop.f32.mrb[6].mxu1  ;;  %v1349_v61 = vadd.f32 %v1317_v54, %v1316_v20  ;;  %v1346_v62 = vadd.f32 %v1315_v41, %v1314_v33 }
 0x1fe   : > { %v1268_v0 = vpack.c.bf16 %v1201_v39, %v1197_v51  ;;  %v1203_v1 = vpop.f32.mrb[7].mxu1 }
 0x1ff   : > { %v1269_v2 = vpack.c.bf16 %v1203_v1, %v1199_v60  ;;  %1350 = vadd.xlane.f32.xlu1 %v1349_v61  ;;  %1347 = vadd.xlane.f32.xlu0 %v1346_v62 }
 0x200   : > { %v1286_v4 = vunpack.c.l.bf16 %v1268_v0  ;;  %v1288_v6 = vunpack.c.h.bf16 %v1268_v0 }
 0x201   : > { %v1287_v8 = vunpack.c.l.bf16 %v1269_v2  ;;  %v1289_v11 = vunpack.c.h.bf16 %v1269_v2  ;;  %1645 = vmatprep.mubr.bf16.mxu0 %v1269_v2 }
 0x202   : > { %1646 = vmatmul.mubr.bf16.gmra.mrb[36].mxu0 %v1268_v0  ;;  %v1320_v12 = vmul.f32 %v1288_v6, %v3812_v36  ;;  %v1318_v17 = vmul.f32 %v1286_v4, %v3798_v28 }
 0x203   : > { %v1207_v23 = vpop.f32.mrb[8].mxu1  ;;  %v1321_v24 = vmul.f32 %v1289_v11, %v3814_v37  ;;  %v1319_v25 = vmul.f32 %v1287_v8, %v3800_v29 }
 0x204   : > { %v1209_v13 = vpop.f32.mrb[9].mxu1 }
 0x205   : > { %v1211_v14 = vpop.f32.mrb[10].mxu1  ;;  %v1355_v26 = vadd.f32 %v1321_v24, %v1320_v12  ;;  %v1352_v18 = vadd.f32 %v1319_v25, %v1318_v17 }
 0x206   : > { %v1270_v19 = vpack.c.bf16 %v1211_v14, %v1207_v23  ;;  %v1213_v52 = vpop.f32.mrb[11].mxu1 }
 0x207   : > { %v1271_v38 = vpack.c.bf16 %v1213_v52, %v1209_v13  ;;  %1356 = vadd.xlane.f32.xlu1 %v1355_v26  ;;  %1353 = vadd.xlane.f32.xlu0 %v1352_v18 }
 0x208   : > { %v1290_v63 = vunpack.c.l.bf16 %v1270_v19  ;;  %v1292_v32 = vunpack.c.h.bf16 %v1270_v19 }
 0x209   : > { %v1291_v45 = vunpack.c.l.bf16 %v1271_v38  ;;  %v1293_v48 = vunpack.c.h.bf16 %v1271_v38  ;;  %1655 = vmatprep.mubr.bf16.mxu0 %v1271_v38 }
 0x20a   : > { %1656 = vmatmul.mubr.bf16.gmra.mrb[40].mxu0 %v1270_v19  ;;  %v1324_v20 = vmul.f32 %v1292_v32, %v3843_v56  ;;  %v1322_v33 = vmul.f32 %v1290_v63, %v3858_v3 }
 0x20b   : > { %v1217_v51 = vpop.f32.mrb[12].mxu1  ;;  %v1325_v54 = vmul.f32 %v1293_v48, %v3845_v59  ;;  %v1323_v41 = vmul.f32 %v1291_v45, %v3867_v7 }
 0x20c   : > { %v1219_v60 = vpop.f32.mrb[13].mxu1 }
 0x20d   : > { %v1221_v39 = vpop.f32.mrb[14].mxu1  ;;  %v1361_v61 = vadd.f32 %v1325_v54, %v1324_v20  ;;  %v1358_v62 = vadd.f32 %v1323_v41, %v1322_v33 }
 0x20e   : > { %v1272_v0 = vpack.c.bf16 %v1221_v39, %v1217_v51  ;;  %v1223_v1 = vpop.f32.mrb[15].mxu1 }
 0x20f   : > { %v1273_v2 = vpack.c.bf16 %v1223_v1, %v1219_v60  ;;  %1362 = vadd.xlane.f32.xlu1 %v1361_v61  ;;  %1359 = vadd.xlane.f32.xlu0 %v1358_v62 }
 0x210   : > { %v1294_v4 = vunpack.c.l.bf16 %v1272_v0  ;;  %v1296_v6 = vunpack.c.h.bf16 %v1272_v0 }
 0x211   : > { %v1295_v8 = vunpack.c.l.bf16 %v1273_v2  ;;  %v1297_v11 = vunpack.c.h.bf16 %v1273_v2  ;;  %1665 = vmatprep.mubr.bf16.mxu0 %v1273_v2 }
 0x212   : > { %1666 = vmatmul.mubr.bf16.gmra.mrb[44].mxu0 %v1272_v0  ;;  %v1328_v12 = vmul.f32 %v1296_v6, %v3873_v15  ;;  %v1326_v17 = vmul.f32 %v1294_v4, %v3888_v27 }
 0x213   : > { %v1227_v23 = vpop.f32.mrb[16].mxu1  ;;  %v1329_v24 = vmul.f32 %v1297_v11, %v3875_v16  ;;  %v1327_v25 = vmul.f32 %v1295_v8, %v3890_v30 }
 0x214   : > { %v1229_v13 = vpop.f32.mrb[17].mxu1 }
 0x215   : > { %v1231_v14 = vpop.f32.mrb[18].mxu1  ;;  %v1367_v26 = vadd.f32 %v1329_v24, %v1328_v12  ;;  %v1364_v18 = vadd.f32 %v1327_v25, %v1326_v17 }
 0x216   : > { %v1274_v19 = vpack.c.bf16 %v1231_v14, %v1227_v23  ;;  %v1233_v52 = vpop.f32.mrb[19].mxu1 }
 0x217   : > { %v1275_v38 = vpack.c.bf16 %v1233_v52, %v1229_v13  ;;  %1368 = vadd.xlane.f32.xlu1 %v1367_v26  ;;  %1365 = vadd.xlane.f32.xlu0 %v1364_v18 }
 0x218   : > { %v1298_v63 = vunpack.c.l.bf16 %v1274_v19  ;;  %v1300_v32 = vunpack.c.h.bf16 %v1274_v19 }
 0x219   : > { %v1299_v45 = vunpack.c.l.bf16 %v1275_v38  ;;  %v1301_v48 = vunpack.c.h.bf16 %v1275_v38  ;;  %1675 = vmatprep.mubr.bf16.mxu0 %v1275_v38 }
 0x21a   : > { %1676 = vmatmul.mubr.bf16.gmra.mrb[48].mxu0 %v1274_v19  ;;  %v1332_v20 = vmul.f32 %v1300_v32, %v3903_v46  ;;  %v1330_v33 = vmul.f32 %v1298_v63, %v3910_v53 }
 0x21b   : > { %v1237_v51 = vpop.f32.mrb[20].mxu1  ;;  %v1333_v54 = vmul.f32 %v1301_v48, %v3905_v47  ;;  %v1331_v41 = vmul.f32 %v1299_v45, %v3916_v57 }
 0x21c   : > { %v1239_v60 = vpop.f32.mrb[21].mxu1 }
 0x21d   : > { %v1241_v39 = vpop.f32.mrb[22].mxu1  ;;  %v1373_v61 = vadd.f32 %v1333_v54, %v1332_v20  ;;  %v1370_v62 = vadd.f32 %v1331_v41, %v1330_v33 }
 0x21e   : > { %v1276_v0 = vpack.c.bf16 %v1241_v39, %v1237_v51  ;;  %v1243_v1 = vpop.f32.mrb[23].mxu1 }
 0x21f   : > { %v1277_v2 = vpack.c.bf16 %v1243_v1, %v1239_v60  ;;  %1374 = vadd.xlane.f32.xlu1 %v1373_v61  ;;  %1371 = vadd.xlane.f32.xlu0 %v1370_v62 }
 0x220   : > { %v1302_v4 = vunpack.c.l.bf16 %v1276_v0  ;;  %v1304_v6 = vunpack.c.h.bf16 %v1276_v0 }
 0x221   : > { %v1303_v8 = vunpack.c.l.bf16 %v1277_v2  ;;  %v1305_v11 = vunpack.c.h.bf16 %v1277_v2  ;;  %1685 = vmatprep.mubr.bf16.mxu0 %v1277_v2 }
 0x222   : > { %1686 = vmatmul.mubr.bf16.gmra.mrb[52].mxu0 %v1276_v0  ;;  %v1336_v12 = vmul.f32 %v1304_v6, %v3973_v49  ;;  %v1334_v17 = vmul.f32 %v1302_v4, %v3977_v55 }
 0x223   : > { %v1247_v23 = vpop.f32.mrb[24].mxu1  ;;  %v1337_v24 = vmul.f32 %v1305_v11, %v3975_v50  ;;  %v1335_v25 = vmul.f32 %v1303_v8, %v3979_v58 }
 0x224   : > { %v1249_v13 = vpop.f32.mrb[25].mxu1 }
 0x225   : > { %v1251_v14 = vpop.f32.mrb[26].mxu1  ;;  %v1379_v26 = vadd.f32 %v1337_v24, %v1336_v12  ;;  %v1376_v18 = vadd.f32 %v1335_v25, %v1334_v17 }
 0x226   : > { %v1278_v19 = vpack.c.bf16 %v1251_v14, %v1247_v23  ;;  %v1253_v52 = vpop.f32.mrb[27].mxu1 }
 0x227   : > { %v1279_v38 = vpack.c.bf16 %v1253_v52, %v1249_v13  ;;  %1380 = vadd.xlane.f32.xlu1 %v1379_v26  ;;  %1377 = vadd.xlane.f32.xlu0 %v1376_v18 }
 0x228   : > { %v1306_v63 = vunpack.c.l.bf16 %v1278_v19  ;;  %v1308_v32 = vunpack.c.h.bf16 %v1278_v19 }
 0x229   : > { %v1307_v45 = vunpack.c.l.bf16 %v1279_v38  ;;  %v1309_v48 = vunpack.c.h.bf16 %v1279_v38  ;;  %1695 = vmatprep.mubr.bf16.mxu0 %v1279_v38 }
 0x22a   : > { %1696 = vmatmul.mubr.bf16.gmra.mrb[56].mxu0 %v1278_v19  ;;  %v1340_v20 = vmul.f32 %v1308_v32, %v3987_v9  ;;  %v1338_v33 = vmul.f32 %v1306_v63, %v3991_v21 }
 0x22b   : > { %v1257_v51 = vpop.f32.mrb[28].mxu1  ;;  %v1341_v54 = vmul.f32 %v1309_v48, %v3989_v10  ;;  %v1339_v41 = vmul.f32 %v1307_v45, %v3993_v22 }
 0x22c   : > { %v1259_v60 = vpop.f32.mrb[29].mxu1 }
 0x22d   : > { %v1261_v39 = vpop.f32.mrb[30].mxu1  ;;  %v1385_v61 = vadd.f32 %v1341_v54, %v1340_v20  ;;  %v1382_v62 = vadd.f32 %v1339_v41, %v1338_v33 }
 0x22e   : > { %v1280_v0 = vpack.c.bf16 %v1261_v39, %v1257_v51  ;;  %v1263_v1 = vpop.f32.mrb[31].mxu1 }
 0x22f   : > { %v1281_v2 = vpack.c.bf16 %v1263_v1, %v1259_v60  ;;  %1386 = vadd.xlane.f32.xlu1 %v1385_v61  ;;  %1383 = vadd.xlane.f32.xlu0 %v1382_v62 }
 0x230   : > { %v1310_v4 = vunpack.c.l.bf16 %v1280_v0  ;;  %v1312_v6 = vunpack.c.h.bf16 %v1280_v0 }
 0x231   : > { %v1311_v8 = vunpack.c.l.bf16 %v1281_v2  ;;  %v1313_v11 = vunpack.c.h.bf16 %v1281_v2  ;;  %1705 = vmatprep.mubr.bf16.mxu0 %v1281_v2 }
 0x232   : > { %1706 = vmatmul.mubr.bf16.gmra.mrb[60].mxu0 %v1280_v0  ;;  %v1344_v12 = vmul.f32 %v1312_v6, %v4001_v31  ;;  %v1342_v17 = vmul.f32 %v1310_v4, %v4005_v5 }
 0x233   : > { %v1345_v23 = vmul.f32 %v1313_v11, %v4003_v40  ;;  %v1343_v24 = vmul.f32 %v1311_v8, %v4007_v42 }
 0x235   : > { %v1391_v25 = vadd.f32 %v1345_v23, %v1344_v12  ;;  %v1388_v13 = vadd.f32 %v1343_v24, %v1342_v17 }
 0x237   : > { %1392 = vadd.xlane.f32.xlu1 %v1391_v25  ;;  %1389 = vadd.xlane.f32.xlu0 %v1388_v13 }
 0x28c   : > { %v1351_v14 = vpop.xlane.xlu1 %1350  ;;  %v1348_v26 = vpop.xlane.xlu0 %1347 }
 0x28d   : > { %1396 = vst.msk [vmem:[%s4017_s11 + $0x8] sm:$0xff] %vm1394_vm3, %v1351_v14  ;;  %1395 = vst.msk [vmem:[%s4017_s11] sm:$0xff] %vm1394_vm3, %v1348_v26 }
 0x294   : > { %v1357_v18 = vpop.xlane.xlu1 %1356  ;;  %v1354_v19 = vpop.xlane.xlu0 %1353 }
 0x295   : > { %1398 = vst.msk [vmem:[%s4017_s11 + $0x18] sm:$0xff] %vm1394_vm3, %v1357_v18  ;;  %1397 = vst.msk [vmem:[%s4017_s11 + $0x10] sm:$0xff] %vm1394_vm3, %v1354_v19 }
 0x29c   : > { %v1363_v52 = vpop.xlane.xlu1 %1362  ;;  %v1360_v38 = vpop.xlane.xlu0 %1359 }
 0x29d   : > { %1400 = vst.msk [vmem:[%s4017_s11 + $0x28] sm:$0xff] %vm1394_vm3, %v1363_v52  ;;  %1399 = vst.msk [vmem:[%s4017_s11 + $0x20] sm:$0xff] %vm1394_vm3, %v1360_v38 }
 0x2a4   : > { %v1369_v63 = vpop.xlane.xlu1 %1368  ;;  %v1366_v32 = vpop.xlane.xlu0 %1365 }
 0x2a5   : > { %1402 = vst.msk [vmem:[%s4017_s11 + $0x38] sm:$0xff] %vm1394_vm3, %v1369_v63  ;;  %1401 = vst.msk [vmem:[%s4017_s11 + $0x30] sm:$0xff] %vm1394_vm3, %v1366_v32 }
 0x2ac   : > { %v1375_v45 = vpop.xlane.xlu1 %1374  ;;  %v1372_v48 = vpop.xlane.xlu0 %1371 }
 0x2ad   : > { %1404 = vst.msk [vmem:[%s4017_s11 + $0x48] sm:$0xff] %vm1394_vm3, %v1375_v45  ;;  %1403 = vst.msk [vmem:[%s4017_s11 + $0x40] sm:$0xff] %vm1394_vm3, %v1372_v48 }
 0x2b4   : > { %v1381_v20 = vpop.xlane.xlu1 %1380  ;;  %v1378_v33 = vpop.xlane.xlu0 %1377 }
 0x2b5   : > { %1406 = vst.msk [vmem:[%s4017_s11 + $0x58] sm:$0xff] %vm1394_vm3, %v1381_v20  ;;  %1405 = vst.msk [vmem:[%s4017_s11 + $0x50] sm:$0xff] %vm1394_vm3, %v1378_v33 }
 0x2bc   : > { %v1387_v51 = vpop.xlane.xlu1 %1386  ;;  %v1384_v54 = vpop.xlane.xlu0 %1383 }
 0x2bd   : > { %1408 = vst.msk [vmem:[%s4017_s11 + $0x68] sm:$0xff] %vm1394_vm3, %v1387_v51  ;;  %1407 = vst.msk [vmem:[%s4017_s11 + $0x60] sm:$0xff] %vm1394_vm3, %v1384_v54 }
 0x2c4   : > { %v1393_v41 = vpop.xlane.xlu1 %1392  ;;  %v1390_v60 = vpop.xlane.xlu0 %1389 }
 0x2c5   : > { %1410 = vst.msk [vmem:[%s4017_s11 + $0x78] sm:$0xff] %vm1394_vm3, %v1393_v41  ;;  %1409 = vst.msk [vmem:[%s4017_s11 + $0x70] sm:$0xff] %vm1394_vm3, %v1390_v60 }
 0x2cd   : > { %v1637_v39 = vpop.f32.mrb[32].mxu0 }
 0x2ce   : > { %v1639_v61 = vpop.f32.mrb[33].mxu0 }
 0x2cf   : > { %v1641_v62 = vpop.f32.mrb[34].mxu0 }
 0x2d0   : > { %v1716_v0 = vpack.c.bf16 %v1641_v62, %v1637_v39  ;;  %v1643_v1 = vpop.f32.mrb[35].mxu0 }
 0x2d1   : > { %v1717_v2 = vpack.c.bf16 %v1643_v1, %v1639_v61 }
 0x2d2   : > { %v1732_v4 = vunpack.c.l.bf16 %v1716_v0  ;;  %v1734_v6 = vunpack.c.h.bf16 %v1716_v0 }
 0x2d3   : > { %v1733_v8 = vunpack.c.l.bf16 %v1717_v2  ;;  %v1735_v11 = vunpack.c.h.bf16 %v1717_v2  ;;  %2085 = vmatprep.mubr.bf16.mxu1 %v1717_v2 }
 0x2d4   : > { %2086 = vmatmul.mubr.bf16.vlgmr.msra.gmra.mrb[32].mxu1 %v1716_v0  ;;  %v1766_v12 = vmul.f32 %v1734_v6, %v3825_v43  ;;  %v1764_v17 = vmul.f32 %v1732_v4, %v3808_v34 }
 0x2d5   : > { %v1647_v23 = vpop.f32.mrb[36].mxu0  ;;  %v1767_v24 = vmul.f32 %v1735_v11, %v3827_v44  ;;  %v1765_v25 = vmul.f32 %v1733_v8, %v3810_v35 }
 0x2d6   : > { %v1649_v13 = vpop.f32.mrb[37].mxu0 }
 0x2d7   : > { %v1651_v14 = vpop.f32.mrb[38].mxu0  ;;  %v1799_v26 = vadd.f32 %v1767_v24, %v1766_v12  ;;  %v1796_v18 = vadd.f32 %v1765_v25, %v1764_v17 }
 0x2d8   : > { %v1718_v19 = vpack.c.bf16 %v1651_v14, %v1647_v23  ;;  %v1653_v52 = vpop.f32.mrb[39].mxu0 }
 0x2d9   : > { %v1719_v38 = vpack.c.bf16 %v1653_v52, %v1649_v13  ;;  %1800 = vadd.xlane.f32.xlu1 %v1799_v26  ;;  %1797 = vadd.xlane.f32.xlu0 %v1796_v18  ;;  %v3630_v52 = vld [vmem:[%s4684_s0 + $0x4] ss:$8 sps:$4 sm:$0xff]  }
 0x2da   : > { %v1736_v63 = vunpack.c.l.bf16 %v1718_v19  ;;  %v1738_v32 = vunpack.c.h.bf16 %v1718_v19  ;;  %2503 = vmatprep.subr.bf16.mxu0 %v3630_v52  ;;  %2953 = vmatprep.subr.bf16.mxu1 %v3630_v52 }
 0x2db   : > { %v1737_v45 = vunpack.c.l.bf16 %v1719_v38  ;;  %v1739_v48 = vunpack.c.h.bf16 %v1719_v38  ;;  %2095 = vmatprep.mubr.bf16.mxu1 %v1719_v38 }
 0x2dc   : > { %2096 = vmatmul.mubr.bf16.gmra.mrb[36].mxu1 %v1718_v19  ;;  %v1770_v20 = vmul.f32 %v1738_v32, %v3812_v36  ;;  %v1768_v33 = vmul.f32 %v1736_v63, %v3798_v28  ;;  %v3628_v19 = vld [vmem:[%s4684_s0] ss:$8 sps:$4 sm:$0xff]  }
 0x2dd   : > { %v1657_v51 = vpop.f32.mrb[40].mxu0  ;;  %v1771_v54 = vmul.f32 %v1739_v48, %v3814_v37  ;;  %v1769_v41 = vmul.f32 %v1737_v45, %v3800_v29  ;;  %2504 = vmatpush1.bf16.msra.mxu0 %v3628_v19  ;;  %2954 = vmatpush1.bf16.msra.mxu1 %v3628_v19 }
 0x2de   : > { %v1659_v60 = vpop.f32.mrb[41].mxu0 }
 0x2df   : > { %v1661_v39 = vpop.f32.mrb[42].mxu0  ;;  %v1805_v61 = vadd.f32 %v1771_v54, %v1770_v20  ;;  %v1802_v62 = vadd.f32 %v1769_v41, %v1768_v33 }
 0x2e0   : > { %v1720_v0 = vpack.c.bf16 %v1661_v39, %v1657_v51  ;;  %v1663_v1 = vpop.f32.mrb[43].mxu0 }
 0x2e1   : > { %v1721_v2 = vpack.c.bf16 %v1663_v1, %v1659_v60  ;;  %1806 = vadd.xlane.f32.xlu1 %v1805_v61  ;;  %1803 = vadd.xlane.f32.xlu0 %v1802_v62 }
 0x2e2   : > { %v1740_v4 = vunpack.c.l.bf16 %v1720_v0  ;;  %v1742_v6 = vunpack.c.h.bf16 %v1720_v0 }
 0x2e3   : > { %v1741_v8 = vunpack.c.l.bf16 %v1721_v2  ;;  %v1743_v11 = vunpack.c.h.bf16 %v1721_v2  ;;  %2105 = vmatprep.mubr.bf16.mxu1 %v1721_v2  ;;  %v3631_v2 = vld [vmem:[%s4684_s0 + $0x10] ss:$8 sps:$4 sm:$0xff]  }
 0x2e4   : > { %2106 = vmatmul.mubr.bf16.gmra.mrb[40].mxu1 %v1720_v0  ;;  %v1774_v12 = vmul.f32 %v1742_v6, %v3843_v56  ;;  %v1772_v17 = vmul.f32 %v1740_v4, %v3858_v3  ;;  %v3633_v4 = vld [vmem:[%s4684_s0 + $0x14] ss:$8 sps:$4 sm:$0xff]  }
 0x2e5   : > { %v1667_v23 = vpop.f32.mrb[44].mxu0  ;;  %v1775_v24 = vmul.f32 %v1743_v11, %v3845_v59  ;;  %v1773_v25 = vmul.f32 %v1741_v8, %v3867_v7  ;;  %v3636_v11 = vld [vmem:[%s4684_s0 + $0x24] ss:$8 sps:$4 sm:$0xff]   ;;  %2505 = vmatprep.subr.bf16.mxu0 %v3633_v4  ;;  %2955 = vmatprep.subr.bf16.mxu1 %v3633_v4 }
 0x2e6   : > { %v1669_v13 = vpop.f32.mrb[45].mxu0  ;;  %2506 = vmatpush1.bf16.msra.mxu0 %v3631_v2  ;;  %2956 = vmatpush1.bf16.msra.mxu1 %v3631_v2 }
 0x2e7   : > { %v1671_v14 = vpop.f32.mrb[46].mxu0  ;;  %v1811_v26 = vadd.f32 %v1775_v24, %v1774_v12  ;;  %v1808_v18 = vadd.f32 %v1773_v25, %v1772_v17  ;;  %2507 = vmatprep.subr.bf16.mxu0 %v3636_v11  ;;  %2957 = vmatprep.subr.bf16.mxu1 %v3636_v11 }
 0x2e8   : > { %v1722_v38 = vpack.c.bf16 %v1671_v14, %v1667_v23  ;;  %v1673_v63 = vpop.f32.mrb[47].mxu0 }
 0x2e9   : > { %v1723_v32 = vpack.c.bf16 %v1673_v63, %v1669_v13  ;;  %1812 = vadd.xlane.f32.xlu1 %v1811_v26  ;;  %1809 = vadd.xlane.f32.xlu0 %v1808_v18  ;;  %v3634_v13 = vld [vmem:[%s4684_s0 + $0x20] ss:$8 sps:$4 sm:$0xff]  }
 0x2ea   : > { %v1744_v45 = vunpack.c.l.bf16 %v1722_v38  ;;  %v1746_v48 = vunpack.c.h.bf16 %v1722_v38  ;;  %2508 = vmatpush1.bf16.msra.mxu0 %v3634_v13  ;;  %2958 = vmatpush1.bf16.msra.mxu1 %v3634_v13 }
 0x2eb   : > { %v1745_v20 = vunpack.c.l.bf16 %v1723_v32  ;;  %v1747_v33 = vunpack.c.h.bf16 %v1723_v32  ;;  %2115 = vmatprep.mubr.bf16.mxu1 %v1723_v32 }
 0x2ec   : > { %2116 = vmatmul.mubr.bf16.gmra.mrb[44].mxu1 %v1722_v38  ;;  %v1778_v51 = vmul.f32 %v1746_v48, %v3873_v15  ;;  %v1776_v54 = vmul.f32 %v1744_v45, %v3888_v27  ;;  %v3637_v48 = vld [vmem:[%s4684_s0 + $0x30] ss:$8 sps:$4 sm:$0xff]  }
 0x2ed   : > { %v1677_v41 = vpop.f32.mrb[48].mxu0  ;;  %v1779_v60 = vmul.f32 %v1747_v33, %v3875_v16  ;;  %v1777_v39 = vmul.f32 %v1745_v20, %v3890_v30  ;;  %v3639_v20 = vld [vmem:[%s4684_s0 + $0x34] ss:$8 sps:$4 sm:$0xff]  }
 0x2ee   : > { %v1679_v61 = vpop.f32.mrb[49].mxu0  ;;  %2509 = vmatprep.subr.bf16.mxu0 %v3639_v20  ;;  %2959 = vmatprep.subr.bf16.mxu1 %v3639_v20 }
 0x2ef   : > { %v1681_v62 = vpop.f32.mrb[50].mxu0  ;;  %v1817_v0 = vadd.f32 %v1779_v60, %v1778_v51  ;;  %v1814_v1 = vadd.f32 %v1777_v39, %v1776_v54  ;;  %v3642_v54 = vld [vmem:[%s4684_s0 + $0x44] ss:$8 sps:$4 sm:$0xff]   ;;  %2510 = vmatpush1.bf16.msra.mxu0 %v3637_v48  ;;  %2960 = vmatpush1.bf16.msra.mxu1 %v3637_v48 }
 0x2f0   : > { %v1724_v6 = vpack.c.bf16 %v1681_v62, %v1677_v41  ;;  %v1683_v8 = vpop.f32.mrb[51].mxu0  ;;  %2511 = vmatprep.subr.bf16.mxu0 %v3642_v54  ;;  %2961 = vmatprep.subr.bf16.mxu1 %v3642_v54 }
 0x2f1   : > { %v1725_v12 = vpack.c.bf16 %v1683_v8, %v1679_v61  ;;  %1818 = vadd.xlane.f32.xlu1 %v1817_v0  ;;  %1815 = vadd.xlane.f32.xlu0 %v1814_v1  ;;  %v3640_v0 = vld [vmem:[%s4684_s0 + $0x40] ss:$8 sps:$4 sm:$0xff]  }
 0x2f2   : > { %v1748_v17 = vunpack.c.l.bf16 %v1724_v6  ;;  %v1750_v23 = vunpack.c.h.bf16 %v1724_v6 }
 0x2f3   : > { %v1749_v24 = vunpack.c.l.bf16 %v1725_v12  ;;  %v1751_v25 = vunpack.c.h.bf16 %v1725_v12  ;;  %2125 = vmatprep.mubr.bf16.mxu1 %v1725_v12  ;;  %2512 = vmatpush1.bf16.msra.mxu0 %v3640_v0 }
 0x2f4   : > { %2126 = vmatmul.mubr.bf16.gmra.mrb[48].mxu1 %v1724_v6  ;;  %v1782_v14 = vmul.f32 %v1750_v23, %v3903_v46  ;;  %v1780_v26 = vmul.f32 %v1748_v17, %v3910_v53 }
 0x2f5   : > { %v1687_v18 = vpop.f32.mrb[52].mxu0  ;;  %v1783_v19 = vmul.f32 %v1751_v25, %v3905_v47  ;;  %v1781_v52 = vmul.f32 %v1749_v24, %v3916_v57  ;;  %v3643_v24 = vld [vmem:[%s4684_s0 + $0x50] ss:$8 sps:$4 sm:$0xff]   ;;  %v3645_v25 = vld [vmem:[%s4684_s0 + $0x54] ss:$8 sps:$4 sm:$0xff]   ;;  %2962 = vmatpush1.bf16.msra.mxu1 %v3640_v0 }
 0x2f6   : > { %v1689_v38 = vpop.f32.mrb[53].mxu0  ;;  %2513 = vmatprep.subr.bf16.mxu0 %v3645_v25  ;;  %2963 = vmatprep.subr.bf16.mxu1 %v3645_v25 }
 0x2f7   : > { %v1691_v63 = vpop.f32.mrb[54].mxu0  ;;  %v1823_v32 = vadd.f32 %v1783_v19, %v1782_v14  ;;  %v1820_v45 = vadd.f32 %v1781_v52, %v1780_v26  ;;  %v3648_v26 = vld [vmem:[%s4684_s0 + $0x64] ss:$8 sps:$4 sm:$0xff]   ;;  %2514 = vmatpush1.bf16.msra.mxu0 %v3643_v24 }
 0x2f8   : > { %v1726_v33 = vpack.c.bf16 %v1691_v63, %v1687_v18  ;;  %v1693_v51 = vpop.f32.mrb[55].mxu0  ;;  %2515 = vmatprep.subr.bf16.mxu0 %v3648_v26 }
 0x2f9   : > { %v1727_v41 = vpack.c.bf16 %v1693_v51, %v1689_v38  ;;  %1824 = vadd.xlane.f32.xlu1 %v1823_v32  ;;  %1821 = vadd.xlane.f32.xlu0 %v1820_v45  ;;  %v3646_v32 = vld [vmem:[%s4684_s0 + $0x60] ss:$8 sps:$4 sm:$0xff]  }
 0x2fa   : > { %v1752_v60 = vunpack.c.l.bf16 %v1726_v33  ;;  %v1754_v39 = vunpack.c.h.bf16 %v1726_v33  ;;  %2964 = vmatpush1.bf16.msra.mxu1 %v3643_v24 }
 0x2fb   : > { %v1753_v61 = vunpack.c.l.bf16 %v1727_v41  ;;  %v1755_v62 = vunpack.c.h.bf16 %v1727_v41  ;;  %2135 = vmatprep.mubr.bf16.mxu1 %v1727_v41  ;;  %2516 = vmatpush1.bf16.msra.mxu0 %v3646_v32 }
 0x2fc   : > { %2136 = vmatmul.mubr.bf16.gmra.mrb[52].mxu1 %v1726_v33  ;;  %v1786_v1 = vmul.f32 %v1754_v39, %v3973_v49  ;;  %v1784_v2 = vmul.f32 %v1752_v60, %v3977_v55  ;;  %2965 = vmatprep.subr.bf16.mxu1 %v3648_v26 }
 0x2fd   : > { %v1697_v4 = vpop.f32.mrb[56].mxu0  ;;  %v1787_v6 = vmul.f32 %v1755_v62, %v3975_v50  ;;  %v1785_v8 = vmul.f32 %v1753_v61, %v3979_v58  ;;  %v3649_v61 = vld [vmem:[%s4684_s0 + $0x70] ss:$8 sps:$4 sm:$0xff]   ;;  %v3651_v62 = vld [vmem:[%s4684_s0 + $0x74] ss:$8 sps:$4 sm:$0xff]  }
 0x2fe   : > { %v1699_v11 = vpop.f32.mrb[57].mxu0  ;;  %2517 = vmatprep.subr.bf16.mxu0 %v3651_v62  ;;  %2966 = vmatpush1.bf16.msra.mxu1 %v3646_v32  ;;  %v3663_v32 = vld [vmem:[%s4684_s0 + $0xb4] ss:$8 sps:$4 sm:$0xff]  }
 0x2ff   : > { %v1701_v12 = vpop.f32.mrb[58].mxu0  ;;  %v1829_v17 = vadd.f32 %v1787_v6, %v1786_v1  ;;  %v1826_v23 = vadd.f32 %v1785_v8, %v1784_v2  ;;  %v3654_v2 = vld [vmem:[%s4684_s0 + $0x84] ss:$8 sps:$4 sm:$0xff]   ;;  %2518 = vmatpush1.bf16.msra.mxu0 %v3649_v61  ;;  %2967 = vmatprep.subr.bf16.mxu1 %v3651_v62 }
 0x300   : > { %v1728_v13 = vpack.c.bf16 %v1701_v12, %v1697_v4  ;;  %v1703_v14 = vpop.f32.mrb[59].mxu0  ;;  %2519 = vmatprep.subr.bf16.mxu0 %v3654_v2 }
 0x301   : > { %v1729_v18 = vpack.c.bf16 %v1703_v14, %v1699_v11  ;;  %1830 = vadd.xlane.f32.xlu1 %v1829_v17  ;;  %1827 = vadd.xlane.f32.xlu0 %v1826_v23  ;;  %v3652_v17 = vld [vmem:[%s4684_s0 + $0x80] ss:$8 sps:$4 sm:$0xff]  }
 0x302   : > { %v1756_v19 = vunpack.c.l.bf16 %v1728_v13  ;;  %v1758_v52 = vunpack.c.h.bf16 %v1728_v13  ;;  %2968 = vmatpush1.bf16.msra.mxu1 %v3649_v61 }
 0x303   : > { %v1757_v38 = vunpack.c.l.bf16 %v1729_v18  ;;  %v1759_v63 = vunpack.c.h.bf16 %v1729_v18  ;;  %2145 = vmatprep.mubr.bf16.mxu1 %v1729_v18  ;;  %2520 = vmatpush1.bf16.msra.mxu0 %v3652_v17  ;;  %v3655_v18 = vld [vmem:[%s4684_s0 + $0x90] ss:$8 sps:$4 sm:$0xff]  }
 0x304   : > { %2146 = vmatmul.mubr.bf16.gmra.mrb[56].mxu1 %v1728_v13  ;;  %v1790_v45 = vmul.f32 %v1758_v52, %v3987_v9  ;;  %v1788_v48 = vmul.f32 %v1756_v19, %v3991_v21  ;;  %v3657_v19 = vld [vmem:[%s4684_s0 + $0x94] ss:$8 sps:$4 sm:$0xff]   ;;  %2969 = vmatprep.subr.bf16.mxu1 %v3654_v2  ;;  %v3660_v52 = vld [vmem:[%s4684_s0 + $0xa4] ss:$8 sps:$4 sm:$0xff]  }
 0x305   : > { %v1707_v20 = vpop.f32.mrb[60].mxu0  ;;  %v1791_v33 = vmul.f32 %v1759_v63, %v3989_v10  ;;  %v1789_v51 = vmul.f32 %v1757_v38, %v3993_v22  ;;  %2521 = vmatprep.subr.bf16.mxu0 %v3657_v19  ;;  %v3658_v38 = vld [vmem:[%s4684_s0 + $0xa0] ss:$8 sps:$4 sm:$0xff]   ;;  %v3661_v63 = vld [vmem:[%s4684_s0 + $0xb0] ss:$8 sps:$4 sm:$0xff]  }
 0x306   : > { %v1709_v54 = vpop.f32.mrb[61].mxu0  ;;  %2970 = vmatpush1.bf16.msra.mxu1 %v3652_v17 }
 0x307   : > { %v1711_v41 = vpop.f32.mrb[62].mxu0  ;;  %v1835_v60 = vadd.f32 %v1791_v33, %v1790_v45  ;;  %v1832_v39 = vadd.f32 %v1789_v51, %v1788_v48  ;;  %2522 = vmatpush1.bf16.msra.mxu0 %v3655_v18  ;;  %2971 = vmatprep.subr.bf16.mxu1 %v3657_v19  ;;  %v3666_v45 = vld [vmem:[%s4684_s0 + $0xc4] ss:$8 sps:$4 sm:$0xff]   ;;  %v3664_v48 = vld [vmem:[%s4684_s0 + $0xc0] ss:$8 sps:$4 sm:$0xff]  }
 0x308   : > { %v1730_v0 = vpack.c.bf16 %v1711_v41, %v1707_v20  ;;  %v1713_v1 = vpop.f32.mrb[63].mxu0  ;;  %2523 = vmatprep.subr.bf16.mxu0 %v3660_v52  ;;  %v3667_v20 = vld [vmem:[%s4684_s0 + $0xd0] ss:$8 sps:$4 sm:$0xff]   ;;  %v3669_v33 = vld [vmem:[%s4684_s0 + $0xd4] ss:$8 sps:$4 sm:$0xff]  }
 0x309   : > { %v1731_v4 = vpack.c.bf16 %v1713_v1, %v1709_v54  ;;  %1836 = vadd.xlane.f32.xlu1 %v1835_v60  ;;  %1833 = vadd.xlane.f32.xlu0 %v1832_v39  ;;  %v3672_v51 = vld [vmem:[%s4684_s0 + $0xe4] ss:$8 sps:$4 sm:$0xff]   ;;  %v3670_v54 = vld [vmem:[%s4684_s0 + $0xe0] ss:$8 sps:$4 sm:$0xff]   ;;  %v3675_v41 = vld [vmem:[%s4684_s0 + $0xf4] ss:$8 sps:$4 sm:$0xff]  }
 0x30a   : > { %v1760_v6 = vunpack.c.l.bf16 %v1730_v0  ;;  %v1762_v8 = vunpack.c.h.bf16 %v1730_v0  ;;  %2972 = vmatpush1.bf16.msra.mxu1 %v3655_v18  ;;  %v3673_v60 = vld [vmem:[%s4684_s0 + $0xf0] ss:$8 sps:$4 sm:$0xff]  }
 0x30b   : > { %v1761_v11 = vunpack.c.l.bf16 %v1731_v4  ;;  %v1763_v12 = vunpack.c.h.bf16 %v1731_v4  ;;  %2155 = vmatprep.mubr.bf16.mxu1 %v1731_v4  ;;  %2524 = vmatpush1.bf16.msra.mxu0 %v3658_v38 }
 0x30c   : > { %2156 = vmatmul.mubr.bf16.gmra.mrb[60].mxu1 %v1730_v0  ;;  %v1794_v23 = vmul.f32 %v1762_v8, %v4001_v31  ;;  %v1792_v24 = vmul.f32 %v1760_v6, %v4005_v5  ;;  %2973 = vmatprep.subr.bf16.mxu1 %v3660_v52 }
 0x30d   : > { %v1795_v25 = vmul.f32 %v1763_v12, %v4003_v40  ;;  %v1793_v13 = vmul.f32 %v1761_v11, %v4007_v42  ;;  %2525 = vmatprep.subr.bf16.mxu0 %v3663_v32 }
 0x30e   : > { %2974 = vmatpush1.bf16.msra.mxu1 %v3658_v38 }
 0x30f   : > { %v1841_v14 = vadd.f32 %v1795_v25, %v1794_v23  ;;  %v1838_v26 = vadd.f32 %v1793_v13, %v1792_v24  ;;  %2526 = vmatpush1.bf16.msra.mxu0 %v3661_v63  ;;  %2975 = vmatprep.subr.bf16.mxu1 %v3663_v32 }
 0x310   : > { %2527 = vmatprep.subr.bf16.mxu0 %v3666_v45 }
 0x311   : > { %1842 = vadd.xlane.f32.xlu1 %v1841_v14  ;;  %1839 = vadd.xlane.f32.xlu0 %v1838_v26 }
 0x312   : > { %2976 = vmatpush1.bf16.msra.mxu1 %v3661_v63 }
 0x313   : > { %2528 = vmatpush1.bf16.msra.mxu0 %v3664_v48  ;;  %2977 = vmatprep.subr.bf16.mxu1 %v3666_v45 }
 0x314   : > { %2529 = vmatprep.subr.bf16.mxu0 %v3669_v33 }
 0x316   : > { %2978 = vmatpush1.bf16.msra.mxu1 %v3664_v48 }
 0x317   : > { %2530 = vmatpush1.bf16.msra.mxu0 %v3667_v20  ;;  %2979 = vmatprep.subr.bf16.mxu1 %v3669_v33 }
 0x318   : > { %2531 = vmatprep.subr.bf16.mxu0 %v3672_v51 }
 0x31a   : > { %2980 = vmatpush1.bf16.msra.mxu1 %v3667_v20 }
 0x31b   : > { %2532 = vmatpush1.bf16.msra.mxu0 %v3670_v54  ;;  %2981 = vmatprep.subr.bf16.mxu1 %v3672_v51 }
 0x31c   : > { %2533 = vmatprep.subr.bf16.mxu0 %v3675_v41 }
 0x31e   : > { %2982 = vmatpush1.bf16.msra.mxu1 %v3670_v54 }
 0x31f   : > { %2534 = vmatpush1.bf16.msra.mxu0 %v3673_v60  ;;  %2983 = vmatprep.subr.bf16.mxu1 %v3675_v41 }
 0x322   : > { %2984 = vmatpush1.bf16.msra.mxu1 %v3673_v60 }
 0x366   : > { %v1801_v39 = vpop.xlane.xlu1 %1800  ;;  %v1798_v61 = vpop.xlane.xlu0 %1797 }
 0x367   : > { %1846 = vst.msk [vmem:[%s4017_s11 + $0x8] sm:$0xff] %vm1844_vm4, %v1801_v39  ;;  %1845 = vst.msk [vmem:[%s4017_s11] sm:$0xff] %vm1844_vm4, %v1798_v61 }
 0x36e   : > { %v1807_v62 = vpop.xlane.xlu1 %1806  ;;  %v1804_v0 = vpop.xlane.xlu0 %1803 }
 0x36f   : > { %1848 = vst.msk [vmem:[%s4017_s11 + $0x18] sm:$0xff] %vm1844_vm4, %v1807_v62  ;;  %1847 = vst.msk [vmem:[%s4017_s11 + $0x10] sm:$0xff] %vm1844_vm4, %v1804_v0 }
 0x376   : > { %v1813_v1 = vpop.xlane.xlu1 %1812  ;;  %v1810_v2 = vpop.xlane.xlu0 %1809 }
 0x377   : > { %1850 = vst.msk [vmem:[%s4017_s11 + $0x28] sm:$0xff] %vm1844_vm4, %v1813_v1  ;;  %1849 = vst.msk [vmem:[%s4017_s11 + $0x20] sm:$0xff] %vm1844_vm4, %v1810_v2 }
 0x37e   : > { %v1819_v4 = vpop.xlane.xlu1 %1818  ;;  %v1816_v6 = vpop.xlane.xlu0 %1815 }
 0x37f   : > { %1852 = vst.msk [vmem:[%s4017_s11 + $0x38] sm:$0xff] %vm1844_vm4, %v1819_v4  ;;  %1851 = vst.msk [vmem:[%s4017_s11 + $0x30] sm:$0xff] %vm1844_vm4, %v1816_v6 }
 0x386   : > { %v1825_v8 = vpop.xlane.xlu1 %1824  ;;  %v1822_v11 = vpop.xlane.xlu0 %1821 }
 0x387   : > { %1854 = vst.msk [vmem:[%s4017_s11 + $0x48] sm:$0xff] %vm1844_vm4, %v1825_v8  ;;  %1853 = vst.msk [vmem:[%s4017_s11 + $0x40] sm:$0xff] %vm1844_vm4, %v1822_v11 }
 0x38e   : > { %v1831_v12 = vpop.xlane.xlu1 %1830  ;;  %v1828_v17 = vpop.xlane.xlu0 %1827 }
 0x38f   : > { %1856 = vst.msk [vmem:[%s4017_s11 + $0x58] sm:$0xff] %vm1844_vm4, %v1831_v12  ;;  %1855 = vst.msk [vmem:[%s4017_s11 + $0x50] sm:$0xff] %vm1844_vm4, %v1828_v17 }
 0x396   : > { %v1837_v23 = vpop.xlane.xlu1 %1836  ;;  %v1834_v24 = vpop.xlane.xlu0 %1833 }
 0x397   : > { %1858 = vst.msk [vmem:[%s4017_s11 + $0x68] sm:$0xff] %vm1844_vm4, %v1837_v23  ;;  %1857 = vst.msk [vmem:[%s4017_s11 + $0x60] sm:$0xff] %vm1844_vm4, %v1834_v24 }
 0x39e   : > { %v1843_v25 = vpop.xlane.xlu1 %1842  ;;  %v1840_v13 = vpop.xlane.xlu0 %1839 }
 0x39f   : > { %1860 = vst.msk [vmem:[%s4017_s11 + $0x78] sm:$0xff] %vm1844_vm4, %v1843_v25  ;;  %1859 = vst.msk [vmem:[%s4017_s11 + $0x70] sm:$0xff] %vm1844_vm4, %v1840_v13 }
 0x3a7   : > { %v2087_v14 = vpop.f32.mrb[32].mxu1 }
 0x3a8   : > { %v2089_v26 = vpop.f32.mrb[33].mxu1 }
 0x3a9   : > { %v2091_v18 = vpop.f32.mrb[34].mxu1 }
 0x3aa   : > { %v2166_v19 = vpack.c.bf16 %v2091_v18, %v2087_v14  ;;  %v2093_v52 = vpop.f32.mrb[35].mxu1 }
 0x3ab   : > { %v2167_v38 = vpack.c.bf16 %v2093_v52, %v2089_v26 }
 0x3ac   : > { %v2182_v63 = vunpack.c.l.bf16 %v2166_v19  ;;  %v2184_v32 = vunpack.c.h.bf16 %v2166_v19 }
 0x3ad   : > { %v2183_v45 = vunpack.c.l.bf16 %v2167_v38  ;;  %v2185_v48 = vunpack.c.h.bf16 %v2167_v38  ;;  %2535 = vmatprep.mubr.bf16.mxu0 %v2167_v38 }
 0x3ae   : > { %2536 = vmatmul.mubr.bf16.vlgmr.msra.gmra.mrb[64].mxu0 %v2166_v19  ;;  %v2216_v20 = vmul.f32 %v2184_v32, %v3825_v43  ;;  %v2214_v33 = vmul.f32 %v2182_v63, %v3808_v34 }
 0x3af   : > { %v2097_v51 = vpop.f32.mrb[36].mxu1  ;;  %v2217_v54 = vmul.f32 %v2185_v48, %v3827_v44  ;;  %v2215_v41 = vmul.f32 %v2183_v45, %v3810_v35 }
 0x3b0   : > { %v2099_v60 = vpop.f32.mrb[37].mxu1 }
 0x3b1   : > { %v2101_v39 = vpop.f32.mrb[38].mxu1  ;;  %v2249_v61 = vadd.f32 %v2217_v54, %v2216_v20  ;;  %v2246_v62 = vadd.f32 %v2215_v41, %v2214_v33 }
 0x3b2   : > { %v2168_v0 = vpack.c.bf16 %v2101_v39, %v2097_v51  ;;  %v2103_v1 = vpop.f32.mrb[39].mxu1 }
 0x3b3   : > { %v2169_v2 = vpack.c.bf16 %v2103_v1, %v2099_v60  ;;  %2250 = vadd.xlane.f32.xlu1 %v2249_v61  ;;  %2247 = vadd.xlane.f32.xlu0 %v2246_v62 }
 0x3b4   : > { %v2186_v4 = vunpack.c.l.bf16 %v2168_v0  ;;  %v2188_v6 = vunpack.c.h.bf16 %v2168_v0 }
 0x3b5   : > { %v2187_v8 = vunpack.c.l.bf16 %v2169_v2  ;;  %v2189_v11 = vunpack.c.h.bf16 %v2169_v2  ;;  %2545 = vmatprep.mubr.bf16.mxu0 %v2169_v2 }
 0x3b6   : > { %2546 = vmatmul.mubr.bf16.gmra.mrb[68].mxu0 %v2168_v0  ;;  %v2220_v12 = vmul.f32 %v2188_v6, %v3812_v36  ;;  %v2218_v17 = vmul.f32 %v2186_v4, %v3798_v28 }
 0x3b7   : > { %v2107_v23 = vpop.f32.mrb[40].mxu1  ;;  %v2221_v24 = vmul.f32 %v2189_v11, %v3814_v37  ;;  %v2219_v25 = vmul.f32 %v2187_v8, %v3800_v29 }
 0x3b8   : > { %v2109_v13 = vpop.f32.mrb[41].mxu1 }
 0x3b9   : > { %v2111_v14 = vpop.f32.mrb[42].mxu1  ;;  %v2255_v26 = vadd.f32 %v2221_v24, %v2220_v12  ;;  %v2252_v18 = vadd.f32 %v2219_v25, %v2218_v17 }
 0x3ba   : > { %v2170_v19 = vpack.c.bf16 %v2111_v14, %v2107_v23  ;;  %v2113_v52 = vpop.f32.mrb[43].mxu1 }
 0x3bb   : > { %v2171_v38 = vpack.c.bf16 %v2113_v52, %v2109_v13  ;;  %2256 = vadd.xlane.f32.xlu1 %v2255_v26  ;;  %2253 = vadd.xlane.f32.xlu0 %v2252_v18 }
 0x3bc   : > { %v2190_v63 = vunpack.c.l.bf16 %v2170_v19  ;;  %v2192_v32 = vunpack.c.h.bf16 %v2170_v19 }
 0x3bd   : > { %v2191_v45 = vunpack.c.l.bf16 %v2171_v38  ;;  %v2193_v48 = vunpack.c.h.bf16 %v2171_v38  ;;  %2555 = vmatprep.mubr.bf16.mxu0 %v2171_v38 }
 0x3be   : > { %2556 = vmatmul.mubr.bf16.gmra.mrb[72].mxu0 %v2170_v19  ;;  %v2224_v20 = vmul.f32 %v2192_v32, %v3843_v56  ;;  %v2222_v33 = vmul.f32 %v2190_v63, %v3858_v3 }
 0x3bf   : > { %v2117_v51 = vpop.f32.mrb[44].mxu1  ;;  %v2225_v54 = vmul.f32 %v2193_v48, %v3845_v59  ;;  %v2223_v41 = vmul.f32 %v2191_v45, %v3867_v7 }
 0x3c0   : > { %v2119_v60 = vpop.f32.mrb[45].mxu1 }
 0x3c1   : > { %v2121_v39 = vpop.f32.mrb[46].mxu1  ;;  %v2261_v61 = vadd.f32 %v2225_v54, %v2224_v20  ;;  %v2258_v62 = vadd.f32 %v2223_v41, %v2222_v33 }
 0x3c2   : > { %v2172_v0 = vpack.c.bf16 %v2121_v39, %v2117_v51  ;;  %v2123_v1 = vpop.f32.mrb[47].mxu1 }
 0x3c3   : > { %v2173_v2 = vpack.c.bf16 %v2123_v1, %v2119_v60  ;;  %2262 = vadd.xlane.f32.xlu1 %v2261_v61  ;;  %2259 = vadd.xlane.f32.xlu0 %v2258_v62 }
 0x3c4   : > { %v2194_v4 = vunpack.c.l.bf16 %v2172_v0  ;;  %v2196_v6 = vunpack.c.h.bf16 %v2172_v0 }
 0x3c5   : > { %v2195_v8 = vunpack.c.l.bf16 %v2173_v2  ;;  %v2197_v11 = vunpack.c.h.bf16 %v2173_v2  ;;  %2565 = vmatprep.mubr.bf16.mxu0 %v2173_v2 }
 0x3c6   : > { %2566 = vmatmul.mubr.bf16.gmra.mrb[76].mxu0 %v2172_v0  ;;  %v2228_v12 = vmul.f32 %v2196_v6, %v3873_v15  ;;  %v2226_v17 = vmul.f32 %v2194_v4, %v3888_v27 }
 0x3c7   : > { %v2127_v23 = vpop.f32.mrb[48].mxu1  ;;  %v2229_v24 = vmul.f32 %v2197_v11, %v3875_v16  ;;  %v2227_v25 = vmul.f32 %v2195_v8, %v3890_v30 }
 0x3c8   : > { %v2129_v13 = vpop.f32.mrb[49].mxu1 }
 0x3c9   : > { %v2131_v14 = vpop.f32.mrb[50].mxu1  ;;  %v2267_v26 = vadd.f32 %v2229_v24, %v2228_v12  ;;  %v2264_v18 = vadd.f32 %v2227_v25, %v2226_v17 }
 0x3ca   : > { %v2174_v19 = vpack.c.bf16 %v2131_v14, %v2127_v23  ;;  %v2133_v52 = vpop.f32.mrb[51].mxu1 }
 0x3cb   : > { %v2175_v38 = vpack.c.bf16 %v2133_v52, %v2129_v13  ;;  %2268 = vadd.xlane.f32.xlu1 %v2267_v26  ;;  %2265 = vadd.xlane.f32.xlu0 %v2264_v18 }
 0x3cc   : > { %v2198_v63 = vunpack.c.l.bf16 %v2174_v19  ;;  %v2200_v32 = vunpack.c.h.bf16 %v2174_v19 }
 0x3cd   : > { %v2199_v45 = vunpack.c.l.bf16 %v2175_v38  ;;  %v2201_v48 = vunpack.c.h.bf16 %v2175_v38  ;;  %2575 = vmatprep.mubr.bf16.mxu0 %v2175_v38 }
 0x3ce   : > { %2576 = vmatmul.mubr.bf16.gmra.mrb[80].mxu0 %v2174_v19  ;;  %v2232_v20 = vmul.f32 %v2200_v32, %v3903_v46  ;;  %v2230_v33 = vmul.f32 %v2198_v63, %v3910_v53 }
 0x3cf   : > { %v2137_v51 = vpop.f32.mrb[52].mxu1  ;;  %v2233_v54 = vmul.f32 %v2201_v48, %v3905_v47  ;;  %v2231_v41 = vmul.f32 %v2199_v45, %v3916_v57 }
 0x3d0   : > { %v2139_v60 = vpop.f32.mrb[53].mxu1 }
 0x3d1   : > { %v2141_v39 = vpop.f32.mrb[54].mxu1  ;;  %v2273_v61 = vadd.f32 %v2233_v54, %v2232_v20  ;;  %v2270_v62 = vadd.f32 %v2231_v41, %v2230_v33 }
 0x3d2   : > { %v2176_v0 = vpack.c.bf16 %v2141_v39, %v2137_v51  ;;  %v2143_v1 = vpop.f32.mrb[55].mxu1 }
 0x3d3   : > { %v2177_v2 = vpack.c.bf16 %v2143_v1, %v2139_v60  ;;  %2274 = vadd.xlane.f32.xlu1 %v2273_v61  ;;  %2271 = vadd.xlane.f32.xlu0 %v2270_v62 }
 0x3d4   : > { %v2202_v4 = vunpack.c.l.bf16 %v2176_v0  ;;  %v2204_v6 = vunpack.c.h.bf16 %v2176_v0 }
 0x3d5   : > { %v2203_v8 = vunpack.c.l.bf16 %v2177_v2  ;;  %v2205_v11 = vunpack.c.h.bf16 %v2177_v2  ;;  %2585 = vmatprep.mubr.bf16.mxu0 %v2177_v2 }
 0x3d6   : > { %2586 = vmatmul.mubr.bf16.gmra.mrb[84].mxu0 %v2176_v0  ;;  %v2236_v12 = vmul.f32 %v2204_v6, %v3973_v49  ;;  %v2234_v17 = vmul.f32 %v2202_v4, %v3977_v55 }
 0x3d7   : > { %v2147_v23 = vpop.f32.mrb[56].mxu1  ;;  %v2237_v24 = vmul.f32 %v2205_v11, %v3975_v50  ;;  %v2235_v25 = vmul.f32 %v2203_v8, %v3979_v58 }
 0x3d8   : > { %v2149_v13 = vpop.f32.mrb[57].mxu1 }
 0x3d9   : > { %v2151_v14 = vpop.f32.mrb[58].mxu1  ;;  %v2279_v26 = vadd.f32 %v2237_v24, %v2236_v12  ;;  %v2276_v18 = vadd.f32 %v2235_v25, %v2234_v17 }
 0x3da   : > { %v2178_v19 = vpack.c.bf16 %v2151_v14, %v2147_v23  ;;  %v2153_v52 = vpop.f32.mrb[59].mxu1 }
 0x3db   : > { %v2179_v38 = vpack.c.bf16 %v2153_v52, %v2149_v13  ;;  %2280 = vadd.xlane.f32.xlu1 %v2279_v26  ;;  %2277 = vadd.xlane.f32.xlu0 %v2276_v18 }
 0x3dc   : > { %v2206_v63 = vunpack.c.l.bf16 %v2178_v19  ;;  %v2208_v32 = vunpack.c.h.bf16 %v2178_v19 }
 0x3dd   : > { %v2207_v45 = vunpack.c.l.bf16 %v2179_v38  ;;  %v2209_v48 = vunpack.c.h.bf16 %v2179_v38  ;;  %2595 = vmatprep.mubr.bf16.mxu0 %v2179_v38 }
 0x3de   : > { %2596 = vmatmul.mubr.bf16.gmra.mrb[88].mxu0 %v2178_v19  ;;  %v2240_v20 = vmul.f32 %v2208_v32, %v3987_v9  ;;  %v2238_v33 = vmul.f32 %v2206_v63, %v3991_v21 }
 0x3df   : > { %v2157_v51 = vpop.f32.mrb[60].mxu1  ;;  %v2241_v54 = vmul.f32 %v2209_v48, %v3989_v10  ;;  %v2239_v41 = vmul.f32 %v2207_v45, %v3993_v22 }
 0x3e0   : > { %v2159_v60 = vpop.f32.mrb[61].mxu1 }
 0x3e1   : > { %v2161_v39 = vpop.f32.mrb[62].mxu1  ;;  %v2285_v61 = vadd.f32 %v2241_v54, %v2240_v20  ;;  %v2282_v62 = vadd.f32 %v2239_v41, %v2238_v33 }
 0x3e2   : > { %v2180_v0 = vpack.c.bf16 %v2161_v39, %v2157_v51  ;;  %v2163_v1 = vpop.f32.mrb[63].mxu1 }
 0x3e3   : > { %v2181_v2 = vpack.c.bf16 %v2163_v1, %v2159_v60  ;;  %2286 = vadd.xlane.f32.xlu1 %v2285_v61  ;;  %2283 = vadd.xlane.f32.xlu0 %v2282_v62 }
 0x3e4   : > { %v2210_v4 = vunpack.c.l.bf16 %v2180_v0  ;;  %v2212_v6 = vunpack.c.h.bf16 %v2180_v0 }
 0x3e5   : > { %v2211_v8 = vunpack.c.l.bf16 %v2181_v2  ;;  %v2213_v11 = vunpack.c.h.bf16 %v2181_v2  ;;  %2605 = vmatprep.mubr.bf16.mxu0 %v2181_v2 }
 0x3e6   : > { %2606 = vmatmul.mubr.bf16.gmra.mrb[92].mxu0 %v2180_v0  ;;  %v2244_v12 = vmul.f32 %v2212_v6, %v4001_v31  ;;  %v2242_v17 = vmul.f32 %v2210_v4, %v4005_v5 }
 0x3e7   : > { %v2245_v23 = vmul.f32 %v2213_v11, %v4003_v40  ;;  %v2243_v24 = vmul.f32 %v2211_v8, %v4007_v42 }
 0x3e9   : > { %v2291_v25 = vadd.f32 %v2245_v23, %v2244_v12  ;;  %v2288_v13 = vadd.f32 %v2243_v24, %v2242_v17 }
 0x3eb   : > { %2292 = vadd.xlane.f32.xlu1 %v2291_v25  ;;  %2289 = vadd.xlane.f32.xlu0 %v2288_v13 }
 0x440   : > { %v2251_v14 = vpop.xlane.xlu1 %2250  ;;  %v2248_v26 = vpop.xlane.xlu0 %2247 }
 0x441   : > { %2296 = vst.msk [vmem:[%s4017_s11 + $0x8] sm:$0xff] %vm2294_vm5, %v2251_v14  ;;  %2295 = vst.msk [vmem:[%s4017_s11] sm:$0xff] %vm2294_vm5, %v2248_v26 }
 0x448   : > { %v2257_v18 = vpop.xlane.xlu1 %2256  ;;  %v2254_v19 = vpop.xlane.xlu0 %2253 }
 0x449   : > { %2298 = vst.msk [vmem:[%s4017_s11 + $0x18] sm:$0xff] %vm2294_vm5, %v2257_v18  ;;  %2297 = vst.msk [vmem:[%s4017_s11 + $0x10] sm:$0xff] %vm2294_vm5, %v2254_v19 }
 0x450   : > { %v2263_v52 = vpop.xlane.xlu1 %2262  ;;  %v2260_v38 = vpop.xlane.xlu0 %2259 }
 0x451   : > { %2300 = vst.msk [vmem:[%s4017_s11 + $0x28] sm:$0xff] %vm2294_vm5, %v2263_v52  ;;  %2299 = vst.msk [vmem:[%s4017_s11 + $0x20] sm:$0xff] %vm2294_vm5, %v2260_v38 }
 0x458   : > { %v2269_v63 = vpop.xlane.xlu1 %2268  ;;  %v2266_v32 = vpop.xlane.xlu0 %2265 }
 0x459   : > { %2302 = vst.msk [vmem:[%s4017_s11 + $0x38] sm:$0xff] %vm2294_vm5, %v2269_v63  ;;  %2301 = vst.msk [vmem:[%s4017_s11 + $0x30] sm:$0xff] %vm2294_vm5, %v2266_v32 }
 0x460   : > { %v2275_v45 = vpop.xlane.xlu1 %2274  ;;  %v2272_v48 = vpop.xlane.xlu0 %2271 }
 0x461   : > { %2304 = vst.msk [vmem:[%s4017_s11 + $0x48] sm:$0xff] %vm2294_vm5, %v2275_v45  ;;  %2303 = vst.msk [vmem:[%s4017_s11 + $0x40] sm:$0xff] %vm2294_vm5, %v2272_v48 }
 0x468   : > { %v2281_v20 = vpop.xlane.xlu1 %2280  ;;  %v2278_v33 = vpop.xlane.xlu0 %2277 }
 0x469   : > { %2306 = vst.msk [vmem:[%s4017_s11 + $0x58] sm:$0xff] %vm2294_vm5, %v2281_v20  ;;  %2305 = vst.msk [vmem:[%s4017_s11 + $0x50] sm:$0xff] %vm2294_vm5, %v2278_v33 }
 0x470   : > { %v2287_v51 = vpop.xlane.xlu1 %2286  ;;  %v2284_v54 = vpop.xlane.xlu0 %2283 }
 0x471   : > { %2308 = vst.msk [vmem:[%s4017_s11 + $0x68] sm:$0xff] %vm2294_vm5, %v2287_v51  ;;  %2307 = vst.msk [vmem:[%s4017_s11 + $0x60] sm:$0xff] %vm2294_vm5, %v2284_v54 }
 0x478   : > { %v2293_v41 = vpop.xlane.xlu1 %2292  ;;  %v2290_v60 = vpop.xlane.xlu0 %2289 }
 0x479   : > { %2310 = vst.msk [vmem:[%s4017_s11 + $0x78] sm:$0xff] %vm2294_vm5, %v2293_v41  ;;  %2309 = vst.msk [vmem:[%s4017_s11 + $0x70] sm:$0xff] %vm2294_vm5, %v2290_v60 }
 0x481   : > { %v2537_v39 = vpop.f32.mrb[64].mxu0 }
 0x482   : > { %v2539_v61 = vpop.f32.mrb[65].mxu0 }
 0x483   : > { %v2541_v62 = vpop.f32.mrb[66].mxu0 }
 0x484   : > { %v2616_v0 = vpack.c.bf16 %v2541_v62, %v2537_v39  ;;  %v2543_v1 = vpop.f32.mrb[67].mxu0 }
 0x485   : > { %v2617_v2 = vpack.c.bf16 %v2543_v1, %v2539_v61 }
 0x486   : > { %v2632_v4 = vunpack.c.l.bf16 %v2616_v0  ;;  %v2634_v6 = vunpack.c.h.bf16 %v2616_v0 }
 0x487   : > { %v2633_v8 = vunpack.c.l.bf16 %v2617_v2  ;;  %v2635_v11 = vunpack.c.h.bf16 %v2617_v2  ;;  %2985 = vmatprep.mubr.bf16.mxu1 %v2617_v2 }
 0x488   : > { %2986 = vmatmul.mubr.bf16.vlgmr.msra.gmra.mrb[64].mxu1 %v2616_v0  ;;  %v2666_v12 = vmul.f32 %v2634_v6, %v3825_v43  ;;  %v2664_v17 = vmul.f32 %v2632_v4, %v3808_v34 }
 0x489   : > { %v2547_v23 = vpop.f32.mrb[68].mxu0  ;;  %v2667_v24 = vmul.f32 %v2635_v11, %v3827_v44  ;;  %v2665_v25 = vmul.f32 %v2633_v8, %v3810_v35 }
 0x48a   : > { %v2549_v13 = vpop.f32.mrb[69].mxu0 }
 0x48b   : > { %v2551_v14 = vpop.f32.mrb[70].mxu0  ;;  %v2699_v26 = vadd.f32 %v2667_v24, %v2666_v12  ;;  %v2696_v18 = vadd.f32 %v2665_v25, %v2664_v17 }
 0x48c   : > { %v2618_v19 = vpack.c.bf16 %v2551_v14, %v2547_v23  ;;  %v2553_v52 = vpop.f32.mrb[71].mxu0 }
 0x48d   : > { %v2619_v38 = vpack.c.bf16 %v2553_v52, %v2549_v13  ;;  %2700 = vadd.xlane.f32.xlu1 %v2699_v26  ;;  %2697 = vadd.xlane.f32.xlu0 %v2696_v18 }
 0x48e   : > { %v2636_v63 = vunpack.c.l.bf16 %v2618_v19  ;;  %v2638_v32 = vunpack.c.h.bf16 %v2618_v19 }
 0x48f   : > { %v2637_v45 = vunpack.c.l.bf16 %v2619_v38  ;;  %v2639_v48 = vunpack.c.h.bf16 %v2619_v38  ;;  %2995 = vmatprep.mubr.bf16.mxu1 %v2619_v38 }
 0x490   : > { %2996 = vmatmul.mubr.bf16.gmra.mrb[68].mxu1 %v2618_v19  ;;  %v2670_v20 = vmul.f32 %v2638_v32, %v3812_v36  ;;  %v2668_v33 = vmul.f32 %v2636_v63, %v3798_v28 }
 0x491   : > { %v2557_v51 = vpop.f32.mrb[72].mxu0  ;;  %v2671_v54 = vmul.f32 %v2639_v48, %v3814_v37  ;;  %v2669_v41 = vmul.f32 %v2637_v45, %v3800_v29 }
 0x492   : > { %v2559_v60 = vpop.f32.mrb[73].mxu0 }
 0x493   : > { %v2561_v39 = vpop.f32.mrb[74].mxu0  ;;  %v2705_v61 = vadd.f32 %v2671_v54, %v2670_v20  ;;  %v2702_v62 = vadd.f32 %v2669_v41, %v2668_v33 }
 0x494   : > { %v2620_v0 = vpack.c.bf16 %v2561_v39, %v2557_v51  ;;  %v2563_v1 = vpop.f32.mrb[75].mxu0 }
 0x495   : > { %v2621_v2 = vpack.c.bf16 %v2563_v1, %v2559_v60  ;;  %2706 = vadd.xlane.f32.xlu1 %v2705_v61  ;;  %2703 = vadd.xlane.f32.xlu0 %v2702_v62 }
 0x496   : > { %v2640_v4 = vunpack.c.l.bf16 %v2620_v0  ;;  %v2642_v6 = vunpack.c.h.bf16 %v2620_v0 }
 0x497   : > { %v2641_v8 = vunpack.c.l.bf16 %v2621_v2  ;;  %v2643_v11 = vunpack.c.h.bf16 %v2621_v2  ;;  %3005 = vmatprep.mubr.bf16.mxu1 %v2621_v2 }
 0x498   : > { %3006 = vmatmul.mubr.bf16.gmra.mrb[72].mxu1 %v2620_v0  ;;  %v2674_v12 = vmul.f32 %v2642_v6, %v3843_v56  ;;  %v2672_v17 = vmul.f32 %v2640_v4, %v3858_v3 }
 0x499   : > { %v2567_v23 = vpop.f32.mrb[76].mxu0  ;;  %v2675_v24 = vmul.f32 %v2643_v11, %v3845_v59  ;;  %v2673_v25 = vmul.f32 %v2641_v8, %v3867_v7 }
 0x49a   : > { %v2569_v13 = vpop.f32.mrb[77].mxu0 }
 0x49b   : > { %v2571_v14 = vpop.f32.mrb[78].mxu0  ;;  %v2711_v26 = vadd.f32 %v2675_v24, %v2674_v12  ;;  %v2708_v18 = vadd.f32 %v2673_v25, %v2672_v17 }
 0x49c   : > { %v2622_v19 = vpack.c.bf16 %v2571_v14, %v2567_v23  ;;  %v2573_v52 = vpop.f32.mrb[79].mxu0 }
 0x49d   : > { %v2623_v38 = vpack.c.bf16 %v2573_v52, %v2569_v13  ;;  %2712 = vadd.xlane.f32.xlu1 %v2711_v26  ;;  %2709 = vadd.xlane.f32.xlu0 %v2708_v18 }
 0x49e   : > { %v2644_v63 = vunpack.c.l.bf16 %v2622_v19  ;;  %v2646_v32 = vunpack.c.h.bf16 %v2622_v19 }
 0x49f   : > { %v2645_v45 = vunpack.c.l.bf16 %v2623_v38  ;;  %v2647_v48 = vunpack.c.h.bf16 %v2623_v38  ;;  %3015 = vmatprep.mubr.bf16.mxu1 %v2623_v38 }
 0x4a0   : > { %3016 = vmatmul.mubr.bf16.gmra.mrb[76].mxu1 %v2622_v19  ;;  %v2678_v20 = vmul.f32 %v2646_v32, %v3873_v15  ;;  %v2676_v33 = vmul.f32 %v2644_v63, %v3888_v27 }
 0x4a1   : > { %v2577_v51 = vpop.f32.mrb[80].mxu0  ;;  %v2679_v54 = vmul.f32 %v2647_v48, %v3875_v16  ;;  %v2677_v41 = vmul.f32 %v2645_v45, %v3890_v30 }
 0x4a2   : > { %v2579_v60 = vpop.f32.mrb[81].mxu0 }
 0x4a3   : > { %v2581_v39 = vpop.f32.mrb[82].mxu0  ;;  %v2717_v61 = vadd.f32 %v2679_v54, %v2678_v20  ;;  %v2714_v62 = vadd.f32 %v2677_v41, %v2676_v33 }
 0x4a4   : > { %v2624_v0 = vpack.c.bf16 %v2581_v39, %v2577_v51  ;;  %v2583_v1 = vpop.f32.mrb[83].mxu0 }
 0x4a5   : > { %v2625_v2 = vpack.c.bf16 %v2583_v1, %v2579_v60  ;;  %2718 = vadd.xlane.f32.xlu1 %v2717_v61  ;;  %2715 = vadd.xlane.f32.xlu0 %v2714_v62 }
 0x4a6   : > { %v2648_v4 = vunpack.c.l.bf16 %v2624_v0  ;;  %v2650_v6 = vunpack.c.h.bf16 %v2624_v0 }
 0x4a7   : > { %v2649_v8 = vunpack.c.l.bf16 %v2625_v2  ;;  %v2651_v11 = vunpack.c.h.bf16 %v2625_v2  ;;  %3025 = vmatprep.mubr.bf16.mxu1 %v2625_v2 }
 0x4a8   : > { %3026 = vmatmul.mubr.bf16.gmra.mrb[80].mxu1 %v2624_v0  ;;  %v2682_v12 = vmul.f32 %v2650_v6, %v3903_v46  ;;  %v2680_v17 = vmul.f32 %v2648_v4, %v3910_v53 }
 0x4a9   : > { %v2587_v23 = vpop.f32.mrb[84].mxu0  ;;  %v2683_v24 = vmul.f32 %v2651_v11, %v3905_v47  ;;  %v2681_v25 = vmul.f32 %v2649_v8, %v3916_v57 }
 0x4aa   : > { %v2589_v13 = vpop.f32.mrb[85].mxu0 }
 0x4ab   : > { %v2591_v14 = vpop.f32.mrb[86].mxu0  ;;  %v2723_v26 = vadd.f32 %v2683_v24, %v2682_v12  ;;  %v2720_v18 = vadd.f32 %v2681_v25, %v2680_v17 }
 0x4ac   : > { %v2626_v19 = vpack.c.bf16 %v2591_v14, %v2587_v23  ;;  %v2593_v52 = vpop.f32.mrb[87].mxu0 }
 0x4ad   : > { %v2627_v38 = vpack.c.bf16 %v2593_v52, %v2589_v13  ;;  %2724 = vadd.xlane.f32.xlu1 %v2723_v26  ;;  %2721 = vadd.xlane.f32.xlu0 %v2720_v18 }
 0x4ae   : > { %v2652_v63 = vunpack.c.l.bf16 %v2626_v19  ;;  %v2654_v32 = vunpack.c.h.bf16 %v2626_v19 }
 0x4af   : > { %v2653_v45 = vunpack.c.l.bf16 %v2627_v38  ;;  %v2655_v48 = vunpack.c.h.bf16 %v2627_v38  ;;  %3035 = vmatprep.mubr.bf16.mxu1 %v2627_v38 }
 0x4b0   : > { %3036 = vmatmul.mubr.bf16.gmra.mrb[84].mxu1 %v2626_v19  ;;  %v2686_v20 = vmul.f32 %v2654_v32, %v3973_v49  ;;  %v2684_v33 = vmul.f32 %v2652_v63, %v3977_v55 }
 0x4b1   : > { %v2597_v51 = vpop.f32.mrb[88].mxu0  ;;  %v2687_v54 = vmul.f32 %v2655_v48, %v3975_v50  ;;  %v2685_v41 = vmul.f32 %v2653_v45, %v3979_v58 }
 0x4b2   : > { %v2599_v60 = vpop.f32.mrb[89].mxu0 }
 0x4b3   : > { %v2601_v39 = vpop.f32.mrb[90].mxu0  ;;  %v2729_v61 = vadd.f32 %v2687_v54, %v2686_v20  ;;  %v2726_v62 = vadd.f32 %v2685_v41, %v2684_v33 }
 0x4b4   : > { %v2628_v0 = vpack.c.bf16 %v2601_v39, %v2597_v51  ;;  %v2603_v1 = vpop.f32.mrb[91].mxu0 }
 0x4b5   : > { %v2629_v2 = vpack.c.bf16 %v2603_v1, %v2599_v60  ;;  %2730 = vadd.xlane.f32.xlu1 %v2729_v61  ;;  %2727 = vadd.xlane.f32.xlu0 %v2726_v62 }
 0x4b6   : > { %v2656_v4 = vunpack.c.l.bf16 %v2628_v0  ;;  %v2658_v6 = vunpack.c.h.bf16 %v2628_v0 }
 0x4b7   : > { %v2657_v8 = vunpack.c.l.bf16 %v2629_v2  ;;  %v2659_v11 = vunpack.c.h.bf16 %v2629_v2  ;;  %3045 = vmatprep.mubr.bf16.mxu1 %v2629_v2 }
 0x4b8   : > { %3046 = vmatmul.mubr.bf16.gmra.mrb[88].mxu1 %v2628_v0  ;;  %v2690_v12 = vmul.f32 %v2658_v6, %v3987_v9  ;;  %v2688_v17 = vmul.f32 %v2656_v4, %v3991_v21 }
 0x4b9   : > { %v2607_v23 = vpop.f32.mrb[92].mxu0  ;;  %v2691_v24 = vmul.f32 %v2659_v11, %v3989_v10  ;;  %v2689_v25 = vmul.f32 %v2657_v8, %v3993_v22 }
 0x4ba   : > { %v2609_v13 = vpop.f32.mrb[93].mxu0 }
 0x4bb   : > { %v2611_v14 = vpop.f32.mrb[94].mxu0  ;;  %v2735_v26 = vadd.f32 %v2691_v24, %v2690_v12  ;;  %v2732_v18 = vadd.f32 %v2689_v25, %v2688_v17 }
 0x4bc   : > { %v2630_v19 = vpack.c.bf16 %v2611_v14, %v2607_v23  ;;  %v2613_v52 = vpop.f32.mrb[95].mxu0 }
 0x4bd   : > { %v2631_v38 = vpack.c.bf16 %v2613_v52, %v2609_v13  ;;  %2736 = vadd.xlane.f32.xlu1 %v2735_v26  ;;  %2733 = vadd.xlane.f32.xlu0 %v2732_v18 }
 0x4be   : > { %v2660_v63 = vunpack.c.l.bf16 %v2630_v19  ;;  %v2662_v32 = vunpack.c.h.bf16 %v2630_v19 }
 0x4bf   : > { %v2661_v45 = vunpack.c.l.bf16 %v2631_v38  ;;  %v2663_v48 = vunpack.c.h.bf16 %v2631_v38  ;;  %3055 = vmatprep.mubr.bf16.mxu1 %v2631_v38 }
 0x4c0   : > { %3056 = vmatmul.mubr.bf16.gmra.mrb[92].mxu1 %v2630_v19  ;;  %v2694_v20 = vmul.f32 %v2662_v32, %v4001_v31  ;;  %v2692_v33 = vmul.f32 %v2660_v63, %v4005_v5 }
 0x4c1   : > { %v2695_v51 = vmul.f32 %v2663_v48, %v4003_v40  ;;  %v2693_v54 = vmul.f32 %v2661_v45, %v4007_v42 }
 0x4c3   : > { %v2741_v41 = vadd.f32 %v2695_v51, %v2694_v20  ;;  %v2738_v60 = vadd.f32 %v2693_v54, %v2692_v33 }
 0x4c5   : > { %2742 = vadd.xlane.f32.xlu1 %v2741_v41  ;;  %2739 = vadd.xlane.f32.xlu0 %v2738_v60 }
 0x51a   : > { %v2701_v39 = vpop.xlane.xlu1 %2700  ;;  %v2698_v61 = vpop.xlane.xlu0 %2697 }
 0x51b   : > { %2746 = vst.msk [vmem:[%s4017_s11 + $0x8] sm:$0xff] %vm2744_vm6, %v2701_v39  ;;  %2745 = vst.msk [vmem:[%s4017_s11] sm:$0xff] %vm2744_vm6, %v2698_v61 }
 0x522   : > { %v2707_v62 = vpop.xlane.xlu1 %2706  ;;  %v2704_v0 = vpop.xlane.xlu0 %2703 }
 0x523   : > { %2748 = vst.msk [vmem:[%s4017_s11 + $0x18] sm:$0xff] %vm2744_vm6, %v2707_v62  ;;  %2747 = vst.msk [vmem:[%s4017_s11 + $0x10] sm:$0xff] %vm2744_vm6, %v2704_v0 }
 0x52a   : > { %v2713_v1 = vpop.xlane.xlu1 %2712  ;;  %v2710_v2 = vpop.xlane.xlu0 %2709 }
 0x52b   : > { %2750 = vst.msk [vmem:[%s4017_s11 + $0x28] sm:$0xff] %vm2744_vm6, %v2713_v1  ;;  %2749 = vst.msk [vmem:[%s4017_s11 + $0x20] sm:$0xff] %vm2744_vm6, %v2710_v2 }
 0x532   : > { %v2719_v4 = vpop.xlane.xlu1 %2718  ;;  %v2716_v6 = vpop.xlane.xlu0 %2715 }
 0x533   : > { %2752 = vst.msk [vmem:[%s4017_s11 + $0x38] sm:$0xff] %vm2744_vm6, %v2719_v4  ;;  %2751 = vst.msk [vmem:[%s4017_s11 + $0x30] sm:$0xff] %vm2744_vm6, %v2716_v6 }
 0x53a   : > { %v2725_v8 = vpop.xlane.xlu1 %2724  ;;  %v2722_v11 = vpop.xlane.xlu0 %2721 }
 0x53b   : > { %2754 = vst.msk [vmem:[%s4017_s11 + $0x48] sm:$0xff] %vm2744_vm6, %v2725_v8  ;;  %2753 = vst.msk [vmem:[%s4017_s11 + $0x40] sm:$0xff] %vm2744_vm6, %v2722_v11 }
 0x542   : > { %v2731_v12 = vpop.xlane.xlu1 %2730  ;;  %v2728_v17 = vpop.xlane.xlu0 %2727 }
 0x543   : > { %2756 = vst.msk [vmem:[%s4017_s11 + $0x58] sm:$0xff] %vm2744_vm6, %v2731_v12  ;;  %2755 = vst.msk [vmem:[%s4017_s11 + $0x50] sm:$0xff] %vm2744_vm6, %v2728_v17 }
 0x54a   : > { %v2737_v23 = vpop.xlane.xlu1 %2736  ;;  %v2734_v24 = vpop.xlane.xlu0 %2733 }
 0x54b   : > { %2758 = vst.msk [vmem:[%s4017_s11 + $0x68] sm:$0xff] %vm2744_vm6, %v2737_v23  ;;  %2757 = vst.msk [vmem:[%s4017_s11 + $0x60] sm:$0xff] %vm2744_vm6, %v2734_v24 }
 0x552   : > { %v2743_v25 = vpop.xlane.xlu1 %2742  ;;  %v2740_v13 = vpop.xlane.xlu0 %2739 }
 0x553   : > { %2760 = vst.msk [vmem:[%s4017_s11 + $0x78] sm:$0xff] %vm2744_vm6, %v2743_v25  ;;  %2759 = vst.msk [vmem:[%s4017_s11 + $0x70] sm:$0xff] %vm2744_vm6, %v2740_v13 }
 0x55b   : > { %v2987_v14 = vpop.f32.mrb[64].mxu1 }
 0x55c   : > { %v2989_v26 = vpop.f32.mrb[65].mxu1 }
 0x55d   : > { %v2991_v18 = vpop.f32.mrb[66].mxu1 }
 0x55e   : > { %v3066_v19 = vpack.c.bf16 %v2991_v18, %v2987_v14  ;;  %v2993_v52 = vpop.f32.mrb[67].mxu1 }
 0x55f   : > { %v3067_v38 = vpack.c.bf16 %v2993_v52, %v2989_v26 }
 0x560   : > { %v3082_v63 = vunpack.c.l.bf16 %v3066_v19  ;;  %v3084_v32 = vunpack.c.h.bf16 %v3066_v19 }
 0x561   : > { %v3083_v45 = vunpack.c.l.bf16 %v3067_v38  ;;  %v3085_v48 = vunpack.c.h.bf16 %v3067_v38 }
 0x562   : > { %v3116_v20 = vmul.f32 %v3084_v32, %v3825_v43  ;;  %v3114_v33 = vmul.f32 %v3082_v63, %v3808_v34 }
 0x563   : > { %v2997_v51 = vpop.f32.mrb[68].mxu1  ;;  %v3117_v54 = vmul.f32 %v3085_v48, %v3827_v44  ;;  %v3115_v41 = vmul.f32 %v3083_v45, %v3810_v35 }
 0x564   : > { %v2999_v60 = vpop.f32.mrb[69].mxu1 }
 0x565   : > { %v3001_v39 = vpop.f32.mrb[70].mxu1  ;;  %v3149_v61 = vadd.f32 %v3117_v54, %v3116_v20  ;;  %v3146_v62 = vadd.f32 %v3115_v41, %v3114_v33 }
 0x566   : > { %v3068_v0 = vpack.c.bf16 %v3001_v39, %v2997_v51  ;;  %v3003_v1 = vpop.f32.mrb[71].mxu1 }
 0x567   : > { %v3069_v2 = vpack.c.bf16 %v3003_v1, %v2999_v60  ;;  %3150 = vadd.xlane.f32.xlu1 %v3149_v61  ;;  %3147 = vadd.xlane.f32.xlu0 %v3146_v62 }
 0x568   : > { %v3086_v4 = vunpack.c.l.bf16 %v3068_v0  ;;  %v3088_v6 = vunpack.c.h.bf16 %v3068_v0 }
 0x569   : > { %v3087_v8 = vunpack.c.l.bf16 %v3069_v2  ;;  %v3089_v43 = vunpack.c.h.bf16 %v3069_v2 }
 0x56a   : > { %v3118_v34 = vmul.f32 %v3086_v4, %v3798_v28  ;;  %v3120_v11 = vmul.f32 %v3088_v6, %v3812_v36 }
 0x56b   : > { %v3119_v44 = vmul.f32 %v3087_v8, %v3800_v29  ;;  %v3121_v35 = vmul.f32 %v3089_v43, %v3814_v37  ;;  %v3007_v12 = vpop.f32.mrb[72].mxu1 }
 0x56c   : > { %v3009_v17 = vpop.f32.mrb[73].mxu1 }
 0x56d   : > { %v3011_v23 = vpop.f32.mrb[74].mxu1  ;;  %v3155_v24 = vadd.f32 %v3121_v35, %v3120_v11  ;;  %v3152_v25 = vadd.f32 %v3119_v44, %v3118_v34 }
 0x56e   : > { %v3070_v13 = vpack.c.bf16 %v3011_v23, %v3007_v12  ;;  %v3013_v14 = vpop.f32.mrb[75].mxu1 }
 0x56f   : > { %v3071_v26 = vpack.c.bf16 %v3013_v14, %v3009_v17  ;;  %3156 = vadd.xlane.f32.xlu1 %v3155_v24  ;;  %3153 = vadd.xlane.f32.xlu0 %v3152_v25 }
 0x570   : > { %v3090_v18 = vunpack.c.l.bf16 %v3070_v13  ;;  %v3092_v19 = vunpack.c.h.bf16 %v3070_v13 }
 0x571   : > { %v3091_v52 = vunpack.c.l.bf16 %v3071_v26  ;;  %v3093_v28 = vunpack.c.h.bf16 %v3071_v26 }
 0x572   : > { %v3122_v36 = vmul.f32 %v3090_v18, %v3858_v3  ;;  %v3124_v29 = vmul.f32 %v3092_v19, %v3843_v56 }
 0x573   : > { %v3123_v37 = vmul.f32 %v3091_v52, %v3867_v7  ;;  %v3125_v38 = vmul.f32 %v3093_v28, %v3845_v59  ;;  %v3017_v63 = vpop.f32.mrb[76].mxu1 }
 0x574   : > { %v3019_v32 = vpop.f32.mrb[77].mxu1 }
 0x575   : > { %v3021_v45 = vpop.f32.mrb[78].mxu1  ;;  %v3161_v48 = vadd.f32 %v3125_v38, %v3124_v29  ;;  %v3158_v20 = vadd.f32 %v3123_v37, %v3122_v36 }
 0x576   : > { %v3072_v33 = vpack.c.bf16 %v3021_v45, %v3017_v63  ;;  %v3023_v51 = vpop.f32.mrb[79].mxu1 }
 0x577   : > { %v3073_v54 = vpack.c.bf16 %v3023_v51, %v3019_v32  ;;  %3162 = vadd.xlane.f32.xlu1 %v3161_v48  ;;  %3159 = vadd.xlane.f32.xlu0 %v3158_v20 }
 0x578   : > { %v3094_v41 = vunpack.c.l.bf16 %v3072_v33  ;;  %v3096_v60 = vunpack.c.h.bf16 %v3072_v33 }
 0x579   : > { %v3095_v39 = vunpack.c.l.bf16 %v3073_v54  ;;  %v3097_v3 = vunpack.c.h.bf16 %v3073_v54 }
 0x57a   : > { %v3126_v56 = vmul.f32 %v3094_v41, %v3888_v27  ;;  %v3128_v7 = vmul.f32 %v3096_v60, %v3873_v15 }
 0x57b   : > { %v3127_v59 = vmul.f32 %v3095_v39, %v3890_v30  ;;  %v3129_v61 = vmul.f32 %v3097_v3, %v3875_v16  ;;  %v3027_v62 = vpop.f32.mrb[80].mxu1 }
 0x57c   : > { %v3029_v0 = vpop.f32.mrb[81].mxu1 }
 0x57d   : > { %v3031_v1 = vpop.f32.mrb[82].mxu1  ;;  %v3167_v2 = vadd.f32 %v3129_v61, %v3128_v7  ;;  %v3164_v4 = vadd.f32 %v3127_v59, %v3126_v56 }
 0x57e   : > { %v3074_v6 = vpack.c.bf16 %v3031_v1, %v3027_v62  ;;  %v3033_v8 = vpop.f32.mrb[83].mxu1 }
 0x57f   : > { %v3075_v43 = vpack.c.bf16 %v3033_v8, %v3029_v0  ;;  %3168 = vadd.xlane.f32.xlu1 %v3167_v2  ;;  %3165 = vadd.xlane.f32.xlu0 %v3164_v4 }
 0x580   : > { %v3098_v34 = vunpack.c.l.bf16 %v3074_v6  ;;  %v3100_v11 = vunpack.c.h.bf16 %v3074_v6 }
 0x581   : > { %v3099_v44 = vunpack.c.l.bf16 %v3075_v43  ;;  %v3101_v27 = vunpack.c.h.bf16 %v3075_v43 }
 0x582   : > { %v3130_v15 = vmul.f32 %v3098_v34, %v3910_v53  ;;  %v3132_v30 = vmul.f32 %v3100_v11, %v3903_v46 }
 0x583   : > { %v3131_v16 = vmul.f32 %v3099_v44, %v3916_v57  ;;  %v3133_v35 = vmul.f32 %v3101_v27, %v3905_v47  ;;  %v3037_v12 = vpop.f32.mrb[84].mxu1 }
 0x584   : > { %v3039_v17 = vpop.f32.mrb[85].mxu1 }
 0x585   : > { %v3041_v23 = vpop.f32.mrb[86].mxu1  ;;  %v3173_v24 = vadd.f32 %v3133_v35, %v3132_v30  ;;  %v3170_v25 = vadd.f32 %v3131_v16, %v3130_v15 }
 0x586   : > { %v3076_v13 = vpack.c.bf16 %v3041_v23, %v3037_v12  ;;  %v3043_v14 = vpop.f32.mrb[87].mxu1 }
 0x587   : > { %v3077_v26 = vpack.c.bf16 %v3043_v14, %v3039_v17  ;;  %3174 = vadd.xlane.f32.xlu1 %v3173_v24  ;;  %3171 = vadd.xlane.f32.xlu0 %v3170_v25 }
 0x588   : > { %v3102_v18 = vunpack.c.l.bf16 %v3076_v13  ;;  %v3104_v19 = vunpack.c.h.bf16 %v3076_v13 }
 0x589   : > { %v3103_v52 = vunpack.c.l.bf16 %v3077_v26  ;;  %v3105_v53 = vunpack.c.h.bf16 %v3077_v26 }
 0x58a   : > { %v3134_v46 = vmul.f32 %v3102_v18, %v3977_v55  ;;  %v3136_v57 = vmul.f32 %v3104_v19, %v3973_v49 }
 0x58b   : > { %v3135_v47 = vmul.f32 %v3103_v52, %v3979_v58  ;;  %v3137_v28 = vmul.f32 %v3105_v53, %v3975_v50  ;;  %v3047_v36 = vpop.f32.mrb[88].mxu1 }
 0x58c   : > { %v3049_v29 = vpop.f32.mrb[89].mxu1 }
 0x58d   : > { %v3051_v37 = vpop.f32.mrb[90].mxu1  ;;  %v3179_v38 = vadd.f32 %v3137_v28, %v3136_v57  ;;  %v3176_v63 = vadd.f32 %v3135_v47, %v3134_v46 }
 0x58e   : > { %v3078_v32 = vpack.c.bf16 %v3051_v37, %v3047_v36  ;;  %v3053_v45 = vpop.f32.mrb[91].mxu1 }
 0x58f   : > { %v3079_v48 = vpack.c.bf16 %v3053_v45, %v3049_v29  ;;  %3180 = vadd.xlane.f32.xlu1 %v3179_v38  ;;  %3177 = vadd.xlane.f32.xlu0 %v3176_v63 }
 0x590   : > { %v3106_v20 = vunpack.c.l.bf16 %v3078_v32  ;;  %v3108_v33 = vunpack.c.h.bf16 %v3078_v32 }
 0x591   : > { %v3107_v51 = vunpack.c.l.bf16 %v3079_v48  ;;  %v3109_v55 = vunpack.c.h.bf16 %v3079_v48 }
 0x592   : > { %v3138_v49 = vmul.f32 %v3106_v20, %v3991_v21  ;;  %v3140_v58 = vmul.f32 %v3108_v33, %v3987_v9 }
 0x593   : > { %v3139_v50 = vmul.f32 %v3107_v51, %v3993_v22  ;;  %v3141_v54 = vmul.f32 %v3109_v55, %v3989_v10  ;;  %v3057_v41 = vpop.f32.mrb[92].mxu1 }
 0x594   : > { %v3059_v60 = vpop.f32.mrb[93].mxu1 }
 0x595   : > { %v3061_v39 = vpop.f32.mrb[94].mxu1  ;;  %v3185_v3 = vadd.f32 %v3141_v54, %v3140_v58  ;;  %v3182_v56 = vadd.f32 %v3139_v50, %v3138_v49 }
 0x596   : > { %v3080_v7 = vpack.c.bf16 %v3061_v39, %v3057_v41  ;;  %v3063_v59 = vpop.f32.mrb[95].mxu1 }
 0x597   : > { %v3081_v61 = vpack.c.bf16 %v3063_v59, %v3059_v60  ;;  %3186 = vadd.xlane.f32.xlu1 %v3185_v3  ;;  %3183 = vadd.xlane.f32.xlu0 %v3182_v56 }
 0x598   : > { %v3110_v62 = vunpack.c.l.bf16 %v3080_v7  ;;  %v3112_v21 = vunpack.c.h.bf16 %v3080_v7 }
 0x599   : > { %v3111_v0 = vunpack.c.l.bf16 %v3081_v61  ;;  %v3113_v9 = vunpack.c.h.bf16 %v3081_v61 }
 0x59a   : > { %v3142_v22 = vmul.f32 %v3110_v62, %v4005_v5  ;;  %v3144_v10 = vmul.f32 %v3112_v21, %v4001_v31 }
 0x59b   : > { %v3143_v1 = vmul.f32 %v3111_v0, %v4007_v42  ;;  %v3145_v2 = vmul.f32 %v3113_v9, %v4003_v40 }
 0x59d   : > { %v3191_v4 = vadd.f32 %v3145_v2, %v3144_v10  ;;  %v3188_v6 = vadd.f32 %v3143_v1, %v3142_v22 }
 0x59f   : > { %3192 = vadd.xlane.f32.xlu1 %v3191_v4  ;;  %3189 = vadd.xlane.f32.xlu0 %v3188_v6 }
 0x5f4   : > { %v3151_v8 = vpop.xlane.xlu1 %3150  ;;  %v3148_v43 = vpop.xlane.xlu0 %3147 }
 0x5f5   : > { %3196 = vst.msk [vmem:[%s4017_s11 + $0x8] sm:$0xff] %vm3194_vm7, %v3151_v8  ;;  %3195 = vst.msk [vmem:[%s4017_s11] sm:$0xff] %vm3194_vm7, %v3148_v43 }
 0x5fc   : > { %v3157_v31 = vpop.xlane.xlu1 %3156  ;;  %v3154_v5 = vpop.xlane.xlu0 %3153 }
 0x5fd   : > { %3198 = vst.msk [vmem:[%s4017_s11 + $0x18] sm:$0xff] %vm3194_vm7, %v3157_v31  ;;  %3197 = vst.msk [vmem:[%s4017_s11 + $0x10] sm:$0xff] %vm3194_vm7, %v3154_v5 }
 0x604   : > { %v3163_v40 = vpop.xlane.xlu1 %3162  ;;  %v3160_v42 = vpop.xlane.xlu0 %3159 }
 0x605   : > { %3200 = vst.msk [vmem:[%s4017_s11 + $0x28] sm:$0xff] %vm3194_vm7, %v3163_v40  ;;  %3199 = vst.msk [vmem:[%s4017_s11 + $0x20] sm:$0xff] %vm3194_vm7, %v3160_v42 }
 0x60c   : > { %v3169_v34 = vpop.xlane.xlu1 %3168  ;;  %v3166_v11 = vpop.xlane.xlu0 %3165 }
 0x60d   : > { %3202 = vst.msk [vmem:[%s4017_s11 + $0x38] sm:$0xff] %vm3194_vm7, %v3169_v34  ;;  %3201 = vst.msk [vmem:[%s4017_s11 + $0x30] sm:$0xff] %vm3194_vm7, %v3166_v11 }
 0x614   : > { %v3175_v44 = vpop.xlane.xlu1 %3174  ;;  %v3172_v27 = vpop.xlane.xlu0 %3171 }
 0x615   : > { %3204 = vst.msk [vmem:[%s4017_s11 + $0x48] sm:$0xff] %vm3194_vm7, %v3175_v44  ;;  %3203 = vst.msk [vmem:[%s4017_s11 + $0x40] sm:$0xff] %vm3194_vm7, %v3172_v27 }
 0x61c   : > { %v3181_v15 = vpop.xlane.xlu1 %3180  ;;  %v3178_v30 = vpop.xlane.xlu0 %3177 }
 0x61d   : > { %3206 = vst.msk [vmem:[%s4017_s11 + $0x58] sm:$0xff] %vm3194_vm7, %v3181_v15  ;;  %3205 = vst.msk [vmem:[%s4017_s11 + $0x50] sm:$0xff] %vm3194_vm7, %v3178_v30 }
 0x624   : > { %v3187_v16 = vpop.xlane.xlu1 %3186  ;;  %v3184_v35 = vpop.xlane.xlu0 %3183 }
 0x625   : > { %3208 = vst.msk [vmem:[%s4017_s11 + $0x68] sm:$0xff] %vm3194_vm7, %v3187_v16  ;;  %3207 = vst.msk [vmem:[%s4017_s11 + $0x60] sm:$0xff] %vm3194_vm7, %v3184_v35 }
 0x62c   : > { %v3193_v12 = vpop.xlane.xlu1 %3192  ;;  %v3190_v17 = vpop.xlane.xlu0 %3189 }
 0x62d   : > { %3210 = vst.msk [vmem:[%s4017_s11 + $0x78] sm:$0xff] %vm3194_vm7, %v3193_v12  ;;  %3209 = vst.msk [vmem:[%s4017_s11 + $0x70] sm:$0xff] %vm3194_vm7, %v3190_v17 }
 0x62e PF: > { %s13_s12 = sadd.s32 1, %s3682_s12  }
 0x62f   : > { %p10_p4 = scmp.ge.s32.totalorder %s13_s12, 4  }
 0x631   :  { %12 = sbr.rel (!%p10_p4) target bundleno = 1 (0x1), region = 66 }

</bundles_post_ra>
